<compile_context>
chip_gen: v5e
topology: v5e:2x2
jax: 0.10.0
libtpu: 0.0.40
codegen_flags: <defaults>
</compile_context>

<pallas_src>
import functools

import jax
import jax.numpy as jnp
from jax.experimental import pallas as pl
from jax.experimental.pallas import tpu as pltpu


# ------------------------------ fused Pallas kernel ------------------------------ #

def _bottleneck_body(x_ref, mask_ref, w1_ref, b1_ref, w2_ref, b2_ref,
                     w3_ref, b3_ref, ws_ref, bs_ref, o_ref, o1p_ref, *, Wxp, lead):
    """One (spatially zero-padded, flattened) image per grid step.

    x_ref   : (1, R, Cin)  bf16, R = Hx*Wxp padded spatial positions
    mask_ref: (R, 1)       f32, 1 on real pixels, 0 on the padding ring
    w*_ref  : bf16 matmul weights with the BN scale already folded in
              (w2 is dj-stacked: (3, 3*planes, planes))
    b*_ref  : (1, C) f32 BN biases
    o_ref   : (1, R, Cout) bf16 output over the padded grid (interior sliced in wrapper)
    o1p_ref : (rows, 3*planes) bf16 VMEM scratch: y1 staged three times (dj = -1,0,+1)
              with halo bands so every 3x3 row tap is a constant, aligned row offset.
    """
    f32 = jnp.float32
    bf16 = jnp.bfloat16
    R = x_ref.shape[1]
    p = w1_ref.shape[1]                               # planes

    # Zero the scratch once; unwritten band-edge rows only ever feed the discarded
    # padding-ring rows of the output, so this is for determinism, not correctness
    # (the scratch persists across grid iterations).
    @pl.when(pl.program_id(0) == 0)
    def _():
        o1p_ref[...] = jnp.zeros_like(o1p_ref)

    x = x_ref[0]                                      # (R, Cin) bf16
    mask = mask_ref[...]                              # (R, 1)   f32

    # ---- conv1 (1x1) + bn1 + relu (scale folded into w1); mask zeroes the pad ring so
    #      the 3x3 conv below sees proper zero padding.  Stored once in bf16.
    y1 = jnp.dot(x, w1_ref[...], preferred_element_type=f32)
    y1 = (jnp.maximum(y1 + b1_ref[...], 0.0) * mask).astype(bf16)

    # Stage y1 three times, shifted by dj in {-1, 0, +1}, into adjacent lane blocks so the
    # 3x3 conv becomes 3 matmuls with K = 3*planes instead of 9 matmuls with K = planes.
    o1p_ref[pl.ds(lead + 1, R), 0:p] = y1             # holds y1[row - 1]  (dj = -1)
    o1p_ref[pl.ds(lead, R), p:2 * p] = y1             # holds y1[row]      (dj =  0)
    o1p_ref[pl.ds(lead - 1, R), 2 * p:3 * p] = y1     # holds y1[row + 1]  (dj = +1)

    # ---- conv2 (3x3, pad=1) + bn2 + relu: 3 static row-offset taps (lead and Wxp are
    #      multiples of 8 -> aligned), f32 accumulation, b2 folded into the accumulator.
    acc2 = b2_ref[...].astype(f32)
    for di in range(3):                               # kh = 0,1,2  ->  row offset (di-1)*Wxp
        tap = o1p_ref[pl.ds(lead + (di - 1) * Wxp, R), :]          # (R, 3*planes) bf16
        acc2 = acc2 + jnp.dot(tap, w2_ref[di], preferred_element_type=f32)
    y2 = jnp.maximum(acc2, 0.0).astype(bf16)

    # ---- conv3 (1x1) + bn3 + shortcut + relu, all fused; bf16 output store.
    y3 = jnp.dot(y2, w3_ref[...], preferred_element_type=f32) + b3_ref[...]
    if ws_ref is not None:                            # projection shortcut (1x1 conv + BN)
        # TODO(synk): could stack [w3; ws] along K and concat [y2, x] for a single
        #             K = planes + Cin matmul (better MXU fill at shallow widths).
        sc = jnp.dot(x, ws_ref[...], preferred_element_type=f32) + bs_ref[...]
    else:                                             # identity shortcut (Cin == 4*planes)
        sc = x.astype(f32)                            # bf16 residual (input cast in wrapper)
    o_ref[0] = jnp.maximum(y3 + sc, 0.0).astype(o_ref.dtype)


def _kernel_proj(x_ref, mask_ref, w1, b1, w2, b2, w3, b3, ws, bs, o_ref, o1p,
                 *, Wxp, lead):
    _bottleneck_body(x_ref, mask_ref, w1, b1, w2, b2, w3, b3, ws, bs, o_ref, o1p,
                     Wxp=Wxp, lead=lead)


def _kernel_noproj(x_ref, mask_ref, w1, b1, w2, b2, w3, b3, o_ref, o1p, *, Wxp, lead):
    _bottleneck_body(x_ref, mask_ref, w1, b1, w2, b2, w3, b3, None, None, o_ref, o1p,
                     Wxp=Wxp, lead=lead)


# ----------------------------------- wrapper ----------------------------------- #

def bottleneck_forward(x_nchw, params, *, stride, in_planes, planes):
    """Pallas implementation of Bottleneck.forward.  Input/output are NCHW f32."""
    expansion = 4
    N, Cin, H, W = x_nchw.shape
    Cout = expansion * planes
    Ho = (H - 1) // stride + 1
    Wo = (W - 1) // stride + 1
    Hx = H + 2
    Wxp = ((W + 2 + 7) // 8) * 8          # padded row width rounded to a sublane multiple
    R = Hx * Wxp                          # flattened padded spatial positions (mult. of 8)
    lead = Wxp                            # halo band before the image (8-aligned)
    rows = R + 2 * Wxp                    # scratch rows incl. both halo bands

    has_proj = (stride != 1) or (in_planes != Cout)
    if not has_proj:
        assert in_planes == Cout, "identity shortcut requires in_planes == 4*planes"

    # NCHW -> NHWC once, zero-pad the 3x3 halo (plus right-pad to Wxp), flatten, cast bf16.
    x_nhwc = jnp.transpose(x_nchw, (0, 2, 3, 1))
    x_pad = jnp.pad(x_nhwc, ((0, 0), (1, 1), (1, Wxp - W - 1), (0, 0)))
    x_flat = x_pad.reshape(N, R, Cin).astype(jnp.bfloat16)

    # Interior mask (shared by all images): 1 on real pixels, 0 on the padding ring.
    ii = jnp.arange(Hx)[:, None]
    jj = jnp.arange(Wxp)[None, :]
    mask = ((ii >= 1) & (ii <= H) & (jj >= 1) & (jj <= W)).astype(jnp.float32)
    mask = mask.reshape(R, 1)

    vec = lambda c: pl.BlockSpec((1, c), lambda n: (0, 0))
    in_specs = [
        pl.BlockSpec((1, R, Cin), lambda n: (n, 0, 0)),              # x (per image)
        pl.BlockSpec((R, 1), lambda n: (0, 0)),                      # interior mask
        pl.BlockSpec((Cin, planes), lambda n: (0, 0)),               # w1 (scale-folded)
        vec(planes),                                                 # b1
        pl.BlockSpec((3, 3 * planes, planes), lambda n: (0, 0, 0)),  # w2 (dj-stacked)
        vec(planes),                                                 # b2
        pl.BlockSpec((planes, Cout), lambda n: (0, 0)),              # w3
        vec(Cout),                                                   # b3
    ]
    args = [x_flat, mask, params["w1"], params["b1"], params["w2"], params["b2"],
            params["w3"], params["b3"]]
    if has_proj:
        in_specs += [pl.BlockSpec((Cin, Cout), lambda n: (0, 0)), vec(Cout)]
        args += [params["ws"], params["bs"]]
        kernel = functools.partial(_kernel_proj, Wxp=Wxp, lead=lead)
    else:
        kernel = functools.partial(_kernel_noproj, Wxp=Wxp, lead=lead)

    out_flat = pl.pallas_call(
        kernel,
        out_shape=jax.ShapeDtypeStruct((N, R, Cout), jnp.bfloat16),   # bf16 writeback
        grid_spec=pltpu.PrefetchScalarGridSpec(
            num_scalar_prefetch=0,
            grid=(N,),
            in_specs=in_specs,
            out_specs=pl.BlockSpec((1, R, Cout), lambda n: (n, 0, 0)),
            scratch_shapes=[pltpu.VMEM((rows, 3 * planes), jnp.bfloat16)],
        ),
        compiler_params=pltpu.CompilerParams(
            dimension_semantics=("parallel",),
            vmem_limit_bytes=64 * 1024 * 1024),
    )(*args)

    # Drop the padding ring, apply the conv stride (keep the stride-s centers), back to NCHW.
    out_pad = out_flat.reshape(N, Hx, Wxp, Cout)
    out_nhwc = out_pad[:, 1::stride, 1::stride, :][:, :Ho, :Wo, :]
    return jnp.transpose(out_nhwc, (0, 3, 1, 2)).astype(jnp.float32)


# ------------------------------ parameter folding ------------------------------ #

def fold_bn(gamma, beta, mean, var, eps=1e-5):
    scale = gamma / jnp.sqrt(var + eps)
    bias = beta - mean * scale
    return scale.astype(jnp.float32), bias.astype(jnp.float32)


def prepare_params(raw, folded, *, planes, has_proj):
    """Fold BN scales into the conv weights; lay weights out channels-last in bf16."""
    p = {}
    s1, b1 = folded["s1"], folded["b1"]
    s2, b2 = folded["s2"], folded["b2"]
    s3, b3 = folded["s3"], folded["b3"]
    p["w1"] = (raw["w1"][:, :, 0, 0].T * s1[None, :]).astype(jnp.bfloat16)      # (Cin, planes)
    w2 = jnp.transpose(raw["w2"], (2, 3, 1, 0)) * s2                            # (kh, kw, cin, cout)
    p["w2"] = w2.reshape(3, 3 * planes, planes).astype(jnp.bfloat16)            # dj-stacked along K
    p["w3"] = (raw["w3"][:, :, 0, 0].T * s3[None, :]).astype(jnp.bfloat16)      # (planes, 4*planes)
    p["b1"] = b1.reshape(1, -1)
    p["b2"] = b2.reshape(1, -1)
    p["b3"] = b3.reshape(1, -1)
    if has_proj:
        ss, bs = folded["ss"], folded["bs"]
        p["ws"] = (raw["ws"][:, :, 0, 0].T * ss[None, :]).astype(jnp.bfloat16)  # (Cin, 4*planes)
        p["bs"] = bs.reshape(1, -1)
    return p


# ----------------------------- pure-JAX reference ----------------------------- #

def _conv_ref(x, w, stride, pad):
    return jax.lax.conv_general_dilated(
        x, w, (stride, stride), [(pad, pad), (pad, pad)],
        dimension_numbers=("NCHW", "OIHW", "NCHW"),
        precision=jax.lax.Precision.HIGHEST)


def _bn_ref(x, scale, bias):
    return x * scale.reshape(1, -1, 1, 1) + bias.reshape(1, -1, 1, 1)


def bottleneck_ref(x, raw, folded, *, stride, in_planes, planes):
    expansion = 4
    out = jax.nn.relu(_bn_ref(_conv_ref(x, raw["w1"], 1, 0), folded["s1"], folded["b1"]))
    out = jax.nn.relu(_bn_ref(_conv_ref(out, raw["w2"], stride, 1), folded["s2"], folded["b2"]))
    out = _bn_ref(_conv_ref(out, raw["w3"], 1, 0), folded["s3"], folded["b3"])
    if stride != 1 or in_planes != expansion * planes:
        sc = _bn_ref(_conv_ref(x, raw["ws"], stride, 0), folded["ss"], folded["bs"])
    else:
        sc = x
    return jax.nn.relu(out + sc)


# ------------------------------------ main ------------------------------------ #

if __name__ == "__main__":
    key = jax.random.PRNGKey(0)

    def make_bn(k, c):
        ks = jax.random.split(k, 4)
        gamma = jax.random.uniform(ks[0], (c,), minval=0.5, maxval=1.5)
        beta = jax.random.normal(ks[1], (c,)) * 0.1
        mean = jax.random.normal(ks[2], (c,)) * 0.1
        var = jax.random.uniform(ks[3], (c,), minval=0.5, maxval=1.5)
        return fold_bn(gamma, beta, mean, var)

    def run_case(k, *, N, in_planes, planes, stride, H, W):
        expansion = 4
        Cout = expansion * planes
        keys = jax.random.split(k, 9)
        x = jax.random.normal(keys[0], (N, in_planes, H, W), dtype=jnp.float32)
        raw = {
            "w1": jax.random.normal(keys[1], (planes, in_planes, 1, 1), jnp.float32) * 0.2,
            "w2": jax.random.normal(keys[2], (planes, planes, 3, 3), jnp.float32) * 0.2,
            "w3": jax.random.normal(keys[3], (Cout, planes, 1, 1), jnp.float32) * 0.2,
            "ws": jax.random.normal(keys[4], (Cout, in_planes, 1, 1), jnp.float32) * 0.2,
        }
        s1, b1 = make_bn(keys[5], planes)
        s2, b2 = make_bn(keys[6], planes)
        s3, b3 = make_bn(keys[7], Cout)
        ss, bs = make_bn(keys[8], Cout)
        folded = {"s1": s1, "b1": b1, "s2": s2, "b2": b2,
                  "s3": s3, "b3": b3, "ss": ss, "bs": bs}

        has_proj = (stride != 1) or (in_planes != Cout)
        params = prepare_params(raw, folded, planes=planes, has_proj=has_proj)

        out = jax.block_until_ready(
            bottleneck_forward(x, params, stride=stride,
                               in_planes=in_planes, planes=planes))
        ref = bottleneck_ref(x, raw, folded, stride=stride,
                             in_planes=in_planes, planes=planes)

        Ho = (H - 1) // stride + 1
        Wo = (W - 1) // stride + 1
        assert out.shape == (N, Cout, Ho, Wo), out.shape
        err = float(jnp.max(jnp.abs(out - ref)))
        assert jnp.allclose(out, ref, atol=2e-2, rtol=2e-2), err
        return err

    k1, k2, k3 = jax.random.split(key, 3)
    run_case(k1, N=2, in_planes=4, planes=4, stride=1, H=16, W=16)    # projection shortcut
    run_case(k2, N=2, in_planes=4, planes=4, stride=2, H=16, W=16)    # strided projection
    run_case(k3, N=2, in_planes=16, planes=4, stride=1, H=16, W=16)   # identity shortcut

    print("KERNEL_OK")
</pallas_src>

<mosaic_0001>
module attributes {stable_mosaic.version = 11 : i64} {
  func.func @_kernel_proj(%arg0: i32, %arg1: memref<1x432x4xbf16, #tpu.memory_space<vmem>>, %arg2: memref<432x1xf32, #tpu.memory_space<vmem>>, %arg3: memref<4x4xbf16, #tpu.memory_space<vmem>>, %arg4: memref<1x4xf32, #tpu.memory_space<vmem>>, %arg5: memref<3x12x4xbf16, #tpu.memory_space<vmem>>, %arg6: memref<1x4xf32, #tpu.memory_space<vmem>>, %arg7: memref<4x16xbf16, #tpu.memory_space<vmem>>, %arg8: memref<1x16xf32, #tpu.memory_space<vmem>>, %arg9: memref<4x16xbf16, #tpu.memory_space<vmem>>, %arg10: memref<1x16xf32, #tpu.memory_space<vmem>>, %arg11: memref<1x432x16xbf16, #tpu.memory_space<vmem>>, %arg12: memref<480x12xbf16, #tpu.memory_space<vmem>>) attributes {dimension_semantics = [#tpu.dimension_semantics<parallel>], iteration_bounds = array<i64: 2>, scalar_prefetch = 0 : i64, scratch_operands = 1 : i64, tpu.core_type = #tpu.core_type<tc>, window_params = [{transform_indices = @transform_0, window_bounds = array<i64: 1, 432, 4>}, {pipeline_mode = #tpu.pipeline_mode<synchronous>, transform_indices = @transform_1, window_bounds = array<i64: 432, 1>}, {pipeline_mode = #tpu.pipeline_mode<synchronous>, transform_indices = @transform_2, window_bounds = array<i64: 4, 4>}, {pipeline_mode = #tpu.pipeline_mode<synchronous>, transform_indices = @transform_3, window_bounds = array<i64: 1, 4>}, {pipeline_mode = #tpu.pipeline_mode<synchronous>, transform_indices = @transform_4, window_bounds = array<i64: 3, 12, 4>}, {pipeline_mode = #tpu.pipeline_mode<synchronous>, transform_indices = @transform_5, window_bounds = array<i64: 1, 4>}, {pipeline_mode = #tpu.pipeline_mode<synchronous>, transform_indices = @transform_6, window_bounds = array<i64: 4, 16>}, {pipeline_mode = #tpu.pipeline_mode<synchronous>, transform_indices = @transform_7, window_bounds = array<i64: 1, 16>}, {pipeline_mode = #tpu.pipeline_mode<synchronous>, transform_indices = @transform_8, window_bounds = array<i64: 4, 16>}, {pipeline_mode = #tpu.pipeline_mode<synchronous>, transform_indices = @transform_9, window_bounds = array<i64: 1, 16>}, {transform_indices = @transform_10, window_bounds = array<i64: 1, 432, 16>}]} {
    %c0_i32 = arith.constant 0 : i32
    %0 = arith.cmpi eq, %arg0, %c0_i32 : i32
    %1 = arith.extui %0 : i1 to i32
    %c0_i32_0 = arith.constant 0 : i32
    %2 = arith.cmpi ne, %1, %c0_i32_0 : i32
    scf.if %2 {
      %cst_43 = arith.constant 0.000000e+00 : bf16
      %56 = vector.broadcast %cst_43 : bf16 to vector<480x12xbf16>
      %c0_44 = arith.constant 0 : index
      %c0_45 = arith.constant 0 : index
      %57 = vector.load %arg12[%c0_44, %c0_45] : memref<480x12xbf16, #tpu.memory_space<vmem>>, vector<480x12xbf16>
      tpu.vector_store %arg12[%c0_44, %c0_45], %56 {strides = array<i32>} : memref<480x12xbf16, #tpu.memory_space<vmem>>, vector<480x12xbf16>,
    } else {
    }
    %c0 = arith.constant 0 : index
    %c0_1 = arith.constant 0 : index
    %c0_2 = arith.constant 0 : index
    %3 = vector.load %arg1[%c0, %c0_1, %c0_2] : memref<1x432x4xbf16, #tpu.memory_space<vmem>>, vector<1x432x4xbf16>
    %4 = vector.shape_cast %3 : vector<1x432x4xbf16> to vector<432x4xbf16>
    %c0_3 = arith.constant 0 : index
    %c0_4 = arith.constant 0 : index
    %5 = vector.load %arg2[%c0_3, %c0_4] : memref<432x1xf32, #tpu.memory_space<vmem>>, vector<432x1xf32>
    %c0_5 = arith.constant 0 : index
    %c0_6 = arith.constant 0 : index
    %6 = vector.load %arg3[%c0_5, %c0_6] : memref<4x4xbf16, #tpu.memory_space<vmem>>, vector<4x4xbf16>
    %cst = arith.constant dense<0.000000e+00> : vector<432x4xf32>
    %7 = tpu.matmul %4, %6, %cst {dimension_numbers = #tpu.dot_dimension_numbers<[1], [0], [0], [1], [0, 0, 1, 1], [], []>} : vector<432x4xbf16>, vector<4x4xbf16>, vector<432x4xf32> -> vector<432x4xf32>
    %c0_7 = arith.constant 0 : index
    %c0_8 = arith.constant 0 : index
    %8 = vector.load %arg4[%c0_7, %c0_8] : memref<1x4xf32, #tpu.memory_space<vmem>>, vector<1x4xf32>
    %9 = vector.broadcast %8 : vector<1x4xf32> to vector<432x4xf32>
    %10 = arith.addf %7, %9 : vector<432x4xf32>
    %cst_9 = arith.constant 0.000000e+00 : f32
    %11 = vector.broadcast %cst_9 : f32 to vector<432x4xf32>
    %12 = arith.maximumf %10, %11 : vector<432x4xf32>
    %13 = vector.broadcast %5 : vector<432x1xf32> to vector<432x4xf32>
    %14 = arith.mulf %12, %13 : vector<432x4xf32>
    %15 = arith.truncf %14 : vector<432x4xf32> to vector<432x4xbf16>
    %c25 = arith.constant 25 : index
    %c0_10 = arith.constant 0 : index
    %16 = vector.load %arg12[%c25, %c0_10] : memref<480x12xbf16, #tpu.memory_space<vmem>>, vector<432x4xbf16>
    tpu.vector_store %arg12[%c25, %c0_10], %15 {strides = array<i32>} : memref<480x12xbf16, #tpu.memory_space<vmem>>, vector<432x4xbf16>,
    %c24 = arith.constant 24 : index
    %c4 = arith.constant 4 : index
    %17 = vector.load %arg12[%c24, %c4] : memref<480x12xbf16, #tpu.memory_space<vmem>>, vector<432x4xbf16>
    tpu.vector_store %arg12[%c24, %c4], %15 {strides = array<i32>} : memref<480x12xbf16, #tpu.memory_space<vmem>>, vector<432x4xbf16>,
    %c23 = arith.constant 23 : index
    %c8 = arith.constant 8 : index
    %18 = vector.load %arg12[%c23, %c8] : memref<480x12xbf16, #tpu.memory_space<vmem>>, vector<432x4xbf16>
    tpu.vector_store %arg12[%c23, %c8], %15 {strides = array<i32>} : memref<480x12xbf16, #tpu.memory_space<vmem>>, vector<432x4xbf16>,
    %c0_11 = arith.constant 0 : index
    %c0_12 = arith.constant 0 : index
    %19 = vector.load %arg6[%c0_11, %c0_12] : memref<1x4xf32, #tpu.memory_space<vmem>>, vector<1x4xf32>
    %c0_13 = arith.constant 0 : index
    %c0_14 = arith.constant 0 : index
    %20 = vector.load %arg12[%c0_13, %c0_14] : memref<480x12xbf16, #tpu.memory_space<vmem>>, vector<432x12xbf16>
    %c0_15 = arith.constant 0 : index
    %c0_16 = arith.constant 0 : index
    %c0_17 = arith.constant 0 : index
    %21 = vector.load %arg5[%c0_15, %c0_16, %c0_17] : memref<3x12x4xbf16, #tpu.memory_space<vmem>>, vector<1x12x4xbf16>
    %22 = vector.shape_cast %21 : vector<1x12x4xbf16> to vector<12x4xbf16>
    %cst_18 = arith.constant dense<0.000000e+00> : vector<432x4xf32>
    %23 = tpu.matmul %20, %22, %cst_18 {dimension_numbers = #tpu.dot_dimension_numbers<[1], [0], [0], [1], [0, 0, 1, 1], [], []>} : vector<432x12xbf16>, vector<12x4xbf16>, vector<432x4xf32> -> vector<432x4xf32>
    %24 = vector.broadcast %19 : vector<1x4xf32> to vector<432x4xf32>
    %25 = arith.addf %24, %23 : vector<432x4xf32>
    %c24_19 = arith.constant 24 : index
    %c0_20 = arith.constant 0 : index
    %26 = vector.load %arg12[%c24_19, %c0_20] : memref<480x12xbf16, #tpu.memory_space<vmem>>, vector<432x12xbf16>
    %c1 = arith.constant 1 : index
    %c0_21 = arith.constant 0 : index
    %c0_22 = arith.constant 0 : index
    %27 = vector.load %arg5[%c1, %c0_21, %c0_22] : memref<3x12x4xbf16, #tpu.memory_space<vmem>>, vector<1x12x4xbf16>
    %28 = vector.shape_cast %27 : vector<1x12x4xbf16> to vector<12x4xbf16>
    %cst_23 = arith.constant dense<0.000000e+00> : vector<432x4xf32>
    %29 = tpu.matmul %26, %28, %cst_23 {dimension_numbers = #tpu.dot_dimension_numbers<[1], [0], [0], [1], [0, 0, 1, 1], [], []>} : vector<432x12xbf16>, vector<12x4xbf16>, vector<432x4xf32> -> vector<432x4xf32>
    %30 = arith.addf %25, %29 : vector<432x4xf32>
    %c48 = arith.constant 48 : index
    %c0_24 = arith.constant 0 : index
    %31 = vector.load %arg12[%c48, %c0_24] : memref<480x12xbf16, #tpu.memory_space<vmem>>, vector<432x12xbf16>
    %c2 = arith.constant 2 : index
    %c0_25 = arith.constant 0 : index
    %c0_26 = arith.constant 0 : index
    %32 = vector.load %arg5[%c2, %c0_25, %c0_26] : memref<3x12x4xbf16, #tpu.memory_space<vmem>>, vector<1x12x4xbf16>
    %33 = vector.shape_cast %32 : vector<1x12x4xbf16> to vector<12x4xbf16>
    %cst_27 = arith.constant dense<0.000000e+00> : vector<432x4xf32>
    %34 = tpu.matmul %31, %33, %cst_27 {dimension_numbers = #tpu.dot_dimension_numbers<[1], [0], [0], [1], [0, 0, 1, 1], [], []>} : vector<432x12xbf16>, vector<12x4xbf16>, vector<432x4xf32> -> vector<432x4xf32>
    %35 = arith.addf %30, %34 : vector<432x4xf32>
    %cst_28 = arith.constant 0.000000e+00 : f32
    %36 = vector.broadcast %cst_28 : f32 to vector<432x4xf32>
    %37 = arith.maximumf %35, %36 : vector<432x4xf32>
    %38 = arith.truncf %37 : vector<432x4xf32> to vector<432x4xbf16>
    %c0_29 = arith.constant 0 : index
    %c0_30 = arith.constant 0 : index
    %39 = vector.load %arg7[%c0_29, %c0_30] : memref<4x16xbf16, #tpu.memory_space<vmem>>, vector<4x16xbf16>
    %cst_31 = arith.constant dense<0.000000e+00> : vector<432x16xf32>
    %40 = tpu.matmul %38, %39, %cst_31 {dimension_numbers = #tpu.dot_dimension_numbers<[1], [0], [0], [1], [0, 0, 1, 1], [], []>} : vector<432x4xbf16>, vector<4x16xbf16>, vector<432x16xf32> -> vector<432x16xf32>
    %c0_32 = arith.constant 0 : index
    %c0_33 = arith.constant 0 : index
    %41 = vector.load %arg8[%c0_32, %c0_33] : memref<1x16xf32, #tpu.memory_space<vmem>>, vector<1x16xf32>
    %42 = vector.broadcast %41 : vector<1x16xf32> to vector<432x16xf32>
    %43 = arith.addf %40, %42 : vector<432x16xf32>
    %c0_34 = arith.constant 0 : index
    %c0_35 = arith.constant 0 : index
    %44 = vector.load %arg9[%c0_34, %c0_35] : memref<4x16xbf16, #tpu.memory_space<vmem>>, vector<4x16xbf16>
    %cst_36 = arith.constant dense<0.000000e+00> : vector<432x16xf32>
    %45 = tpu.matmul %4, %44, %cst_36 {dimension_numbers = #tpu.dot_dimension_numbers<[1], [0], [0], [1], [0, 0, 1, 1], [], []>} : vector<432x4xbf16>, vector<4x16xbf16>, vector<432x16xf32> -> vector<432x16xf32>
    %c0_37 = arith.constant 0 : index
    %c0_38 = arith.constant 0 : index
    %46 = vector.load %arg10[%c0_37, %c0_38] : memref<1x16xf32, #tpu.memory_space<vmem>>, vector<1x16xf32>
    %47 = vector.broadcast %46 : vector<1x16xf32> to vector<432x16xf32>
    %48 = arith.addf %45, %47 : vector<432x16xf32>
    %49 = arith.addf %43, %48 : vector<432x16xf32>
    %cst_39 = arith.constant 0.000000e+00 : f32
    %50 = vector.broadcast %cst_39 : f32 to vector<432x16xf32>
    %51 = arith.maximumf %49, %50 : vector<432x16xf32>
    %52 = arith.truncf %51 : vector<432x16xf32> to vector<432x16xbf16>
    %c0_40 = arith.constant 0 : index
    %c0_41 = arith.constant 0 : index
    %c0_42 = arith.constant 0 : index
    %53 = vector.load %arg11[%c0_40, %c0_41, %c0_42] : memref<1x432x16xbf16, #tpu.memory_space<vmem>>, vector<1x432x16xbf16>
    %54 = vector.shape_cast %53 : vector<1x432x16xbf16> to vector<432x16xbf16>
    %55 = vector.shape_cast %52 : vector<432x16xbf16> to vector<1x432x16xbf16>
    tpu.vector_store %arg11[%c0_40, %c0_41, %c0_42], %55 {strides = array<i32>} : memref<1x432x16xbf16, #tpu.memory_space<vmem>>, vector<1x432x16xbf16>,
    return
  }
  func.func @transform_0(%arg0: i32) -> (i32, i32, i32) {
    %c0_i32 = arith.constant 0 : i32
    %c0_i32_0 = arith.constant 0 : i32
    %c0_i32_1 = arith.constant 0 : i32
    return %arg0, %c0_i32, %c0_i32_0 : i32, i32, i32
  }
  func.func @transform_1(%arg0: i32) -> (i32, i32) {
    %c0_i32 = arith.constant 0 : i32
    %c0_i32_0 = arith.constant 0 : i32
    %c0_i32_1 = arith.constant 0 : i32
    return %c0_i32, %c0_i32_0 : i32, i32
  }
  func.func @transform_2(%arg0: i32) -> (i32, i32) {
    %c0_i32 = arith.constant 0 : i32
    %c0_i32_0 = arith.constant 0 : i32
    %c0_i32_1 = arith.constant 0 : i32
    return %c0_i32, %c0_i32_0 : i32, i32
  }
  func.func @transform_3(%arg0: i32) -> (i32, i32) {
    %c0_i32 = arith.constant 0 : i32
    %c0_i32_0 = arith.constant 0 : i32
    %c0_i32_1 = arith.constant 0 : i32
    return %c0_i32, %c0_i32_0 : i32, i32
  }
  func.func @transform_4(%arg0: i32) -> (i32, i32, i32) {
    %c0_i32 = arith.constant 0 : i32
    %c0_i32_0 = arith.constant 0 : i32
    %c0_i32_1 = arith.constant 0 : i32
    %c0_i32_2 = arith.constant 0 : i32
    return %c0_i32, %c0_i32_0, %c0_i32_1 : i32, i32, i32
  }
  func.func @transform_5(%arg0: i32) -> (i32, i32) {
    %c0_i32 = arith.constant 0 : i32
    %c0_i32_0 = arith.constant 0 : i32
    %c0_i32_1 = arith.constant 0 : i32
    return %c0_i32, %c0_i32_0 : i32, i32
  }
  func.func @transform_6(%arg0: i32) -> (i32, i32) {
    %c0_i32 = arith.constant 0 : i32
    %c0_i32_0 = arith.constant 0 : i32
    %c0_i32_1 = arith.constant 0 : i32
    return %c0_i32, %c0_i32_0 : i32, i32
  }
  func.func @transform_7(%arg0: i32) -> (i32, i32) {
    %c0_i32 = arith.constant 0 : i32
    %c0_i32_0 = arith.constant 0 : i32
    %c0_i32_1 = arith.constant 0 : i32
    return %c0_i32, %c0_i32_0 : i32, i32
  }
  func.func @transform_8(%arg0: i32) -> (i32, i32) {
    %c0_i32 = arith.constant 0 : i32
    %c0_i32_0 = arith.constant 0 : i32
    %c0_i32_1 = arith.constant 0 : i32
    return %c0_i32, %c0_i32_0 : i32, i32
  }
  func.func @transform_9(%arg0: i32) -> (i32, i32) {
    %c0_i32 = arith.constant 0 : i32
    %c0_i32_0 = arith.constant 0 : i32
    %c0_i32_1 = arith.constant 0 : i32
    return %c0_i32, %c0_i32_0 : i32, i32
  }
  func.func @transform_10(%arg0: i32) -> (i32, i32, i32) {
    %c0_i32 = arith.constant 0 : i32
    %c0_i32_0 = arith.constant 0 : i32
    %c0_i32_1 = arith.constant 0 : i32
    return %arg0, %c0_i32, %c0_i32_0 : i32, i32, i32
  }
}

</mosaic_0001>

<bundles_post_ra>
// kernel: tpu_custom_call.1
= control target key start
LH: loop header
LB: loop body
LE: loop exit
PB: predicated region body
PF: predicated region fallthrough
CT: control target
= control target key end

     0   :  { %s5749_s13 = smov 0   ;;  %s8019_s0 = inlined_call_operand.vmem [shape: bf16[2,432,4], index: 0, kind: input, shape index: {}]   ;;  %s8020_s1 = inlined_call_operand.vmem [shape: f32[432,1], index: 1, kind: input, shape index: {}]   ;;  %s8021_s2 = inlined_call_operand.vmem [shape: bf16[4,4], index: 2, kind: input, shape index: {}]   ;;  %s8022_s3 = inlined_call_operand.vmem [shape: f32[1,4], index: 3, kind: input, shape index: {}]   ;;  %s8023_s4 = inlined_call_operand.vmem [shape: bf16[3,12,4], index: 4, kind: input, shape index: {}]   ;;  %s8024_s5 = inlined_call_operand.vmem [shape: f32[1,4], index: 5, kind: input, shape index: {}]   ;;  %s8025_s6 = inlined_call_operand.vmem [shape: bf16[4,16], index: 6, kind: input, shape index: {}]   ;;  %s8026_s7 = inlined_call_operand.vmem [shape: f32[1,16], index: 7, kind: input, shape index: {}]   ;;  %s8027_s8 = inlined_call_operand.vmem [shape: bf16[4,16], index: 8, kind: input, shape index: {}]   ;;  %s8028_s9 = inlined_call_operand.vmem [shape: f32[1,16], index: 9, kind: input, shape index: {}]   ;;  %s8029_s10 = inlined_call_operand.vmem [shape: bf16[2,432,16], index: 10, kind: output, shape index: {}]  }
   0x1 LB: > { %s4897_s14 = sadd.s32 4294967295, %s5688_s13   ;;  %p4901_p0 = scmp.ge.s32.totalorder %s5688_s13, 1  ;;  %s5688_s13 = sphi %s5749_s13, %s20_s13  }
   0x2   : > { %p312_p1 = scmp.lt.s32.totalorder %s5688_s13, 3 }
   0x4   : > { %p313_p2 = pnand %p4901_p0, %p312_p1 }
   0x6   : > { %316 = sbr.rel (%p313_p2) target bundleno = 1604 (0x644), region = 60 }
   0xb   : > { %p350_p3 = scmp.lt.s32.totalorder %s4897_s14, 1  ;;  %p4904_p4 = scmp.ne.s32.totalorder %s4897_s14, 0 }
   0xd   : > { %s351_s15 = scalar_select %p350_p3, %s4897_s14, 1 }
   0xe   : > { %364 = sbr.rel (%p4904_p4) target bundleno = 80 (0x50), region = 64 }
   0xf   : > { %s5630_s16 = smul.u32 216, %s351_s15 }
  0x11   : > { %s5760_s19 = scalar_lea.vmem %s8019_s0, %s5630_s16  ;;  %s5765_s22 = scalar_lea.vmem %s8029_s10, %s5630_s16 }
  0x13   : > { %vm365_vm0 = vcmask 93184   ;;  %v5690_v0 = vmov 0  }
  0x14   : > { %366 = vst.msk [vmem:[#allocation2] sm:$0xf] %vm365_vm0, %v5690_v0 }
  0x15   : > { %367 = vst.msk [vmem:[#allocation2 + $0x4] sm:$0xf] %vm365_vm0, %v5690_v0 }
  0x16   : > { %368 = vst.msk [vmem:[#allocation2 + $0x8] sm:$0xf] %vm365_vm0, %v5690_v0 }
  0x17   : > { %369 = vst.msk [vmem:[#allocation2 + $0xc] sm:$0xf] %vm365_vm0, %v5690_v0 }
  0x18   : > { %370 = vst.msk [vmem:[#allocation2 + $0x10] sm:$0xf] %vm365_vm0, %v5690_v0 }
  0x19   : > { %371 = vst.msk [vmem:[#allocation2 + $0x14] sm:$0xf] %vm365_vm0, %v5690_v0 }
  0x1a   : > { %372 = vst.msk [vmem:[#allocation2 + $0x18] sm:$0xf] %vm365_vm0, %v5690_v0 }
  0x1b   : > { %373 = vst.msk [vmem:[#allocation2 + $0x1c] sm:$0xf] %vm365_vm0, %v5690_v0 }
  0x1c   : > { %374 = vst.msk [vmem:[#allocation2 + $0x20] sm:$0xf] %vm365_vm0, %v5690_v0 }
  0x1d   : > { %375 = vst.msk [vmem:[#allocation2 + $0x24] sm:$0xf] %vm365_vm0, %v5690_v0 }
  0x1e   : > { %376 = vst.msk [vmem:[#allocation2 + $0x28] sm:$0xf] %vm365_vm0, %v5690_v0 }
  0x1f   : > { %377 = vst.msk [vmem:[#allocation2 + $0x2c] sm:$0xf] %vm365_vm0, %v5690_v0 }
  0x20   : > { %378 = vst.msk [vmem:[#allocation2 + $0x30] sm:$0xf] %vm365_vm0, %v5690_v0 }
  0x21   : > { %379 = vst.msk [vmem:[#allocation2 + $0x34] sm:$0xf] %vm365_vm0, %v5690_v0 }
  0x22   : > { %380 = vst.msk [vmem:[#allocation2 + $0x38] sm:$0xf] %vm365_vm0, %v5690_v0 }
  0x23   : > { %381 = vst.msk [vmem:[#allocation2 + $0x3c] sm:$0xf] %vm365_vm0, %v5690_v0 }
  0x24   : > { %382 = vst.msk [vmem:[#allocation2 + $0x40] sm:$0xf] %vm365_vm0, %v5690_v0 }
  0x25   : > { %383 = vst.msk [vmem:[#allocation2 + $0x44] sm:$0xf] %vm365_vm0, %v5690_v0 }
  0x26   : > { %384 = vst.msk [vmem:[#allocation2 + $0x48] sm:$0xf] %vm365_vm0, %v5690_v0 }
  0x27   : > { %385 = vst.msk [vmem:[#allocation2 + $0x4c] sm:$0xf] %vm365_vm0, %v5690_v0 }
  0x28   : > { %386 = vst.msk [vmem:[#allocation2 + $0x50] sm:$0xf] %vm365_vm0, %v5690_v0 }
  0x29   : > { %387 = vst.msk [vmem:[#allocation2 + $0x54] sm:$0xf] %vm365_vm0, %v5690_v0 }
  0x2a   : > { %388 = vst.msk [vmem:[#allocation2 + $0x58] sm:$0xf] %vm365_vm0, %v5690_v0 }
  0x2b   : > { %389 = vst.msk [vmem:[#allocation2 + $0x5c] sm:$0xf] %vm365_vm0, %v5690_v0 }
  0x2c   : > { %390 = vst.msk [vmem:[#allocation2 + $0x60] sm:$0xf] %vm365_vm0, %v5690_v0 }
  0x2d   : > { %391 = vst.msk [vmem:[#allocation2 + $0x64] sm:$0xf] %vm365_vm0, %v5690_v0 }
  0x2e   : > { %392 = vst.msk [vmem:[#allocation2 + $0x68] sm:$0xf] %vm365_vm0, %v5690_v0 }
  0x2f   : > { %393 = vst.msk [vmem:[#allocation2 + $0x6c] sm:$0xf] %vm365_vm0, %v5690_v0 }
  0x30   : > { %394 = vst.msk [vmem:[#allocation2 + $0x70] sm:$0xf] %vm365_vm0, %v5690_v0 }
  0x31   : > { %395 = vst.msk [vmem:[#allocation2 + $0x74] sm:$0xf] %vm365_vm0, %v5690_v0 }
  0x32   : > { %396 = vst.msk [vmem:[#allocation2 + $0x78] sm:$0xf] %vm365_vm0, %v5690_v0 }
  0x33   : > { %397 = vst.msk [vmem:[#allocation2 + $0x7c] sm:$0xf] %vm365_vm0, %v5690_v0 }
  0x34   : > { %398 = vst.msk [vmem:[#allocation2 + $0x80] sm:$0xf] %vm365_vm0, %v5690_v0 }
  0x35   : > { %399 = vst.msk [vmem:[#allocation2 + $0x84] sm:$0xf] %vm365_vm0, %v5690_v0 }
  0x36   : > { %400 = vst.msk [vmem:[#allocation2 + $0x88] sm:$0xf] %vm365_vm0, %v5690_v0 }
  0x37   : > { %401 = vst.msk [vmem:[#allocation2 + $0x8c] sm:$0xf] %vm365_vm0, %v5690_v0 }
  0x38   : > { %402 = vst.msk [vmem:[#allocation2 + $0x90] sm:$0xf] %vm365_vm0, %v5690_v0 }
  0x39   : > { %403 = vst.msk [vmem:[#allocation2 + $0x94] sm:$0xf] %vm365_vm0, %v5690_v0 }
  0x3a   : > { %404 = vst.msk [vmem:[#allocation2 + $0x98] sm:$0xf] %vm365_vm0, %v5690_v0 }
  0x3b   : > { %405 = vst.msk [vmem:[#allocation2 + $0x9c] sm:$0xf] %vm365_vm0, %v5690_v0 }
  0x3c   : > { %406 = vst.msk [vmem:[#allocation2 + $0xa0] sm:$0xf] %vm365_vm0, %v5690_v0 }
  0x3d   : > { %407 = vst.msk [vmem:[#allocation2 + $0xa4] sm:$0xf] %vm365_vm0, %v5690_v0 }
  0x3e   : > { %408 = vst.msk [vmem:[#allocation2 + $0xa8] sm:$0xf] %vm365_vm0, %v5690_v0 }
  0x3f   : > { %409 = vst.msk [vmem:[#allocation2 + $0xac] sm:$0xf] %vm365_vm0, %v5690_v0 }
  0x40   : > { %410 = vst.msk [vmem:[#allocation2 + $0xb0] sm:$0xf] %vm365_vm0, %v5690_v0 }
  0x41   : > { %411 = vst.msk [vmem:[#allocation2 + $0xb4] sm:$0xf] %vm365_vm0, %v5690_v0 }
  0x42   : > { %412 = vst.msk [vmem:[#allocation2 + $0xb8] sm:$0xf] %vm365_vm0, %v5690_v0 }
  0x43   : > { %413 = vst.msk [vmem:[#allocation2 + $0xbc] sm:$0xf] %vm365_vm0, %v5690_v0 }
  0x44   : > { %414 = vst.msk [vmem:[#allocation2 + $0xc0] sm:$0xf] %vm365_vm0, %v5690_v0 }
  0x45   : > { %415 = vst.msk [vmem:[#allocation2 + $0xc4] sm:$0xf] %vm365_vm0, %v5690_v0 }
  0x46   : > { %416 = vst.msk [vmem:[#allocation2 + $0xc8] sm:$0xf] %vm365_vm0, %v5690_v0 }
  0x47   : > { %417 = vst.msk [vmem:[#allocation2 + $0xcc] sm:$0xf] %vm365_vm0, %v5690_v0 }
  0x48   : > { %418 = vst.msk [vmem:[#allocation2 + $0xd0] sm:$0xf] %vm365_vm0, %v5690_v0 }
  0x49   : > { %419 = vst.msk [vmem:[#allocation2 + $0xd4] sm:$0xf] %vm365_vm0, %v5690_v0 }
  0x4a   : > { %420 = vst.msk [vmem:[#allocation2 + $0xd8] sm:$0xf] %vm365_vm0, %v5690_v0 }
  0x4b   : > { %421 = vst.msk [vmem:[#allocation2 + $0xdc] sm:$0xf] %vm365_vm0, %v5690_v0 }
  0x4c   : > { %422 = vst.msk [vmem:[#allocation2 + $0xe0] sm:$0xf] %vm365_vm0, %v5690_v0 }
  0x4d   : > { %423 = vst.msk [vmem:[#allocation2 + $0xe4] sm:$0xf] %vm365_vm0, %v5690_v0 }
  0x4e   : > { %424 = vst.msk [vmem:[#allocation2 + $0xe8] sm:$0xf] %vm365_vm0, %v5690_v0 }
  0x4f   : > { %425 = vst.msk [vmem:[#allocation2 + $0xec] sm:$0xf] %vm365_vm0, %v5690_v0 }
  0x50 PF: > { %v534_v1 = vld [vmem:[%s8021_s2] sm:$0x3]  ;;  %vm756_vm1 = vcmask 1041408   ;;  %vm674_vm2 = vcmask 31744   ;;  %v5531_v4 = vld [vmem:[%s5760_s19 + $0x70] sm:$0xff]  ;;  %v5518_v5 = vld [vmem:[%s5760_s19 + $0x8] sm:$0xff] }
  0x51   : > { %v758_v2 = vsel %vm756_vm1, %v534_v1, 0  ;;  %v5517_v3 = vld [vmem:[%s5760_s19] sm:$0xff]  ;;  %v5532_v6 = vld [vmem:[%s5760_s19 + $0x78] sm:$0xff]  ;;  %v509_v7 = vld [vmem:[%s8020_s1 + $0xe8] sm:$0xff]  ;;  %v5691_v8 = vmov 0   ;;  %s5692_s11 = smov 4  }
  0x52   : > { %767 = vmatpush.bf16.msra.mxu0 %v758_v2  ;;  %5628 = vmatpush.bf16.msra.mxu2 %v758_v2  ;;  %v5519_v9 = vld [vmem:[%s5760_s19 + $0x10] sm:$0xff]  ;;  %v5533_v10 = vld [vmem:[%s5760_s19 + $0x80] sm:$0xff]  ;;  %v5520_v13 = vld [vmem:[%s5760_s19 + $0x18] sm:$0xff]  ;;  %vm2215_vm3 = vsmask.f32 3328  ;;  %s5693_s17 = smov 8  }
  0x53   : > { %5645 = vset.pattern.permute.xlu2 %v5691_v8  ;;  %5644 = vset.pattern.permute.xlu1 %v5691_v8  ;;  %v510_v11 = vld [vmem:[%s8020_s1 + $0xf0] sm:$0xff]  ;;  %v512_v12 = vld [vmem:[%s8020_s1 + $0x100] sm:$0xff]  ;;  %v5534_v14 = vld [vmem:[%s5760_s19 + $0x88] sm:$0xff]  ;;  %vm2216_vm4 = vsmask.f32 7440  ;;  %vm1879_vm9 = vcmask 27648  }
  0x54   : > { %1105 = vperm.xlu2 %5645, %v509_v7   ;;  %5643 = vset.pattern.permute.xlu0 %v5691_v8  ;;  %v513_v15 = vld [vmem:[%s8020_s1 + $0x108] sm:$0xff]  ;;  %v514_v16 = vld [vmem:[%s8020_s1 + $0x110] sm:$0xff]  ;;  %v5521_v17 = vld [vmem:[%s5760_s19 + $0x20] sm:$0xff]  ;;  %vm1336_vm6 = vsmask.f32 256  ;;  %vm2160_vm10 = vcmask 60448  }
  0x55   : > { %5013 = vmatmul.msk.bf16.vlgmr.msra.gmra.mxu0 %vm674_vm2, %v5517_v3  ;;  %5027 = vmatmul.msk.bf16.vlgmr.msra.gmra.mxu2 %vm674_vm2, %v5531_v4  ;;  %v5535_v18 = vld [vmem:[%s5760_s19 + $0x90] sm:$0xff]  ;;  %v515_v19 = vld [vmem:[%s8020_s1 + $0x118] sm:$0xff]  ;;  %v516_v20 = vld [vmem:[%s8020_s1 + $0x120] sm:$0xff]  ;;  %vm1337_vm7 = vsmask.f32 4368  ;;  %vm2658_vm11 = vcmask 93248  }
  0x56   : > { %v5522_v21 = vld [vmem:[%s5760_s19 + $0x28] sm:$0xff]  ;;  %v5536_v22 = vld [vmem:[%s5760_s19 + $0x98] sm:$0xff]  ;;  %v518_v24 = vld [vmem:[%s8020_s1 + $0x130] sm:$0xff]  ;;  %vm2996_vm12 = vcmask 1045504   ;;  %vm2914_vm13 = vcmask 97280   ;;  %vm2652_vm0 = vcmask 93251  }
  0x57   : > { %v517_v23 = vld [vmem:[%s8020_s1 + $0x128] sm:$0xff]  ;;  %v5523_v25 = vld [vmem:[%s5760_s19 + $0x30] sm:$0xff]  ;;  %v5537_v26 = vld [vmem:[%s5760_s19 + $0xa0] sm:$0xff]  ;;  %vm1880_vm14 = vsmask.f32 7938 }
  0x58   : > { %v507_v27 = vld [vmem:[%s8020_s1 + $0xd8] sm:$0xff]  ;;  %v508_v29 = vld [vmem:[%s8020_s1 + $0xe0] sm:$0xff]  ;;  %v5538_v31 = vld [vmem:[%s5760_s19 + $0xa8] sm:$0xff] }
  0x59   : > { %1095 = vperm.xlu1 %5644, %v507_v27   ;;  %v519_v28 = vld [vmem:[%s8020_s1 + $0x138] sm:$0xff]  ;;  %v505_v32 = vld [vmem:[%s8020_s1 + $0xc8] sm:$0xff]  ;;  %v506_v33 = vld [vmem:[%s8020_s1 + $0xd0] sm:$0xff] }
  0x5a   : > { %v5524_v30 = vld [vmem:[%s5760_s19 + $0x38] sm:$0xff]  ;;  %1085 = vperm.xlu0 %5643, %v505_v32   ;;  %v5525_v34 = vld [vmem:[%s5760_s19 + $0x40] sm:$0xff]  ;;  %v5539_v35 = vld [vmem:[%s5760_s19 + $0xb0] sm:$0xff] }
  0x5b   : > { %v520_v36 = vld [vmem:[%s8020_s1 + $0x140] sm:$0xff]  ;;  %v511_v39 = vld [vmem:[%s8020_s1 + $0xf8] sm:$0xff]  ;;  %v521_v41 = vld [vmem:[%s8020_s1 + $0x148] sm:$0xff] }
  0x5c   : > { %1110 = vperm.xlu2 %5645, %v510_v11   ;;  %v5929_v44 = vld [vmem:[%s8022_s3] ss:$0 sm:$0xff]  ;;  %v5526_v48 = vld [vmem:[%s5760_s19 + $0x48] sm:$0xff]  ;;  %v522_v49 = vld [vmem:[%s8020_s1 + $0x150] sm:$0xff] }
  0x5d   : > { %v504_v45 = vld [vmem:[%s8020_s1 + $0xc0] sm:$0xff]  ;;  %v5527_v59 = vld [vmem:[%s5760_s19 + $0x50] sm:$0xff]  ;;  %v523_v60 = vld [vmem:[%s8020_s1 + $0x158] sm:$0xff] }
  0x5e   : > { %v5540_v62 = vld [vmem:[%s5760_s19 + $0xb8] sm:$0xff]  ;;  %v524_v0 = vld [vmem:[%s8020_s1 + $0x160] sm:$0xff]  ;;  %vm6048_vm5 = vmor %vm2215_vm3, %vm2216_vm4  ;;  %vm2653_vm4 = vsmask.f32 7950 }
  0x5f   : > { %v5528_v4 = vld [vmem:[%s5760_s19 + $0x58] sm:$0xff]  ;;  %v5541_v11 = vld [vmem:[%s5760_s19 + $0xc0] sm:$0xff]  ;;  %vm6243_vm8 = vmor %vm1336_vm6, %vm1337_vm7 }
  0x60   : > { %vm1881_vm15 = vmand %vm1879_vm9, %vm1880_vm14 }
  0x61   : > { %1100 = vperm.xlu1 %5644, %v508_v29   ;;  %vm2654_vm7 = vmand %vm2652_vm0, %vm2653_vm4 }
  0x62   : > { %1090 = vperm.xlu0 %5643, %v506_v33  }
  0x64   : > { %1120 = vperm.xlu2 %5645, %v512_v12   ;;  %v5529_v12 = vld [vmem:[%s5760_s19 + $0x60] sm:$0xff] }
  0x65   : > { %5014 = vmatmul.msk.bf16.gmra.mxu0 %vm674_vm2, %v5518_v5  ;;  %5028 = vmatmul.msk.bf16.gmra.mxu2 %vm674_vm2, %v5532_v6 }
  0x69   : > { %1080 = vperm.xlu1 %5644, %v504_v45  }
  0x6a   : > { %1115 = vperm.xlu0 %5643, %v511_v39  }
  0x6c   : > { %1125 = vperm.xlu2 %5645, %v513_v15  }
  0x74   : > { %1130 = vperm.xlu2 %5645, %v514_v16  }
  0x75   : > { %5015 = vmatmul.msk.bf16.gmra.mxu0 %vm674_vm2, %v5519_v9  ;;  %5029 = vmatmul.msk.bf16.gmra.mxu2 %vm674_vm2, %v5533_v10 }
  0x7c   : > { %1135 = vperm.xlu2 %5645, %v515_v19  }
  0x84   : > { %1140 = vperm.xlu2 %5645, %v516_v20   ;;  %v5542_v20 = vld [vmem:[%s5760_s19 + $0xc8] sm:$0xff] }
  0x85   : > { %5016 = vmatmul.msk.bf16.gmra.mxu0 %vm674_vm2, %v5520_v13  ;;  %5030 = vmatmul.msk.bf16.gmra.mxu2 %vm674_vm2, %v5534_v14 }
  0x8c   : > { %1145 = vperm.xlu2 %5645, %v517_v23  }
  0x94   : > { %1150 = vperm.xlu2 %5645, %v518_v24  }
  0x95   : > { %5017 = vmatmul.msk.bf16.gmra.mxu0 %vm674_vm2, %v5521_v17  ;;  %5031 = vmatmul.msk.bf16.gmra.mxu2 %vm674_vm2, %v5535_v18 }
  0x9c   : > { %1155 = vperm.xlu2 %5645, %v519_v28  }
  0xa4   : > { %1160 = vperm.xlu2 %5645, %v520_v36  }
  0xa5   : > { %5018 = vmatmul.msk.bf16.gmra.mxu0 %vm674_vm2, %v5522_v21  ;;  %5032 = vmatmul.msk.bf16.gmra.mxu2 %vm674_vm2, %v5536_v22  ;;  %v5530_v22 = vld [vmem:[%s5760_s19 + $0x68] sm:$0xff] }
  0xac   : > { %1165 = vperm.xlu2 %5645, %v521_v41  }
  0xae   : > { %v1106_v38 = vpop.permute.xlu2 %1105 }
  0xb4   : > { %1170 = vperm.xlu2 %5645, %v522_v49  }
  0xb5   : > { %5019 = vmatmul.msk.bf16.gmra.mxu0 %vm674_vm2, %v5523_v25  ;;  %5033 = vmatmul.msk.bf16.gmra.mxu2 %vm674_vm2, %v5537_v26 }
  0xb6   : > { %v5924_v43 = vpop.permute.xlu2 %1110 }
  0xbc   : > { %1175 = vperm.xlu2 %5645, %v523_v60  }
  0xbe   : > { %v5942_v53 = vpop.permute.xlu2 %1120 }
  0xc4   : > { %1180 = vperm.xlu2 %5645, %v524_v0  }
  0xc5   : > { %5020 = vmatmul.msk.bf16.gmra.mxu0 %vm674_vm2, %v5524_v30  ;;  %5034 = vmatmul.msk.bf16.gmra.mxu2 %vm674_vm2, %v5538_v31 }
  0xc6   : > { %v5952_v58 = vpop.permute.xlu2 %1125 }
  0xcb   : > { %v6001_v26 = vpop.permute.xlu1 %1095 }
  0xcc   : > { %8059 = vst [vmem:[#allocation13_spill] sm:$0xff] %v6001_v26 }
  0xce   : > { %v5968_v2 = vpop.permute.xlu2 %1130 }
  0xd2   : > { %v5910_v37 = vpop.f32.mrf.mxu0 }
  0xd3   : > { %8049 = vst [vmem:[#allocation3_spill] sm:$0xff] %v5910_v37  ;;  %v1101_v39 = vpop.permute.xlu1 %1100 }
  0xd5   : > { %5021 = vmatmul.msk.bf16.gmra.mxu0 %vm674_vm2, %v5525_v34  ;;  %5035 = vmatmul.msk.bf16.gmra.mxu2 %vm674_vm2, %v5539_v35 }
  0xd6   : > { %v5973_v6 = vpop.permute.xlu2 %1135 }
  0xd8   : > { %v5917_v40 = vpop.f32.mrf.mxu2 }
  0xd9   : > { %v840_v27 = vadd.f32 %v5929_v44, %v5917_v40 }
  0xda   : > { %v5922_v42 = vpop.f32.mrf.mxu0 }
  0xdb   : > { %8050 = vst [vmem:[#allocation4_spill] sm:$0xff] %v5922_v42  ;;  %v932_v33 = vmax.f32 %v840_v27, 0.0 }
  0xde   : > { %v1141_v9 = vpop.permute.xlu2 %1140 }
  0xe0   : > { %v841_v46 = vpop.f32.mrf.mxu2 }
  0xe1   : > { %v842_v47 = vadd.f32 %v5929_v44, %v841_v46  ;;  %v1256_v46 = vmul.f32 %v1101_v39, %v932_v33 }
  0xe2   : > { %v5939_v50 = vpop.f32.mrf.mxu0 }
  0xe3   : > { %v933_v51 = vmax.f32 %v842_v47, 0.0 }
  0xe5   : > { %5022 = vmatmul.msk.bf16.gmra.mxu0 %vm674_vm2, %v5526_v48  ;;  %v1257_v52 = vmul.f32 %v1106_v38, %v933_v51  ;;  %5036 = vmatmul.msk.bf16.gmra.mxu2 %vm674_vm2, %v5540_v62  ;;  %v1310_v62 = vpack.c.bf16 %v1256_v46, %v1256_v46 }
  0xe6   : > { %v5986_v15 = vpop.permute.xlu2 %1145 }
  0xe7   : > { %v5944_v54 = vpack.c.bf16 %v1257_v52, %v1257_v52  ;;  %2054 = vrot.lane.b32.xlu1 %v1310_v62, %s5692_s11 }
  0xe8   : > { %v844_v55 = vpop.f32.mrf.mxu2 }
  0xe9   : > { %2056 = vrot.lane.b32.xlu0 %v5944_v54, %s5692_s11  ;;  %v845_v31 = vadd.f32 %v5929_v44, %v844_v55 }
  0xea   : > { %v5948_v56 = vpop.f32.mrf.mxu0 }
  0xeb   : > { %8051 = vst [vmem:[#allocation5_spill] sm:$0xff] %v5948_v56  ;;  %v934_v36 = vmax.f32 %v845_v31, 0.0 }
  0xed   : > { %v1258_v52 = vmul.f32 %v5924_v43, %v934_v36  ;;  %v1600_v43 = vshrl.u32 %v5944_v54, 16 }
  0xee   : > { %v1151_v24 = vpop.permute.xlu2 %1150 }
  0xf0   : > { %v5950_v57 = vpop.f32.mrf.mxu2 }
  0xf2   : > { %v5958_v61 = vpop.f32.mrf.mxu0 }
  0xf3   : > { %8052 = vst [vmem:[#allocation6_spill] sm:$0xff] %v5958_v61 }
  0xf5   : > { %5023 = vmatmul.msk.bf16.gmra.mxu0 %vm674_vm2, %v5527_v59  ;;  %5037 = vmatmul.msk.bf16.gmra.mxu2 %vm674_vm2, %v5541_v11 }
  0xf6   : > { %v1156_v32 = vpop.permute.xlu2 %1155 }
  0xf8   : > { %v849_v63 = vpop.f32.mrf.mxu2 }
  0xf9   : > { %v850_v55 = vadd.f32 %v5929_v44, %v849_v63  ;;  %v6037_v63 = vpack.c.bf16 %v1258_v52, %v1258_v52 }
  0xfa   : > { %v5966_v1 = vpop.f32.mrf.mxu0 }
  0xfb   : > { %8053 = vst [vmem:[#allocation7_spill] sm:$0xff] %v5966_v1 }
  0xfe   : > { %v6027_v60 = vpop.permute.xlu2 %1160 }
 0x100   : > { %v851_v3 = vpop.f32.mrf.mxu2 }
 0x101   : > { %v852_v59 = vadd.f32 %v5929_v44, %v851_v3  ;;  %v936_v3 = vmax.f32 %v850_v55, 0.0  ;;  %v847_v55 = vadd.f32 %v5929_v44, %v5950_v57 }
 0x102   : > { %v5971_v5 = vpop.f32.mrf.mxu0 }
 0x103   : > { %8054 = vst [vmem:[#allocation8_spill] sm:$0xff] %v5971_v5  ;;  %v1260_v36 = vmul.f32 %v5942_v53, %v936_v3 }
 0x105   : > { %5024 = vmatmul.msk.bf16.gmra.mxu0 %vm674_vm2, %v5528_v4  ;;  %5038 = vmatmul.msk.bf16.gmra.mxu2 %vm674_vm2, %v5542_v20 }
 0x108   : > { %v854_v7 = vpop.f32.mrf.mxu2 }
 0x109   : > { %v855_v11 = vadd.f32 %v5929_v44, %v854_v7 }
 0x10a   : > { %v5976_v8 = vpop.f32.mrf.mxu0 }
 0x10b   : > { %8055 = vst [vmem:[#allocation9_spill] sm:$0xff] %v5976_v8 }
 0x110   : > { %v5978_v10 = vpop.f32.mrf.mxu2 }
 0x111   : > { %v857_v7 = vadd.f32 %v5929_v44, %v5978_v10 }
 0x112   : > { %v5982_v13 = vpop.f32.mrf.mxu0 }
 0x113   : > { %8056 = vst [vmem:[#allocation10_spill] sm:$0xff] %v5982_v13 }
 0x115   : > { %5025 = vmatmul.msk.bf16.gmra.mxu0 %vm674_vm2, %v5529_v12  ;;  %v1591_v12 = vshrl.u32 %v1310_v62, 16 }
 0x118   : > { %v859_v14 = vpop.f32.mrf.mxu2 }
 0x119   : > { %v860_v16 = vadd.f32 %v5929_v44, %v859_v14  ;;  %v1594_v14 = vshll.u32 %v1310_v62, 16  ;;  %v2364_v62 = vrot.slane %v1600_v43, 4 }
 0x11a   : > { %v5989_v17 = vpop.f32.mrf.mxu0 }
 0x11b   : > { %8057 = vst [vmem:[#allocation11_spill] sm:$0xff] %v5989_v17  ;;  %v940_v18 = vmax.f32 %v860_v16, 0.0  ;;  %v6055_v33 = vrot.slane %v1594_v14, 5 }
 0x11d   : > { %v5991_v19 = vmul.f32 %v1141_v9, %v940_v18  ;;  %v6030_v9 = vpop.permute.xlu0 %1085  ;;  %v937_v18 = vmax.f32 %v852_v59, 0.0  ;;  %8067 = vst [vmem:[#allocation19_spill] sm:$0xff] %v6055_v33 }
 0x120   : > { %v5994_v21 = vpop.f32.mrf.mxu2 }
 0x121   : > { %v862_v46 = vadd.f32 %v5929_v44, %v5994_v21  ;;  %v1609_v21 = vshrl.u32 %v6037_v63, 16 }
 0x122   : > { %v5997_v23 = vpop.f32.mrf.mxu0 }
 0x123   : > { %8058 = vst [vmem:[#allocation12_spill] sm:$0xff] %v5997_v23  ;;  %v941_v3 = vmax.f32 %v862_v46, 0.0 }
 0x125   : > { %5026 = vmatmul.msk.bf16.gmra.mxu0 %vm674_vm2, %v5530_v22  ;;  %v6039_v22 = vrot.slane %v1591_v12, 7 }
 0x128   : > { %v864_v25 = vpop.f32.mrf.mxu2 }
 0x129   : > { %v865_v28 = vadd.f32 %v5929_v44, %v864_v25 }
 0x12a   : > { %v6006_v29 = vpop.f32.mrf.mxu0 }
 0x12b   : > { %8060 = vst [vmem:[#allocation14_spill] sm:$0xff] %v6006_v29  ;;  %v942_v30 = vmax.f32 %v865_v28, 0.0  ;;  %v938_v28 = vmax.f32 %v855_v11, 0.0 }
 0x12d   : > { %v1266_v34 = vmul.f32 %v1151_v24, %v942_v30  ;;  %v1603_v24 = vshll.u32 %v5944_v54, 16  ;;  %v2359_v54 = vrot.slane %v1591_v12, 4  ;;  %v1262_v53 = vmul.f32 %v5968_v2, %v938_v28 }
 0x12f   : > { %v6009_v35 = vpack.c.bf16 %v1266_v34, %v1266_v34  ;;  %v1612_v34 = vshll.u32 %v6037_v63, 16  ;;  %v2360_v39 = vor.u32 %v2359_v54, %v6055_v33  ;;  %v2362_v52 = vrot.slane %v1603_v24, 5 }
 0x130   : > { %v866_v38 = vpop.f32.mrf.mxu2  ;;  %v6089_v28 = vpack.c.bf16 %v1262_v53, %v1262_v53  ;;  %v1265_v53 = vmul.f32 %v5986_v15, %v941_v3 }
 0x131   : > { %v8035_v41 = vshrl.u32 %v6009_v35, 16  ;;  %v8034_v45 = vshll.u32 %v6009_v35, 16  ;;  %v867_v40 = vadd.f32 %v5929_v44, %v866_v38  ;;  %2074 = vrot.lane.b32.xlu2 %v6009_v35, %s5692_s11  ;;  %v1261_v38 = vmul.f32 %v5952_v58, %v937_v18  ;;  %v1166_v58 = vpop.permute.xlu2 %1165 }
 0x132   : > { %v6016_v47 = vpop.f32.mrf.mxu0  ;;  %v2361_v59 = vrot.slane %v2360_v39, 4  ;;  %8069 = vst [vmem:[#allocation21_spill] sm:$0xff] %v6089_v28  ;;  %v8076_v17 = vshrl.u32 %v6009_v35, 16  ;;  %v8079_v42 = vshll.u32 %v6009_v35, 16  ;;  %v1598_v35 = vrot.slane %v6039_v22, 4 }
 0x133   : > { %8061 = vst [vmem:[#allocation15_spill] sm:$0xff] %v6016_v47  ;;  %v6020_v48 = vrot.slane %v8034_v45, 5  ;;  %v2409_v49 = vrot.slane %v8035_v41, 4  ;;  %v943_v51 = vmax.f32 %v867_v40, 0.0  ;;  %v939_v40 = vmax.f32 %v857_v7, 0.0 }
 0x134   : > { %v6081_v11 = vpack.c.bf16 %v1261_v38, %v1261_v38  ;;  %v2363_v57 = vsel %vm6048_vm5, %v2361_v59, %v2362_v52  ;;  %v935_v7 = vmax.f32 %v847_v55, 0.0  ;;  %v6093_v38 = vrot.slane %v1609_v21, 7 }
 0x135   : > { %v1267_v0 = vmul.f32 %v1156_v32, %v943_v51  ;;  %v2410_v4 = vor.u32 %v2409_v49, %v6020_v48  ;;  %v6053_v32 = vor.u32 %v1594_v14, %v6039_v22  ;;  %v6070_v51 = vpop.permute.xlu0 %1090  ;;  %v2365_v14 = vor.u32 %v2364_v62, %v2362_v52  ;;  %2545 = vrot.lane.b32.xlu1 %v2363_v57, %s5693_s17 }
 0x136   : > { %8068 = vst [vmem:[#allocation20_spill] sm:$0xff] %v6070_v51  ;;  %v1263_v2 = vmul.f32 %v5973_v6, %v939_v40  ;;  %v482_v6 = vld [vmem:[%s8020_s1 + $0x10] sm:$0xff]  ;;  %v8031_v52 = vshrl.u32 %v6081_v11, 16  ;;  %v6194_v13 = vrot.slane %v8076_v17, 7 }
 0x137   : > { %v6035_v16 = vpack.c.bf16 %v1267_v0, %v1267_v0  ;;  %v2411_v27 = vrot.slane %v2410_v4, 4  ;;  %8066 = vst [vmem:[#allocation18_spill] sm:$0xff] %v6053_v32  ;;  %v6076_v0 = vrot.slane %v1600_v43, 7  ;;  %v6079_v4 = vpack.c.bf16 %v1260_v36, %v1260_v36 }
 0x138   : > { %v869_v20 = vpop.f32.mrf.mxu2  ;;  %v2367_v43 = vrot.slane %v1612_v34, 5  ;;  %v2366_v36 = vrot.slane %v2365_v14, 4  ;;  %v6106_v55 = vpack.c.bf16 %v1263_v2, %v1263_v2  ;;  %v6116_v14 = vor.u32 %v1612_v34, %v6093_v38 }
 0x139   : > { %8062 = vst [vmem:[#allocation16_spill] sm:$0xff] %v6035_v16  ;;  %v8033_v25 = vshll.u32 %v6035_v16, 16  ;;  %v870_v39 = vadd.f32 %v5929_v44, %v869_v20  ;;  %v6111_v62 = vor.u32 %v1603_v24, %v6076_v0  ;;  %v1630_v20 = vshll.u32 %v6079_v4, 16  ;;  %v1171_v34 = vpop.permute.xlu2 %1170 }
 0x13a   : > { %v6045_v30 = vpop.f32.mrf.mxu0  ;;  %v6120_v2 = vrot.slane %v8031_v52, 7  ;;  %v2369_v52 = vrot.slane %v1609_v21, 4  ;;  %v1686_v37 = vor.u32 %v8079_v42, %v6194_v13 }
 0x13b   : > { %8063 = vst [vmem:[#allocation17_spill] sm:$0xff] %v6045_v30  ;;  %v6059_v10 = vrot.slane %v8033_v25, 5  ;;  %v944_v15 = vmax.f32 %v870_v39, 0.0  ;;  %v1654_v39 = vshrl.u32 %v6106_v55, 16  ;;  %v2377_v8 = vrot.slane %v1630_v20, 5 }
 0x13c   : > { %v1606_v22 = vsel %vm6243_vm8, %v1598_v35, %v6111_v62 }
 0x13d   : > { %v2413_v49 = vsel %vm6048_vm5, %v2411_v27, %v6059_v10  ;;  %v8032_v27 = vshrl.u32 %v6079_v4, 16  ;;  %v1116_v59 = vpop.permute.xlu0 %1115  ;;  %2058 = vrot.lane.b32.xlu1 %v6037_v63, %s5692_s11  ;;  %v527_v63 = vld [vmem:[%s8020_s1 + $0x178] sm:$0xff]  ;;  %1914 = vst.msk [vmem:[#allocation2 + $0x80] sm:$0xf] %vm1879_vm9, %v1606_v22 }
 0x13e   : > { %2565 = vrot.lane.b32.xlu2 %v2413_v49, %s5693_s17  ;;  %v2368_v49 = vsel %vm6048_vm5, %v2366_v36, %v2367_v43  ;;  %v1259_v57 = vmul.f32 %v1116_v59, %v935_v7  ;;  %v6131_v36 = vpack.c.bf16 %v5991_v19, %v5991_v19  ;;  %v8037_v59 = vshll.u32 %v6089_v28, 16 }
 0x13f   : > { %v6101_v46 = vrot.slane %v8032_v27, 7  ;;  %2547 = vrot.lane.b32.xlu0 %v2368_v49, %s5693_s17  ;;  %v8036_v49 = vshll.u32 %v6081_v11, 16  ;;  %v8038_v19 = vshll.u32 %v6106_v55, 16 }
 0x140   : > { %v871_v12 = vpop.f32.mrf.mxu2  ;;  %8071 = vst [vmem:[#allocation23_spill] sm:$0xff] %v6131_v36  ;;  %v1663_v21 = vshrl.u32 %v6131_v36, 16 }
 0x141   : > { %v872_v18 = vadd.f32 %v5929_v44, %v871_v12  ;;  %v8030_v12 = vshrl.u32 %v6089_v28, 16  ;;  %v6150_v27 = vor.u32 %v8036_v49, %v6120_v2  ;;  %v2370_v49 = vor.u32 %v2369_v52, %v2367_v43 }
 0x142   : > { %v6091_v54 = vpop.f32.mrf.mxu0 }
 0x143   : > { %8070 = vst [vmem:[#allocation22_spill] sm:$0xff] %v6091_v54  ;;  %v945_v40 = vmax.f32 %v872_v18, 0.0  ;;  %v6123_v18 = vor.u32 %v1630_v20, %v6101_v46  ;;  %v6127_v24 = vrot.slane %v8030_v12, 7  ;;  %v2371_v54 = vrot.slane %v2370_v49, 4 }
 0x145   : > { %v1269_v3 = vmul.f32 %v1166_v58, %v945_v40  ;;  %v6137_v58 = vpack.c.bf16 %v1265_v53, %v1265_v53  ;;  %v6152_v53 = vrot.slane %v1654_v39, 7  ;;  %v6163_v45 = vor.u32 %v8037_v59, %v6127_v24 }
 0x146   : > { %970 = vperm.xlu2 %5645, %v482_v6   ;;  %v6133_v6 = vpack.c.bf16 %v1259_v57, %v1259_v57  ;;  %v6167_v57 = vrot.slane %v1654_v39, 4  ;;  %v1666_v59 = vshll.u32 %v6131_v36, 16 }
 0x147   : > { %v6158_v25 = vpack.c.bf16 %v1269_v3, %v1269_v3  ;;  %v6182_v39 = vor.u32 %v8038_v19, %v6152_v53  ;;  %v1690_v19 = vshrl.u32 %v6035_v16, 16  ;;  %v8040_v17 = vshll.u32 %v6137_v58, 16 }
 0x148   : > { %v874_v7 = vpop.f32.mrf.mxu2  ;;  %2060 = vrot.lane.b32.xlu0 %v6133_v6, %s5692_s11  ;;  %v8074_v43 = vshrl.u32 %v6133_v6, 16  ;;  %v8086_v62 = vshll.u32 %v6133_v6, 16 }
 0x149   : > { %v875_v40 = vadd.f32 %v5929_v44, %v874_v7  ;;  %v1268_v7 = vmul.f32 %v6027_v60, %v944_v15  ;;  %v1672_v60 = vshrl.u32 %v6137_v58, 16  ;;  %v8073_v15 = vshll.u32 %v6133_v6, 16 }
 0x14a   : > { %v6143_v12 = vpop.f32.mrf.mxu0  ;;  %v2374_v52 = vrot.slane %v8074_v43, 4  ;;  %v1711_v47 = vshll.u32 %v6158_v25, 16 }
 0x14b   : > { %8072 = vst [vmem:[#allocation24_spill] sm:$0xff] %v6143_v12  ;;  %v946_v41 = vmax.f32 %v875_v40, 0.0  ;;  %v2372_v3 = vrot.slane %v8073_v15, 5  ;;  %v6174_v12 = vrot.slane %v1663_v21, 7  ;;  %v6184_v40 = vrot.slane %v1672_v60, 7 }
 0x14c   : > { %v6186_v30 = vpack.c.bf16 %v1268_v7, %v1268_v7  ;;  %v1708_v15 = vshrl.u32 %v6158_v25, 16 }
 0x14d   : > { %v1270_v29 = vmul.f32 %v1171_v34, %v946_v41  ;;  %v2373_v49 = vsel %vm6048_vm5, %v2371_v54, %v2372_v3  ;;  %v2375_v43 = vor.u32 %v2374_v52, %v2372_v3  ;;  %v6200_v5 = vor.u32 %v1666_v59, %v6174_v12 }
 0x14e   : > { %1195 = vperm.xlu2 %5645, %v527_v63   ;;  %8075 = vst [vmem:[#allocation25_spill] sm:$0xff] %v6186_v30  ;;  %v1176_v63 = vpop.permute.xlu2 %1175  ;;  %2549 = vrot.lane.b32.xlu1 %v2373_v49, %s5693_s17  ;;  %v6202_v41 = vrot.slane %v1666_v59, 5  ;;  %v6204_v34 = vrot.slane %v1663_v21, 4  ;;  %v6209_v52 = vrot.slane %v1690_v19, 7  ;;  %v1699_v1 = vshrl.u32 %v6186_v30, 16 }
 0x14f   : > { %v2376_v3 = vrot.slane %v2375_v43, 4  ;;  %v6215_v49 = vrot.slane %v1711_v47, 5  ;;  %v2424_v59 = vrot.slane %v1708_v15, 4  ;;  %v6217_v61 = vpack.c.bf16 %v1270_v29, %v1270_v29 }
 0x150   : > { %v876_v23 = vpop.f32.mrf.mxu2  ;;  %v6224_v43 = vor.u32 %v8040_v17, %v6184_v40  ;;  %v1701_v33 = vrot.slane %v1699_v1, 7  ;;  %v1702_v29 = vshll.u32 %v6186_v30, 16  ;;  %v6240_v36 = vrot.slane %v1708_v15, 7 }
 0x151   : > { %v877_v7 = vadd.f32 %v5929_v44, %v876_v23  ;;  %v483_v23 = vld [vmem:[%s8020_s1 + $0x18] sm:$0xff]  ;;  %8078 = vst [vmem:[#allocation27_spill] sm:$0xff] %v6217_v61  ;;  %v2378_v21 = vsel %vm6048_vm5, %v2376_v3, %v2377_v8  ;;  %v8080_v3 = vshll.u32 %v6035_v16, 16 }
 0x152   : > { %v6206_v54 = vpop.f32.mrf.mxu0  ;;  %2551 = vrot.lane.b32.xlu0 %v2378_v21, %s5693_s17  ;;  %v2425_v21 = vor.u32 %v2424_v59, %v6215_v49  ;;  %v6263_v30 = vor.u32 %v1702_v29, %v1701_v33  ;;  %v6267_v59 = vrot.slane %v1699_v1, 4 }
 0x153   : > { %8077 = vst [vmem:[#allocation26_spill] sm:$0xff] %v6206_v54  ;;  %v947_v20 = vmax.f32 %v877_v7, 0.0  ;;  %v6226_v54 = vrot.slane %v1672_v60, 4  ;;  %v6236_v17 = vor.u32 %v8080_v3, %v6209_v52  ;;  %v6238_v60 = vrot.slane %v1690_v19, 4 }
 0x154   : > { %v1717_v19 = vshrl.u32 %v6217_v61, 16  ;;  %v2426_v56 = vrot.slane %v2425_v21, 4 }
 0x155   : > { %v1271_v7 = vmul.f32 %v1176_v63, %v947_v20  ;;  %v1720_v63 = vshll.u32 %v6217_v61, 16 }
 0x156   : > { %975 = vperm.xlu2 %5645, %v483_v23   ;;  %v8083_v23 = vshrl.u32 %v6133_v6, 16  ;;  %2062 = vrot.lane.b32.xlu1 %v6079_v4, %s5692_s11  ;;  %v1181_v61 = vpop.permute.xlu2 %1180  ;;  %v6275_v26 = vrot.slane %v1717_v19, 7  ;;  %v2400_v6 = vor.u32 %v6204_v34, %v6202_v41 }
 0x157   : > { %v6255_v15 = vpack.c.bf16 %v1271_v7, %v1271_v7  ;;  %v8085_v7 = vshrl.u32 %v6079_v4, 16  ;;  %v6280_v1 = vrot.slane %v1720_v63, 5 }
 0x158   : > { %v6251_v20 = vrot.slane %v8083_v23, 7  ;;  %v879_v3 = vpop.f32.mrf.mxu2  ;;  %v6265_v23 = vrot.slane %v1702_v29, 5  ;;  %v6300_v21 = vor.u32 %v1720_v63, %v6275_v26 }
 0x159   : > { %v880_v16 = vadd.f32 %v5929_v44, %v879_v3  ;;  %v2379_v32 = vrot.slane %v8085_v7, 4  ;;  %v1713_v3 = vor.u32 %v1711_v47, %v6240_v36  ;;  %v1726_v4 = vshrl.u32 %v6255_v15, 16 }
 0x15a   : > { %v6269_v28 = vpop.f32.mrf.mxu0  ;;  %v1623_v35 = vor.u32 %v8086_v62, %v6251_v20  ;;  %2064 = vrot.lane.b32.xlu0 %v6081_v11, %s5692_s11  ;;  %v8087_v47 = vshll.u32 %v6081_v11, 16  ;;  %v2429_v62 = vrot.slane %v1717_v19, 4 }
 0x15b   : > { %8084 = vst [vmem:[#allocation28_spill] sm:$0xff] %v6269_v28  ;;  %v948_v29 = vmax.f32 %v880_v16, 0.0  ;;  %v2380_v51 = vor.u32 %v2379_v32, %v2377_v8  ;;  %v1607_v28 = vrot.slane %v6076_v0, 4  ;;  %v1679_v8 = vrot.slane %v6184_v40, 4 }
 0x15c   : > { %v6288_v22 = vrot.slane %v8087_v47, 5  ;;  %v1706_v32 = vrot.slane %v1701_v33, 4  ;;  %v8088_v0 = vshll.u32 %v6106_v55, 16  ;;  %v2428_v40 = vsel %vm6048_vm5, %v2426_v56, %v6280_v1 }
 0x15d   : > { %v1272_v7 = vmul.f32 %v1181_v61, %v948_v29  ;;  %v2381_v16 = vrot.slane %v2380_v51, 4  ;;  %v1728_v29 = vrot.slane %v1726_v4, 7  ;;  %v6311_v51 = vrot.slane %v2400_v6, 4 }
 0x15e   : > { %2080 = vrot.lane.b32.xlu2 %v6158_v25, %s5692_s11  ;;  %v6297_v61 = vrot.slane %v8088_v0, 5  ;;  %v1687_v25 = vsel %vm6243_vm8, %v1679_v8, %v1686_v37  ;;  %v1714_v33 = vsel %vm6243_vm8, %v1706_v32, %v1713_v3  ;;  %v1615_v56 = vsel %vm6243_vm8, %v1607_v28, %v6116_v14 }
 0x15f   : > { %v6302_v47 = vpack.c.bf16 %v1272_v7, %v1272_v7  ;;  %v2383_v34 = vsel %vm6048_vm5, %v2381_v16, %v6288_v22  ;;  %1923 = vst.msk [vmem:[#allocation2 + $0xa4] sm:$0xf] %vm1879_vm9, %v1687_v25  ;;  %v8089_v7 = vshll.u32 %v6137_v58, 16  ;;  %v1616_v6 = vrot.slane %v6093_v38, 4 }
 0x160   : > { %2553 = vrot.lane.b32.xlu1 %v2383_v34, %s5693_s17  ;;  %1926 = vst.msk [vmem:[#allocation2 + $0xb0] sm:$0xf] %vm1879_vm9, %v1714_v33  ;;  %v2395_v3 = vor.u32 %v6167_v57, %v6297_v61  ;;  %v1625_v8 = vrot.slane %v6251_v20, 4  ;;  %v1729_v32 = vshll.u32 %v6255_v15, 16  ;;  %v2434_v0 = vrot.slane %v1726_v4, 4 }
 0x161   : > { %v1735_v63 = vshrl.u32 %v6302_v47, 16  ;;  %v1738_v19 = vshll.u32 %v6302_v47, 16  ;;  %v6322_v37 = vrot.slane %v8089_v7, 5  ;;  %v1733_v25 = vrot.slane %v1728_v29, 4  ;;  %1915 = vst.msk [vmem:[#allocation2 + $0x84] sm:$0xf] %vm1879_vm9, %v1615_v56 }
 0x162   : > { %v6324_v16 = vpop.f32.mrf.mxu0  ;;  %v6342_v33 = vrot.slane %v2395_v3, 4  ;;  %v1624_v28 = vsel %vm6243_vm8, %v1616_v6, %v1623_v35  ;;  %v1633_v4 = vsel %vm6243_vm8, %v1625_v8, %v6123_v18  ;;  %v1634_v7 = vrot.slane %v6101_v46, 4 }
 0x163   : > { %v6335_v34 = vrot.slane %v1735_v63, 7  ;;  %v2403_v57 = vsel %vm6048_vm5, %v6311_v51, %v6322_v37  ;;  %v2405_v38 = vor.u32 %v6226_v54, %v6322_v37  ;;  %v6349_v20 = vrot.slane %v1735_v63, 4  ;;  %1916 = vst.msk [vmem:[#allocation2 + $0x88] sm:$0xf] %vm1879_vm9, %v1624_v28  ;;  %v525_v51 = vld [vmem:[%s8020_s1 + $0x168] sm:$0xff] }
 0x164   : > { %1917 = vst.msk [vmem:[#allocation2 + $0x8c] sm:$0xf] %vm1879_vm9, %v1633_v4  ;;  %v2420_v63 = vor.u32 %v6267_v59, %v6265_v23  ;;  %v2415_v3 = vor.u32 %v6238_v60, %v6059_v10  ;;  %v1642_v18 = vsel %vm6243_vm8, %v1634_v7, %v6150_v27  ;;  %v6374_v56 = vrot.slane %v1729_v32, 5 }
 0x165   : > { %v1740_v14 = vor.u32 %v1738_v19, %v6335_v34  ;;  %v6361_v54 = vrot.slane %v2405_v38, 4  ;;  %v6385_v60 = vrot.slane %v1738_v19, 5  ;;  %1918 = vst.msk [vmem:[#allocation2 + $0x90] sm:$0xf] %vm1879_vm9, %v1642_v18  ;;  %v1652_v8 = vrot.slane %v6127_v24, 4 }
 0x166   : > { %2571 = vrot.lane.b32.xlu2 %v2428_v40, %s5693_s17  ;;  %v2430_v40 = vor.u32 %v2429_v62, %v6280_v1  ;;  %v6381_v6 = vrot.slane %v2420_v63, 4  ;;  %v6383_v10 = vrot.slane %v2415_v3, 4  ;;  %v2435_v1 = vor.u32 %v2434_v0, %v6374_v56 }
 0x167   : > { %v1741_v46 = vsel %vm6243_vm8, %v1733_v25, %v1740_v14  ;;  %v1643_v62 = vrot.slane %v6120_v2, 4  ;;  %v1661_v38 = vrot.slane %v6152_v53, 4  ;;  %v1670_v0 = vrot.slane %v6174_v12, 4  ;;  %v530_v2 = vld [vmem:[%s8020_s1 + $0x190] sm:$0xff] }
 0x168   : > { %1929 = vst.msk [vmem:[#allocation2 + $0xbc] sm:$0xf] %vm1879_vm9, %v1741_v46  ;;  %v6388_v27 = vrot.slane %v2430_v40, 4  ;;  %v1731_v14 = vor.u32 %v1729_v32, %v1728_v29  ;;  %v6412_v4 = vrot.slane %v2435_v1, 4  ;;  %v1660_v12 = vsel %vm6243_vm8, %v1652_v8, %v6182_v39  ;;  %v2057_v32 = vpop.permute.xlu0 %2056 }
 0x169   : > { %v1651_v7 = vsel %vm6243_vm8, %v1643_v62, %v6163_v45  ;;  %v1669_v53 = vsel %vm6243_vm8, %v1661_v38, %v6200_v5  ;;  %v1678_v29 = vsel %vm6243_vm8, %v1670_v0, %v6224_v43  ;;  %1920 = vst.msk [vmem:[#allocation2 + $0x98] sm:$0xf] %vm1879_vm9, %v1660_v12  ;;  %v1697_v39 = vrot.slane %v6209_v52, 4  ;;  %v1081_v62 = vpop.permute.xlu1 %1080  ;;  %v8092_v45 = vld [vmem:[#allocation13_spill] sm:$0xff] }
 0x16a   : > { %v6393_v25 = vpop.f32.mrf.mxu0  ;;  %1919 = vst.msk [vmem:[#allocation2 + $0x94] sm:$0xf] %vm1879_vm9, %v1651_v7  ;;  %v1688_v5 = vrot.slane %v6194_v13, 4  ;;  %v1715_v63 = vrot.slane %v6240_v36, 4  ;;  %v1724_v43 = vrot.slane %v6275_v26, 4  ;;  %v8101_v37 = vsel %vm6048_vm5, %v6361_v54, %v6020_v48 }
 0x16b   : > { %1921 = vst.msk [vmem:[#allocation2 + $0x9c] sm:$0xf] %vm1879_vm9, %v1669_v53  ;;  %v1705_v3 = vsel %vm6243_vm8, %v1697_v39, %v6263_v30  ;;  %v775_v53 = vadd.f32 %v5929_v44, %v5939_v50  ;;  %v8104_v48 = vsel %vm6048_vm5, %v6381_v6, %v6215_v49  ;;  %v8105_v54 = vsel %vm6048_vm5, %v6383_v10, %v6265_v23  ;;  %v5150_v49 = vld [vmem:[%s8023_s4] sm:$0xf]  ;;  %v5571_v6 = vld [vmem:[%s8023_s4] sm:$0x30] }
 0x16c   : > { %1922 = vst.msk [vmem:[#allocation2 + $0xa0] sm:$0xf] %vm1879_vm9, %v1678_v29  ;;  %v1696_v52 = vsel %vm6243_vm8, %v1688_v5, %v6236_v17  ;;  %v1723_v13 = vsel %vm6243_vm8, %v1715_v63, %v6300_v21  ;;  %v1732_v36 = vsel %vm6243_vm8, %v1724_v43, %v1731_v14  ;;  %v529_v23 = vld [vmem:[%s8020_s1 + $0x188] sm:$0xff]  ;;  %v5151_v10 = vor.u32 %v5571_v6, %v5150_v49 }
 0x16d   : > { %1925 = vst.msk [vmem:[#allocation2 + $0xac] sm:$0xf] %vm1879_vm9, %v1705_v3  ;;  %v906_v3 = vmax.f32 %v775_v53, 0.0 }
 0x16e   : > { %1210 = vperm.xlu2 %5645, %v530_v2   ;;  %1924 = vst.msk [vmem:[#allocation2 + $0xa8] sm:$0xf] %vm1879_vm9, %v1696_v52 }
 0x16f   : > { %1927 = vst.msk [vmem:[#allocation2 + $0xb4] sm:$0xf] %vm1879_vm9, %v1723_v13 }
 0x170   : > { %1928 = vst.msk [vmem:[#allocation2 + $0xb8] sm:$0xf] %vm1879_vm9, %v1732_v36 }
 0x171   : > { %2190 = vst.msk [vmem:[#allocation2 + $0x80] sm:$0xf] %vm2160_vm10, %v2057_v32 }
 0x172   : > { %v6453_v26 = vpop.f32.mrf.mxu0 }
 0x176   : > { %2086 = vrot.lane.b32.xlu2 %v6302_v47, %s5692_s11 }
 0x17a   : > { %v6459_v30 = vpop.f32.mrf.mxu0 }
 0x182   : > { %v6461_v17 = vpop.f32.mrf.mxu0 }
 0x18a   : > { %v6463_v21 = vpop.f32.mrf.mxu0 }
 0x18b   : > { %v2075_v46 = vpop.permute.xlu2 %2074 }
 0x18c   : > { %2199 = vst.msk [vmem:[#allocation2 + $0xa4] sm:$0xf] %vm2160_vm10, %v2075_v46 }
 0x192   : > { %v829_v18 = vpop.f32.mrf.mxu0 }
 0x193   : > { %v830_v40 = vadd.f32 %v5929_v44, %v829_v18 }
 0x195   : > { %v928_v1 = vmax.f32 %v830_v40, 0.0 }
 0x197   : > { %v1252_v8 = vmul.f32 %v1081_v62, %v928_v1 }
 0x198   : > { %v2566_v38 = vpop.permute.xlu2 %2565 }
 0x199   : > { %v6467_v0 = vpack.c.bf16 %v1252_v8, %v1252_v8  ;;  %2697 = vst.msk [vmem:[#allocation2 + $0xa4] sm:$0xf] %vm2658_vm11, %v2566_v38  ;;  %v8090_v38 = vld [vmem:[#allocation20_spill] sm:$0xff] }
 0x19a   : > { %v831_v47 = vpop.f32.mrf.mxu0 }
 0x19b   : > { %v832_v14 = vadd.f32 %v5929_v44, %v831_v47  ;;  %v1555_v2 = vshrl.u32 %v6467_v0, 16  ;;  %v8047_v7 = vshll.u32 %v6467_v0, 16 }
 0x19d   : > { %v929_v12 = vmax.f32 %v832_v14, 0.0  ;;  %v6478_v39 = vrot.slane %v8047_v7, 5  ;;  %v2339_v5 = vrot.slane %v1555_v2, 4  ;;  %v6482_v18 = vrot.slane %v1555_v2, 7 }
 0x19f   : > { %v1253_v29 = vmul.f32 %v6030_v9, %v929_v12  ;;  %v2340_v9 = vor.u32 %v2339_v5, %v6478_v39  ;;  %v1562_v53 = vrot.slane %v6482_v18, 4 }
 0x1a0   : > { %v971_v63 = vpop.permute.xlu2 %970 }
 0x1a1   : > { %v1307_v43 = vpack.c.bf16 %v1253_v29, %v1253_v29  ;;  %v1230_v50 = vmul.f32 %v971_v63, %v906_v3 }
 0x1a2   : > { %v834_v52 = vpop.f32.mrf.mxu0 }
 0x1a3   : > { %v835_v13 = vadd.f32 %v5929_v44, %v834_v52  ;;  %2048 = vrot.lane.b32.xlu0 %v1307_v43, %s5692_s11  ;;  %v1564_v36 = vshrl.u32 %v1307_v43, 16  ;;  %v1567_v46 = vshll.u32 %v1307_v43, 16  ;;  %v6488_v14 = vpack.c.bf16 %v1230_v50, %v1230_v50 }
 0x1a4   : > { %v6493_v43 = vrot.slane %v2340_v9, 4  ;;  %v2055_v9 = vpop.permute.xlu1 %2054 }
 0x1a5   : > { %v930_v40 = vmax.f32 %v835_v13, 0.0  ;;  %v1566_v1 = vrot.slane %v1564_v36, 7  ;;  %v6485_v62 = vrot.slane %v1567_v46, 5  ;;  %v2344_v8 = vrot.slane %v1564_v36, 4  ;;  %v8091_v13 = vld [vmem:[#allocation5_spill] sm:$0xff] }
 0x1a6   : > { %v777_v36 = vadd.f32 %v5929_v44, %v8091_v13 }
 0x1a7   : > { %v1254_v47 = vmul.f32 %v8090_v38, %v930_v40  ;;  %v1569_v29 = vor.u32 %v1567_v46, %v1566_v1  ;;  %v2345_v5 = vor.u32 %v2344_v8, %v6485_v62  ;;  %v1357_v8 = vshrl.u32 %v6488_v14, 16 }
 0x1a8   : > { %v6490_v12 = vpop.permute.xlu2 %1195  ;;  %v8048_v38 = vshll.u32 %v6488_v14, 16  ;;  %v907_v13 = vmax.f32 %v777_v36, 0.0 }
 0x1a9   : > { %v1308_v2 = vpack.c.bf16 %v1254_v47, %v1254_v47  ;;  %v1570_v3 = vsel %vm6243_vm8, %v1562_v53, %v1569_v29  ;;  %v2346_v29 = vrot.slane %v2345_v5, 4 }
 0x1aa   : > { %v836_v63 = vpop.f32.mrf.mxu0  ;;  %1910 = vst.msk [vmem:[#allocation2 + $0x70] sm:$0xf] %vm1879_vm9, %v1570_v3  ;;  %v2229_v3 = vrot.slane %v1357_v8, 4 }
 0x1ab   : > { %v1573_v50 = vshrl.u32 %v1308_v2, 16  ;;  %v1576_v40 = vshll.u32 %v1308_v2, 16  ;;  %v837_v46 = vadd.f32 %v5929_v44, %v836_v63  ;;  %2050 = vrot.lane.b32.xlu1 %v1308_v2, %s5692_s11  ;;  %v1571_v44 = vrot.slane %v1566_v1, 4 }
 0x1ac   : > { %v6513_v63 = vrot.slane %v8048_v38, 5  ;;  %v8093_v38 = vshrl.u32 %v6081_v11, 16 }
 0x1ad   : > { %v1575_v47 = vrot.slane %v1573_v50, 7  ;;  %v931_v53 = vmax.f32 %v837_v46, 0.0  ;;  %v2347_v52 = vrot.slane %v1576_v40, 5  ;;  %v2349_v7 = vrot.slane %v1573_v50, 4 }
 0x1ae   : > { %v2384_v59 = vrot.slane %v8093_v38, 4 }
 0x1af   : > { %v1255_v24 = vmul.f32 %v8092_v45, %v931_v53  ;;  %v1578_v2 = vor.u32 %v1576_v40, %v1575_v47  ;;  %v2348_v46 = vsel %vm6048_vm5, %v2346_v29, %v2347_v52  ;;  %v2350_v5 = vor.u32 %v2349_v7, %v2347_v52  ;;  %v2546_v40 = vpop.permute.xlu1 %2545 }
 0x1b0   : > { %v976_v19 = vpop.permute.xlu2 %975  ;;  %2539 = vrot.lane.b32.xlu0 %v2348_v46, %s5693_s17  ;;  %v2230_v7 = vor.u32 %v2229_v3, %v6513_v63  ;;  %v2385_v3 = vor.u32 %v2384_v59, %v6288_v22 }
 0x1b1   : > { %v1309_v28 = vpack.c.bf16 %v1255_v24, %v1255_v24  ;;  %v1231_v50 = vmul.f32 %v976_v19, %v907_v13  ;;  %v1579_v45 = vsel %vm6243_vm8, %v1571_v44, %v1578_v2  ;;  %v2351_v53 = vrot.slane %v2350_v5, 4  ;;  %v2548_v11 = vpop.permute.xlu0 %2547 }
 0x1b2   : > { %1911 = vst.msk [vmem:[#allocation2 + $0x74] sm:$0xf] %vm1879_vm9, %v1579_v45  ;;  %v6528_v13 = vrot.slane %v1357_v8, 7  ;;  %v6539_v45 = vrot.slane %v2230_v7, 4  ;;  %v8095_v7 = vld [vmem:[#allocation21_spill] sm:$0xff] }
 0x1b3   : > { %v1582_v32 = vshrl.u32 %v1309_v28, 16  ;;  %v6521_v1 = vpack.c.bf16 %v1231_v50, %v1231_v50  ;;  %v1585_v36 = vshll.u32 %v1309_v28, 16  ;;  %2688 = vst.msk [vmem:[#allocation2 + $0x80] sm:$0xf] %vm2658_vm11, %v2548_v11 }
 0x1b5   : > { %v1584_v24 = vrot.slane %v1582_v32, 7  ;;  %v1366_v19 = vshrl.u32 %v6521_v1, 16  ;;  %v1369_v52 = vshll.u32 %v6521_v1, 16  ;;  %v2352_v29 = vrot.slane %v1585_v36, 5 }
 0x1b7   : > { %v6530_v44 = vrot.slane %v1366_v19, 7  ;;  %v6532_v2 = vrot.slane %v1366_v19, 4  ;;  %v2353_v46 = vsel %vm6048_vm5, %v2351_v53, %v2352_v29  ;;  %v1589_v5 = vrot.slane %v1584_v24, 4  ;;  %v8094_v53 = vld [vmem:[#allocation18_spill] sm:$0xff] }
 0x1b8   : > { %v2081_v38 = vpop.permute.xlu2 %2080  ;;  %2541 = vrot.lane.b32.xlu1 %v2353_v46, %s5693_s17  ;;  %v1587_v50 = vor.u32 %v1585_v36, %v1584_v24  ;;  %v6541_v8 = vrot.slane %v1369_v52, 5  ;;  %2052 = vrot.lane.b32.xlu0 %v1309_v28, %s5692_s11  ;;  %v1580_v46 = vrot.slane %v1575_v47, 4  ;;  %v1364_v36 = vrot.slane %v6528_v13, 4  ;;  %v2059_v47 = vpop.permute.xlu1 %2058 }
 0x1b9   : > { %v1371_v19 = vor.u32 %v1369_v52, %v6530_v44  ;;  %2202 = vst.msk [vmem:[#allocation2 + $0xb0] sm:$0xf] %vm2160_vm10, %v2081_v38  ;;  %v1597_v35 = vsel %vm6243_vm8, %v1589_v5, %v8094_v53  ;;  %v8096_v24 = vshll.u32 %v8095_v7, 16  ;;  %v8097_v52 = vshrl.u32 %v8095_v7, 16 }
 0x1ba   : > { %1913 = vst.msk [vmem:[#allocation2 + $0x7c] sm:$0xf] %vm1879_vm9, %v1597_v35  ;;  %v2233_v22 = vsel %vm6048_vm5, %v6539_v45, %v6541_v8  ;;  %v2235_v59 = vor.u32 %v6532_v2, %v6541_v8  ;;  %v1588_v35 = vsel %vm6243_vm8, %v1580_v46, %v1587_v50  ;;  %v2386_v5 = vrot.slane %v2385_v3, 4 }
 0x1bb   : > { %v2387_v28 = vrot.slane %v8096_v24, 5  ;;  %v2389_v11 = vrot.slane %v8097_v52, 4  ;;  %2189 = vst.msk [vmem:[#allocation2 + $0x7c] sm:$0xf] %vm2160_vm10, %v2055_v9  ;;  %v1372_v38 = vsel %vm6243_vm8, %v1364_v36, %v1371_v19  ;;  %v2061_v24 = vpop.permute.xlu0 %2060  ;;  %v2354_v50 = vrot.slane %v1582_v32, 4 }
 0x1bc   : > { %2687 = vst.msk [vmem:[#allocation2 + $0x7c] sm:$0xf] %vm2658_vm11, %v2546_v40  ;;  %v1373_v8 = vrot.slane %v6530_v44, 4 }
 0x1bd   : > { %2191 = vst.msk [vmem:[#allocation2 + $0x84] sm:$0xf] %vm2160_vm10, %v2059_v47  ;;  %v2390_v53 = vor.u32 %v2389_v11, %v2387_v28  ;;  %v2388_v9 = vsel %vm6048_vm5, %v2386_v5, %v2387_v28  ;;  %v8098_v47 = vld [vmem:[#allocation23_spill] sm:$0xff] }
 0x1be   : > { %1912 = vst.msk [vmem:[#allocation2 + $0x78] sm:$0xf] %vm1879_vm9, %v1588_v35 }
 0x1bf   : > { %1888 = vst.msk [vmem:[#allocation2 + $0x18] sm:$0xf] %vm1879_vm9, %v1372_v38  ;;  %v2391_v40 = vrot.slane %v2390_v53, 4  ;;  %v480_v38 = vld [vmem:[%s8020_s1] sm:$0xff] }
 0x1c0   : > { %v2572_v52 = vpop.permute.xlu2 %2571  ;;  %2066 = vrot.lane.b32.xlu1 %v8095_v7, %s5692_s11  ;;  %2192 = vst.msk [vmem:[#allocation2 + $0x88] sm:$0xf] %vm2160_vm10, %v2061_v24  ;;  %2555 = vrot.lane.b32.xlu0 %v2388_v9, %s5693_s17  ;;  %v2550_v3 = vpop.permute.xlu1 %2549  ;;  %v2355_v7 = vor.u32 %v2354_v50, %v2352_v29  ;;  %v8100_v29 = vsel %vm6048_vm5, %v6342_v33, %v6202_v41  ;;  %v526_v41 = vld [vmem:[%s8020_s1 + $0x170] sm:$0xff]  ;;  %v8103_v33 = vld [vmem:[#allocation16_spill] sm:$0xff]  ;;  %v484_v53 = vld [vmem:[%s8020_s1 + $0x20] sm:$0xff] }
 0x1c1   : > { %2700 = vst.msk [vmem:[#allocation2 + $0xb0] sm:$0xf] %vm2658_vm11, %v2572_v52  ;;  %v2393_v19 = vsel %vm6048_vm5, %v2391_v40, %v6297_v61  ;;  %v8099_v61 = vld [vmem:[#allocation19_spill] sm:$0xff]  ;;  %v528_v24 = vld [vmem:[%s8020_s1 + $0x180] sm:$0xff]  ;;  %v2998_v52 = vsel %vm2996_vm12, %v5151_v10, 0  ;;  %v8107_v50 = vsel %vm6048_vm5, %v6388_v27, %v6374_v56  ;;  %v8108_v56 = vsel %vm6048_vm5, %v6412_v4, %v6385_v60 }
 0x1c2   : > { %2689 = vst.msk [vmem:[#allocation2 + $0x84] sm:$0xf] %vm2658_vm11, %v2550_v3  ;;  %v2356_v11 = vrot.slane %v2355_v7, 4  ;;  %5629 = vmatpush.bf16.msra.mxu3 %v2998_v52  ;;  %v8106_v9 = vld [vmem:[#allocation27_spill] sm:$0xff]  ;;  %3007 = vmatpush.bf16.msra.mxu1 %v2998_v52  ;;  %v485_v3 = vld [vmem:[%s8020_s1 + $0x28] sm:$0xff] }
 0x1c4   : > { %v2552_v46 = vpop.permute.xlu0 %2551  ;;  %v2358_v35 = vsel %vm6048_vm5, %v2356_v11, %v8099_v61  ;;  %v881_v61 = vpop.f32.mrf.mxu2 }
 0x1c5   : > { %2690 = vst.msk [vmem:[#allocation2 + $0x88] sm:$0xf] %vm2658_vm11, %v2552_v46  ;;  %v486_v46 = vld [vmem:[%s8020_s1 + $0x30] sm:$0xff] }
 0x1c8   : > { %v6581_v36 = vpop.permute.xlu2 %1210  ;;  %2557 = vrot.lane.b32.xlu1 %v2393_v19, %s5693_s17  ;;  %2068 = vrot.lane.b32.xlu0 %v6106_v55, %s5692_s11  ;;  %v2063_v28 = vpop.permute.xlu1 %2062 }
 0x1c9   : > { %2193 = vst.msk [vmem:[#allocation2 + $0x8c] sm:$0xf] %vm2160_vm10, %v2063_v28  ;;  %v531_v28 = vld [vmem:[%s8020_s1 + $0x198] sm:$0xff] }
 0x1cc   : > { %v2065_v32 = vpop.permute.xlu0 %2064 }
 0x1cd   : > { %2194 = vst.msk [vmem:[#allocation2 + $0x90] sm:$0xf] %vm2160_vm10, %v2065_v32 }
 0x1d0   : > { %2070 = vrot.lane.b32.xlu1 %v8098_v47, %s5692_s11  ;;  %v2087_v5 = vpop.permute.xlu2 %2086  ;;  %2543 = vrot.lane.b32.xlu0 %v2358_v35, %s5693_s17 }
 0x1d1   : > { %2205 = vst.msk [vmem:[#allocation2 + $0xbc] sm:$0xf] %vm2160_vm10, %v2087_v5 }
 0x1d2   : > { %v2554_v55 = vpop.permute.xlu1 %2553 }
 0x1d3   : > { %2691 = vst.msk [vmem:[#allocation2 + $0x8c] sm:$0xf] %vm2658_vm11, %v2554_v55 }
 0x1d8   : > { %2561 = vrot.lane.b32.xlu1 %v2403_v57, %s5693_s17  ;;  %2559 = vrot.lane.b32.xlu0 %v8100_v29, %s5693_s17  ;;  %v8102_v57 = vld [vmem:[#allocation25_spill] sm:$0xff]  ;;  %v884_v29 = vpop.f32.mrf.mxu2 }
 0x1e0   : > { %2072 = vrot.lane.b32.xlu1 %v6137_v58, %s5692_s11  ;;  %960 = vperm.xlu0 %5643, %v480_v38   ;;  %v481_v58 = vld [vmem:[%s8020_s1 + $0x8] sm:$0xff] }
 0x1e8   : > { %2563 = vrot.lane.b32.xlu1 %v8101_v37, %s5693_s17  ;;  %1185 = vperm.xlu0 %5643, %v525_v51  }
 0x1f0   : > { %1190 = vperm.xlu1 %5644, %v526_v41   ;;  %965 = vperm.xlu0 %5643, %v481_v58   ;;  %v6704_v41 = vld [vmem:[%s8022_s3] ss:$0 sm:$0xff]  ;;  %v8109_v58 = vld [vmem:[#allocation3_spill] sm:$0xff] }
 0x1f8   : > { %2078 = vrot.lane.b32.xlu1 %v8102_v57, %s5692_s11  ;;  %2076 = vrot.lane.b32.xlu0 %v8103_v33, %s5692_s11  ;;  %v770_v57 = vadd.f32 %v6704_v41, %v8109_v58  ;;  %v886_v33 = vpop.f32.mrf.mxu2  ;;  %v8111_v58 = vor.u32 %v6349_v20, %v6385_v60 }
 0x200   : > { %2569 = vrot.lane.b32.xlu1 %v8104_v48, %s5693_s17  ;;  %2567 = vrot.lane.b32.xlu0 %v8105_v54, %s5693_s17  ;;  %v887_v48 = vadd.f32 %v6704_v41, %v886_v33  ;;  %v904_v54 = vmax.f32 %v770_v57, 0.0  ;;  %v2441_v57 = vrot.slane %v8111_v58, 4 }
 0x202   : > { %v951_v6 = vmax.f32 %v887_v48, 0.0 }
 0x208   : > { %980 = vperm.xlu1 %5644, %v484_v53   ;;  %1200 = vperm.xlu0 %5643, %v528_v24  }
 0x210   : > { %1205 = vperm.xlu1 %5644, %v529_v23   ;;  %2082 = vrot.lane.b32.xlu0 %v8106_v9, %s5692_s11  ;;  %v882_v23 = vadd.f32 %v6704_v41, %v881_v61  ;;  %v6724_v61 = vpop.f32.mrf.mxu2 }
 0x215   : > { %v2049_v40 = vpop.permute.xlu0 %2048 }
 0x216   : > { %2186 = vst.msk [vmem:[#allocation2 + $0x70] sm:$0xf] %vm2160_vm10, %v2049_v40  ;;  %v1275_v40 = vmul.f32 %v6490_v12, %v951_v6  ;;  %v8110_v12 = vld [vmem:[#allocation4_spill] sm:$0xff] }
 0x218   : > { %985 = vperm.xlu1 %5644, %v485_v3   ;;  %2573 = vrot.lane.b32.xlu0 %v8107_v50, %s5693_s17  ;;  %v949_v3 = vmax.f32 %v882_v23, 0.0 }
 0x21d   : > { %v2051_v19 = vpop.permute.xlu1 %2050 }
 0x21e   : > { %2187 = vst.msk [vmem:[#allocation2 + $0x74] sm:$0xf] %vm2160_vm10, %v2051_v19 }
 0x220   : > { %2084 = vrot.lane.b32.xlu1 %v6255_v15, %s5692_s11  ;;  %990 = vperm.xlu0 %5643, %v486_v46  }
 0x222   : > { %v2540_v7 = vpop.permute.xlu0 %2539 }
 0x223   : > { %2684 = vst.msk [vmem:[#allocation2 + $0x70] sm:$0xf] %vm2658_vm11, %v2540_v7  ;;  %v885_v7 = vadd.f32 %v6704_v41, %v884_v29 }
 0x228   : > { %2575 = vrot.lane.b32.xlu1 %v8108_v56, %s5693_s17  ;;  %1215 = vperm.xlu0 %5643, %v531_v28   ;;  %v5560_v56 = vld [vmem:[#allocation2 + $0x80] sm:$0xff] }
 0x22a   : > { %v2542_v27 = vpop.permute.xlu1 %2541  ;;  %v2053_v15 = vpop.permute.xlu0 %2052 }
 0x22b   : > { %2685 = vst.msk [vmem:[#allocation2 + $0x74] sm:$0xf] %vm2658_vm11, %v2542_v27  ;;  %v1882_v27 = vld [vmem:[#allocation2 + $0xc] sm:$0xf] }
 0x22c   : > { %2188 = vst.msk [vmem:[#allocation2 + $0x78] sm:$0xf] %vm2160_vm10, %v2053_v15 }
 0x232   : > { %v2067_v11 = vpop.permute.xlu1 %2066  ;;  %v5558_v32 = vld [vmem:[#allocation2 + $0x70] sm:$0xff]  ;;  %v2556_v47 = vpop.permute.xlu0 %2555 }
 0x233   : > { %2195 = vst.msk [vmem:[#allocation2 + $0x94] sm:$0xf] %vm2160_vm10, %v2067_v11  ;;  %5166 = vmatmul.msk.bf16.vlgmr.msra.gmra.mxu3 %vm2914_vm13, %v5558_v32  ;;  %v772_v32 = vadd.f32 %v6704_v41, %v8110_v12 }
 0x234   : > { %2692 = vst.msk [vmem:[#allocation2 + $0x90] sm:$0xf] %vm2658_vm11, %v2556_v47  ;;  %v6722_v47 = vpack.c.bf16 %v1275_v40, %v1275_v40  ;;  %v1742_v40 = vrot.slane %v6335_v34, 4 }
 0x236   : > { %v1765_v34 = vshll.u32 %v6722_v47, 16 }
 0x23a   : > { %v2558_v4 = vpop.permute.xlu1 %2557  ;;  %v2069_v35 = vpop.permute.xlu0 %2068 }
 0x23b   : > { %2693 = vst.msk [vmem:[#allocation2 + $0x94] sm:$0xf] %vm2658_vm11, %v2558_v4 }
 0x23c   : > { %2196 = vst.msk [vmem:[#allocation2 + $0x98] sm:$0xf] %vm2160_vm10, %v2069_v35 }
 0x242   : > { %v2071_v5 = vpop.permute.xlu1 %2070  ;;  %v2544_v55 = vpop.permute.xlu0 %2543 }
 0x243   : > { %2197 = vst.msk [vmem:[#allocation2 + $0x9c] sm:$0xf] %vm2160_vm10, %v2071_v5  ;;  %v950_v5 = vmax.f32 %v885_v7, 0.0 }
 0x244   : > { %2686 = vst.msk [vmem:[#allocation2 + $0x78] sm:$0xf] %vm2658_vm11, %v2544_v55 }
 0x24a   : > { %v2562_v38 = vpop.permute.xlu1 %2561  ;;  %v2560_v51 = vpop.permute.xlu0 %2559 }
 0x24b   : > { %2695 = vst.msk [vmem:[#allocation2 + $0x9c] sm:$0xf] %vm2658_vm11, %v2562_v38  ;;  %v5559_v37 = vld [vmem:[#allocation2 + $0x78] sm:$0xff]  ;;  %v905_v38 = vmax.f32 %v772_v32, 0.0 }
 0x24c   : > { %2694 = vst.msk [vmem:[#allocation2 + $0x98] sm:$0xf] %vm2658_vm11, %v2560_v51  ;;  %5167 = vmatmul.msk.bf16.gmra.mxu3 %vm2914_vm13, %v5559_v37  ;;  %v1762_v51 = vshrl.u32 %v6722_v47, 16  ;;  %v488_v37 = vld [vmem:[%s8020_s1 + $0x40] sm:$0xff] }
 0x24e   : > { %v6744_v60 = vrot.slane %v1762_v51, 7 }
 0x252   : > { %v2073_v53 = vpop.permute.xlu1 %2072  ;;  %v961_v24 = vpop.permute.xlu0 %960 }
 0x253   : > { %2198 = vst.msk [vmem:[#allocation2 + $0xa0] sm:$0xf] %vm2160_vm10, %v2073_v53  ;;  %v1228_v49 = vmul.f32 %v961_v24, %v904_v54 }
 0x255   : > { %v1282_v10 = vpack.c.bf16 %v1228_v49, %v1228_v49 }
 0x257   : > { %v1340_v52 = vshrl.u32 %v1282_v10, 16  ;;  %v1343_v9 = vshll.u32 %v1282_v10, 16  ;;  %1998 = vrot.lane.b32.xlu0 %v1282_v10, %s5692_s11 }
 0x259   : > { %v6713_v50 = vrot.slane %v1340_v52, 7  ;;  %v2218_v46 = vrot.slane %v1343_v9, 5  ;;  %v2219_v33 = vrot.slane %v1340_v52, 4 }
 0x25a   : > { %v2564_v19 = vpop.permute.xlu1 %2563  ;;  %v1186_v28 = vpop.permute.xlu0 %1185 }
 0x25b   : > { %2696 = vst.msk [vmem:[#allocation2 + $0xa0] sm:$0xf] %vm2658_vm11, %v2564_v19  ;;  %v1345_v15 = vor.u32 %v1343_v9, %v6713_v50  ;;  %v1273_v11 = vmul.f32 %v1186_v28, %v949_v3  ;;  %2487 = vrot.lane.b32.xlu1 %v2218_v46, %s5693_s17  ;;  %v2220_v52 = vor.u32 %v2219_v33, %v2218_v46  ;;  %v6750_v28 = vpop.f32.mrf.mxu2  ;;  %v8112_v46 = vshll.u32 %v6488_v14, 16 }
 0x25c   : > { %5168 = vmatmul.msk.bf16.gmra.mxu3 %vm2914_vm13, %v5560_v56 }
 0x25d   : > { %v6727_v4 = vpack.c.bf16 %v1273_v11, %v1273_v11  ;;  %v1883_v35 = vsel %vm1881_vm15, %v1345_v15, %v1882_v27  ;;  %v1362_v12 = vor.u32 %v8112_v46, %v6528_v13  ;;  %v2221_v58 = vrot.slane %v2220_v52, 4 }
 0x25e   : > { %1884 = vst [vmem:[#allocation2 + $0xc] sm:$0xf] %v1883_v35  ;;  %v890_v46 = vadd.f32 %v6704_v41, %v6724_v61 }
 0x25f   : > { %v1744_v55 = vshrl.u32 %v6727_v4, 16  ;;  %v1747_v29 = vshll.u32 %v6727_v4, 16 }
 0x261   : > { %v1746_v48 = vrot.slane %v1744_v55, 7  ;;  %v2444_v54 = vrot.slane %v1744_v55, 4  ;;  %v2442_v24 = vrot.slane %v1747_v29, 5  ;;  %v1767_v55 = vor.u32 %v1765_v34, %v6744_v60 }
 0x262   : > { %v1191_v53 = vpop.permute.xlu1 %1190  ;;  %v966_v6 = vpop.permute.xlu0 %965 }
 0x263   : > { %v1274_v49 = vmul.f32 %v1191_v53, %v950_v5  ;;  %v1749_v23 = vor.u32 %v1747_v29, %v1746_v48  ;;  %v1229_v10 = vmul.f32 %v966_v6, %v905_v38  ;;  %1000 = vperm.xlu1 %5644, %v488_v37   ;;  %v2443_v9 = vsel %vm6048_vm5, %v2441_v57, %v2442_v24  ;;  %v487_v37 = vld [vmem:[%s8020_s1 + $0x38] sm:$0xff] }
 0x264   : > { %2577 = vrot.lane.b32.xlu2 %v2443_v9, %s5693_s17  ;;  %v2445_v20 = vor.u32 %v2444_v54, %v2442_v24  ;;  %v1751_v53 = vrot.slane %v1746_v48, 4  ;;  %v1346_v9 = vrot.slane %v6713_v50, 4 }
 0x265   : > { %v1328_v3 = vpack.c.bf16 %v1274_v49, %v1274_v49  ;;  %v6746_v19 = vpack.c.bf16 %v1229_v10, %v1229_v10  ;;  %v1750_v7 = vsel %vm6243_vm8, %v1742_v40, %v1749_v23  ;;  %v5561_v23 = vld [vmem:[#allocation2 + $0x88] sm:$0xff] }
 0x266   : > { %1930 = vst.msk [vmem:[#allocation2 + $0xc0] sm:$0xf] %vm1879_vm9, %v1750_v7  ;;  %v2446_v35 = vrot.slane %v2445_v20, 4  ;;  %v894_v7 = vpop.f32.mrf.mxu2 }
 0x267   : > { %v1753_v56 = vshrl.u32 %v1328_v3, 16  ;;  %v1756_v27 = vshll.u32 %v1328_v3, 16  ;;  %v1348_v15 = vshrl.u32 %v6746_v19, 16  ;;  %v1351_v11 = vshll.u32 %v6746_v19, 16 }
 0x269   : > { %v1755_v32 = vrot.slane %v1753_v56, 7  ;;  %v2447_v5 = vrot.slane %v1756_v27, 5  ;;  %v1350_v29 = vrot.slane %v1348_v15, 7  ;;  %v6763_v57 = vrot.slane %v1351_v11, 5 }
 0x26a   : > { %v2079_v38 = vpop.permute.xlu1 %2078  ;;  %v2077_v54 = vpop.permute.xlu0 %2076  ;;  %v2449_v50 = vrot.slane %v1753_v56, 4 }
 0x26b   : > { %v1758_v33 = vor.u32 %v1756_v27, %v1755_v32  ;;  %2201 = vst.msk [vmem:[#allocation2 + $0xac] sm:$0xf] %vm2160_vm10, %v2079_v38  ;;  %v2448_v13 = vsel %vm6048_vm5, %v2446_v35, %v2447_v5  ;;  %v1760_v24 = vrot.slane %v1755_v32, 4  ;;  %v1353_v49 = vor.u32 %v1351_v11, %v1350_v29  ;;  %v8113_v32 = vld [vmem:[#allocation6_spill] sm:$0xff] }
 0x26c   : > { %2200 = vst.msk [vmem:[#allocation2 + $0xa8] sm:$0xf] %vm2160_vm10, %v2077_v54  ;;  %2579 = vrot.lane.b32.xlu1 %v2448_v13, %s5693_s17  ;;  %v2223_v6 = vsel %vm6048_vm5, %v2221_v58, %v6763_v57  ;;  %v1355_v10 = vrot.slane %v1350_v29, 4  ;;  %995 = vperm.xlu2 %5645, %v487_v37   ;;  %v2450_v56 = vor.u32 %v2449_v50, %v2447_v5  ;;  %v2224_v38 = vrot.slane %v1348_v15, 4 }
 0x26d   : > { %2489 = vrot.lane.b32.xlu0 %v2223_v6, %s5693_s17  ;;  %v1759_v48 = vsel %vm6243_vm8, %v1751_v53, %v1758_v33  ;;  %5169 = vmatmul.msk.bf16.gmra.mxu3 %vm2914_vm13, %v5561_v23  ;;  %v1354_v20 = vsel %vm6243_vm8, %v1346_v9, %v1353_v49  ;;  %v1768_v52 = vsel %vm6243_vm8, %v1760_v24, %v1767_v55  ;;  %v952_v55 = vmax.f32 %v890_v46, 0.0  ;;  %v8114_v46 = vld [vmem:[#allocation7_spill] sm:$0xff] }
 0x26e   : > { %v1363_v40 = vsel %vm6243_vm8, %v1355_v10, %v1362_v12  ;;  %1931 = vst.msk [vmem:[#allocation2 + $0xc4] sm:$0xf] %vm1879_vm9, %v1759_v48  ;;  %v895_v12 = vadd.f32 %v6704_v41, %v894_v7  ;;  %v780_v35 = vadd.f32 %v6704_v41, %v8113_v32  ;;  %v2451_v61 = vrot.slane %v2450_v56, 4 }
 0x26f   : > { %1887 = vst.msk [vmem:[#allocation2 + $0x14] sm:$0xf] %vm1879_vm9, %v1363_v40  ;;  %v6800_v33 = vrot.slane %v1765_v34, 5  ;;  %v892_v34 = vadd.f32 %v6704_v41, %v6750_v28  ;;  %v489_v40 = vld [vmem:[%s8020_s1 + $0x48] sm:$0xff] }
 0x270   : > { %1886 = vst.msk [vmem:[#allocation2 + $0x10] sm:$0xf] %vm1879_vm9, %v1354_v20  ;;  %v954_v29 = vmax.f32 %v895_v12, 0.0  ;;  %v908_v37 = vmax.f32 %v780_v35, 0.0  ;;  %v782_v12 = vadd.f32 %v6704_v41, %v8114_v46 }
 0x271   : > { %1932 = vst.msk [vmem:[#allocation2 + $0xc8] sm:$0xf] %vm1879_vm9, %v1768_v52  ;;  %v2453_v53 = vsel %vm6048_vm5, %v2451_v61, %v6800_v33  ;;  %v953_v6 = vmax.f32 %v892_v34, 0.0 }
 0x272   : > { %v2570_v27 = vpop.permute.xlu1 %2569  ;;  %v2568_v11 = vpop.permute.xlu0 %2567  ;;  %v909_v35 = vmax.f32 %v782_v12, 0.0 }
 0x273   : > { %2699 = vst.msk [vmem:[#allocation2 + $0xac] sm:$0xf] %vm2658_vm11, %v2570_v27 }
 0x274   : > { %2698 = vst.msk [vmem:[#allocation2 + $0xa8] sm:$0xf] %vm2658_vm11, %v2568_v11  ;;  %2002 = vrot.lane.b32.xlu1 %v6488_v14, %s5692_s11  ;;  %2088 = vrot.lane.b32.xlu2 %v6727_v4, %s5692_s11  ;;  %v1278_v14 = vmul.f32 %v6581_v36, %v954_v29  ;;  %v5562_v4 = vld [vmem:[#allocation2 + $0x90] sm:$0xff]  ;;  %v1769_v11 = vrot.slane %v6744_v60, 4 }
 0x275   : > { %2090 = vrot.lane.b32.xlu0 %v1328_v3, %s5692_s11  ;;  %v2225_v3 = vor.u32 %v2224_v38, %v6763_v57  ;;  %v2454_v38 = vrot.slane %v1762_v51, 4  ;;  %v5563_v51 = vld [vmem:[#allocation2 + $0x98] sm:$0xff] }
 0x277   : > { %v2226_v49 = vrot.slane %v2225_v3, 4 }
 0x279   : > { %v2228_v27 = vsel %vm6048_vm5, %v2226_v49, %v6513_v63 }
 0x27a   : > { %v981_v58 = vpop.permute.xlu1 %980  ;;  %v1201_v13 = vpop.permute.xlu0 %1200 }
 0x27b   : > { %v1232_v54 = vmul.f32 %v981_v58, %v908_v37  ;;  %v1276_v5 = vmul.f32 %v1201_v13, %v952_v55 }
 0x27c   : > { %2493 = vrot.lane.b32.xlu1 %v2233_v22, %s5693_s17  ;;  %2581 = vrot.lane.b32.xlu2 %v2453_v53, %s5693_s17  ;;  %v6823_v22 = vpack.c.bf16 %v1278_v14, %v1278_v14 }
 0x27d   : > { %v6815_v15 = vpack.c.bf16 %v1232_v54, %v1232_v54  ;;  %2000 = vrot.lane.b32.xlu0 %v6746_v19, %s5692_s11  ;;  %v1330_v36 = vpack.c.bf16 %v1276_v5, %v1276_v5  ;;  %5170 = vmatmul.msk.bf16.gmra.mxu3 %vm2914_vm13, %v5562_v4  ;;  %v6832_v19 = vrot.slane %v2235_v59, 4  ;;  %v490_v54 = vld [vmem:[%s8020_s1 + $0x50] sm:$0xff] }
 0x27e   : > { %v1789_v59 = vshrl.u32 %v6823_v22, 16  ;;  %v1792_v61 = vshll.u32 %v6823_v22, 16 }
 0x27f   : > { %v1375_v24 = vshrl.u32 %v6815_v15, 16  ;;  %v1378_v45 = vshll.u32 %v6815_v15, 16  ;;  %v1771_v57 = vshrl.u32 %v1330_v36, 16  ;;  %v1774_v9 = vshll.u32 %v1330_v36, 16 }
 0x280   : > { %v6866_v60 = vrot.slane %v1789_v59, 7 }
 0x281   : > { %v6827_v28 = vrot.slane %v1375_v24, 7  ;;  %v6834_v23 = vrot.slane %v1378_v45, 5  ;;  %v1773_v10 = vrot.slane %v1771_v57, 7  ;;  %v2459_v37 = vrot.slane %v1771_v57, 4  ;;  %v8115_v57 = vld [vmem:[#allocation8_spill] sm:$0xff] }
 0x282   : > { %v1206_v48 = vpop.permute.xlu1 %1205  ;;  %v2083_v50 = vpop.permute.xlu0 %2082  ;;  %v2457_v13 = vrot.slane %v1774_v9, 5  ;;  %v1794_v3 = vor.u32 %v1792_v61, %v6866_v60  ;;  %v785_v49 = vadd.f32 %v6704_v41, %v8115_v57 }
 0x283   : > { %v1380_v20 = vor.u32 %v1378_v45, %v6827_v28  ;;  %v1277_v52 = vmul.f32 %v1206_v48, %v953_v6  ;;  %v2238_v2 = vsel %vm6048_vm5, %v6832_v19, %v6834_v23  ;;  %v1776_v7 = vor.u32 %v1774_v9, %v1773_v10  ;;  %2203 = vst.msk [vmem:[#allocation2 + $0xb4] sm:$0xf] %vm2160_vm10, %v2083_v50  ;;  %v5599_v9 = vld [vmem:[%s8023_s4 + $0x8] sm:$0x30] }
 0x284   : > { %2094 = vrot.lane.b32.xlu1 %v1330_v36, %s5692_s11  ;;  %1005 = vperm.xlu2 %5645, %v489_v40   ;;  %v1778_v4 = vrot.slane %v1773_v10, 4  ;;  %v2455_v6 = vor.u32 %v2454_v38, %v6800_v33  ;;  %v2460_v10 = vor.u32 %v2459_v37, %v2457_v13  ;;  %v5627_v33 = vld [vmem:[%s8023_s4 + $0x10] sm:$0x30]  ;;  %v1382_v38 = vrot.slane %v6827_v28, 4 }
 0x285   : > { %v6854_v56 = vpack.c.bf16 %v1277_v52, %v1277_v52  ;;  %2491 = vrot.lane.b32.xlu0 %v2228_v27, %s5693_s17  ;;  %v1381_v44 = vsel %vm6243_vm8, %v1373_v8, %v1380_v20  ;;  %v1777_v32 = vsel %vm6243_vm8, %v1769_v11, %v1776_v7  ;;  %v910_v11 = vmax.f32 %v785_v49, 0.0 }
 0x286   : > { %1889 = vst.msk [vmem:[#allocation2 + $0x1c] sm:$0xf] %vm1879_vm9, %v1381_v44  ;;  %v2456_v12 = vrot.slane %v2455_v6, 4  ;;  %v2461_v44 = vrot.slane %v2460_v10, 4 }
 0x287   : > { %v1780_v63 = vshrl.u32 %v6854_v56, 16  ;;  %1933 = vst.msk [vmem:[#allocation2 + $0xcc] sm:$0xf] %vm1879_vm9, %v1777_v32  ;;  %v1783_v29 = vshll.u32 %v6854_v56, 16 }
 0x289   : > { %v1782_v55 = vrot.slane %v1780_v63, 7  ;;  %v6907_v52 = vrot.slane %v1783_v29, 5 }
 0x28a   : > { %v986_v58 = vpop.permute.xlu1 %985  ;;  %v2574_v53 = vpop.permute.xlu0 %2573 }
 0x28b   : > { %v1785_v14 = vor.u32 %v1783_v29, %v1782_v55  ;;  %v1233_v5 = vmul.f32 %v986_v58, %v909_v35  ;;  %2701 = vst.msk [vmem:[#allocation2 + $0xb4] sm:$0xf] %vm2658_vm11, %v2574_v53  ;;  %v1787_v34 = vrot.slane %v1782_v55, 4  ;;  %v896_v55 = vpop.f32.mrf.mxu2  ;;  %v2458_v58 = vsel %vm6048_vm5, %v2456_v12, %v2457_v13 }
 0x28c   : > { %2004 = vrot.lane.b32.xlu1 %v6521_v1, %s5692_s11  ;;  %1010 = vperm.xlu2 %5645, %v490_v54   ;;  %v5291_v1 = vld [vmem:[%s8023_s4 + $0x8] sm:$0xf]  ;;  %v2463_v54 = vsel %vm6048_vm5, %v2461_v44, %v6907_v52  ;;  %v897_v13 = vadd.f32 %v6704_v41, %v896_v55  ;;  %v2239_v53 = vrot.slane %v1375_v24, 4  ;;  %v5564_v24 = vld [vmem:[#allocation2 + $0xa0] sm:$0xff] }
 0x28d   : > { %v6881_v36 = vpack.c.bf16 %v1233_v5, %v1233_v5  ;;  %2092 = vrot.lane.b32.xlu0 %v6722_v47, %s5692_s11  ;;  %v1786_v45 = vsel %vm6243_vm8, %v1778_v4, %v1785_v14  ;;  %5171 = vmatmul.msk.bf16.gmra.mxu3 %vm2914_vm13, %v5563_v51  ;;  %v5432_v47 = vld [vmem:[%s8023_s4 + $0x10] sm:$0xf]  ;;  %v1795_v48 = vsel %vm6243_vm8, %v1787_v34, %v1794_v3  ;;  %v2469_v5 = vrot.slane %v1789_v59, 4  ;;  %v5565_v55 = vld [vmem:[#allocation2 + $0xa8] sm:$0xff] }
 0x28e   : > { %v5292_v20 = vor.u32 %v5599_v9, %v5291_v1  ;;  %1935 = vst.msk [vmem:[#allocation2 + $0xd4] sm:$0xf] %vm1879_vm9, %v1795_v48  ;;  %v5433_v50 = vor.u32 %v5627_v33, %v5432_v47  ;;  %v955_v4 = vmax.f32 %v897_v13, 0.0  ;;  %v2240_v1 = vor.u32 %v2239_v53, %v6834_v23  ;;  %v496_v53 = vld [vmem:[%s8020_s1 + $0x80] sm:$0xff] }
 0x28f   : > { %v1384_v40 = vshrl.u32 %v6881_v36, 16  ;;  %1934 = vst.msk [vmem:[#allocation2 + $0xd0] sm:$0xf] %vm1879_vm9, %v1786_v45  ;;  %v1387_v7 = vshll.u32 %v6881_v36, 16  ;;  %v491_v45 = vld [vmem:[%s8020_s1 + $0x58] sm:$0xff] }
 0x290   : > { %v3480_v27 = vsel %vm2996_vm12, %v5292_v20, 0  ;;  %v3959_v32 = vsel %vm2996_vm12, %v5433_v50, 0 }
 0x291   : > { %v1386_v8 = vrot.slane %v1384_v40, 7  ;;  %3489 = vmatpush.bf16.msrb.mxu2 %v3480_v27  ;;  %3968 = vmatpush.bf16.msrb.mxu3 %v3959_v32  ;;  %v2242_v20 = vrot.slane %v1387_v7, 5  ;;  %v2241_v27 = vrot.slane %v2240_v1, 4 }
 0x292   : > { %v2085_v46 = vpop.permute.xlu1 %2084  ;;  %v991_v29 = vpop.permute.xlu0 %990  ;;  %v5566_v13 = vld [vmem:[#allocation2 + $0xb0] sm:$0xff] }
 0x293   : > { %v1389_v35 = vor.u32 %v1387_v7, %v1386_v8  ;;  %2204 = vst.msk [vmem:[#allocation2 + $0xb8] sm:$0xf] %vm2160_vm10, %v2085_v46  ;;  %v1234_v37 = vmul.f32 %v991_v29, %v910_v11  ;;  %v1391_v49 = vrot.slane %v1386_v8, 4  ;;  %v492_v11 = vld [vmem:[%s8020_s1 + $0x60] sm:$0xff]  ;;  %v1796_v46 = vrot.slane %v6866_v60, 4 }
 0x294   : > { %2495 = vrot.lane.b32.xlu1 %v2238_v2, %s5693_s17  ;;  %2583 = vrot.lane.b32.xlu2 %v2458_v58, %s5693_s17  ;;  %v2467_v2 = vrot.slane %v1792_v61, 5 }
 0x295   : > { %2585 = vrot.lane.b32.xlu0 %v2463_v54, %s5693_s17  ;;  %v1390_v28 = vsel %vm6243_vm8, %v1382_v38, %v1389_v35  ;;  %v6933_v14 = vpack.c.bf16 %v1234_v37, %v1234_v37  ;;  %v493_v35 = vld [vmem:[%s8020_s1 + $0x68] sm:$0xff]  ;;  %v494_v38 = vld [vmem:[%s8020_s1 + $0x70] sm:$0xff]  ;;  %v495_v54 = vld [vmem:[%s8020_s1 + $0x78] sm:$0xff] }
 0x296   : > { %1890 = vst.msk [vmem:[#allocation2 + $0x20] sm:$0xf] %vm1879_vm9, %v1390_v28  ;;  %v2470_v6 = vor.u32 %v2469_v5, %v2467_v2  ;;  %v5544_v28 = vld [vmem:[#allocation2] sm:$0xff] }
 0x297   : > { %v1393_v19 = vshrl.u32 %v6933_v14, 16  ;;  %v1396_v51 = vshll.u32 %v6933_v14, 16  ;;  %5152 = vmatmul.msk.bf16.vlgmr.msra.gmra.mxu1 %vm2914_vm13, %v5544_v28  ;;  %v499_v28 = vld [vmem:[%s8020_s1 + $0x98] sm:$0xff] }
 0x298   : > { %v2471_v33 = vrot.slane %v2470_v6, 4 }
 0x299   : > { %v6943_v3 = vrot.slane %v1393_v19, 7  ;;  %v2247_v37 = vrot.slane %v1396_v51, 5 }
 0x29a   : > { %v2576_v34 = vpop.permute.xlu1 %2575  ;;  %v1216_v61 = vpop.permute.xlu0 %1215 }
 0x29b   : > { %2702 = vst.msk [vmem:[#allocation2 + $0xb8] sm:$0xf] %vm2658_vm11, %v2576_v34  ;;  %v1398_v59 = vor.u32 %v1396_v51, %v6943_v3  ;;  %v1279_v57 = vmul.f32 %v1216_v61, %v955_v4  ;;  %v2249_v34 = vrot.slane %v1393_v19, 4 }
 0x29c   : > { %2096 = vrot.lane.b32.xlu1 %v6854_v56, %s5692_s11  ;;  %2006 = vrot.lane.b32.xlu2 %v6815_v15, %s5692_s11  ;;  %v2464_v15 = vrot.slane %v1780_v63, 4  ;;  %v2243_v56 = vsel %vm6048_vm5, %v2241_v27, %v2242_v20 }
 0x29d   : > { %1015 = vperm.xlu0 %5643, %v491_v45   ;;  %v6955_v10 = vpack.c.bf16 %v1279_v57, %v1279_v57  ;;  %5172 = vmatmul.msk.bf16.gmra.mxu3 %vm2914_vm13, %v5564_v24  ;;  %v1399_v9 = vsel %vm6243_vm8, %v1391_v49, %v1398_v59  ;;  %v497_v24 = vld [vmem:[%s8020_s1 + $0x88] sm:$0xff]  ;;  %v2250_v49 = vor.u32 %v2249_v34, %v2247_v37 }
 0x29e   : > { %1891 = vst.msk [vmem:[#allocation2 + $0x24] sm:$0xf] %vm1879_vm9, %v1399_v9  ;;  %v2465_v44 = vor.u32 %v2464_v15, %v6907_v52  ;;  %v2244_v52 = vrot.slane %v1384_v40, 4 }
 0x29f   : > { %v1798_v47 = vshrl.u32 %v6955_v10, 16  ;;  %v1801_v48 = vshll.u32 %v6955_v10, 16 }
 0x2a0   : > { %v2466_v32 = vrot.slane %v2465_v44, 4  ;;  %v498_v44 = vld [vmem:[%s8020_s1 + $0x90] sm:$0xff] }
 0x2a1   : > { %v6966_v50 = vrot.slane %v1798_v47, 7  ;;  %v6968_v8 = vrot.slane %v1798_v47, 4  ;;  %v6970_v23 = vrot.slane %v1801_v48, 5 }
 0x2a2   : > { %v2468_v29 = vsel %vm6048_vm5, %v2466_v32, %v2467_v2  ;;  %v8116_v2 = vld [vmem:[#allocation9_spill] sm:$0xff] }
 0x2a3   : > { %v1803_v12 = vor.u32 %v1801_v48, %v6966_v50  ;;  %v2473_v63 = vsel %vm6048_vm5, %v2471_v33, %v6970_v23  ;;  %v2475_v7 = vor.u32 %v6968_v8, %v6970_v23  ;;  %v787_v5 = vadd.f32 %v6704_v41, %v8116_v2 }
 0x2a4   : > { %2497 = vrot.lane.b32.xlu2 %v2243_v56, %s5693_s17  ;;  %2589 = vrot.lane.b32.xlu1 %v2473_v63, %s5693_s17  ;;  %v8117_v56 = vld [vmem:[#allocation10_spill] sm:$0xff] }
 0x2a5   : > { %1020 = vperm.xlu0 %5643, %v492_v11   ;;  %v1804_v60 = vsel %vm6243_vm8, %v1796_v46, %v1803_v12  ;;  %v911_v51 = vmax.f32 %v787_v5, 0.0  ;;  %v1400_v12 = vrot.slane %v6943_v3, 4  ;;  %v790_v63 = vadd.f32 %v6704_v41, %v8117_v56 }
 0x2a6   : > { %1936 = vst.msk [vmem:[#allocation2 + $0xd8] sm:$0xf] %vm1879_vm9, %v1804_v60  ;;  %v5543_v60 = vld [vmem:[%s5760_s19 + $0xd0] sm:$0xff] }
 0x2a7   : > { %5039 = vmatmul.msk.bf16.gmra.mxu2 %vm674_vm2, %v5543_v60  ;;  %v912_v3 = vmax.f32 %v790_v63, 0.0 }
 0x2ac   : > { %2098 = vrot.lane.b32.xlu2 %v6823_v22, %s5692_s11  ;;  %1025 = vperm.xlu1 %5644, %v493_v35   ;;  %v2245_v22 = vor.u32 %v2244_v52, %v2242_v20  ;;  %v2251_v20 = vrot.slane %v2250_v49, 4 }
 0x2ad   : > { %2587 = vrot.lane.b32.xlu0 %v2468_v29, %s5693_s17  ;;  %5173 = vmatmul.msk.bf16.gmra.mxu3 %vm2914_vm13, %v5565_v55 }
 0x2ae   : > { %v2246_v58 = vrot.slane %v2245_v22, 4 }
 0x2b0   : > { %v2248_v40 = vsel %vm6048_vm5, %v2246_v58, %v2247_v37  ;;  %v8118_v58 = vld [vmem:[#allocation11_spill] sm:$0xff] }
 0x2b4   : > { %2008 = vrot.lane.b32.xlu2 %v6881_v36, %s5692_s11  ;;  %1030 = vperm.xlu1 %5644, %v494_v38  }
 0x2b5   : > { %2010 = vrot.lane.b32.xlu0 %v6933_v14, %s5692_s11  ;;  %v2655_v14 = vld [vmem:[#allocation2 + $0x8] sm:$0x8] }
 0x2b6   : > { %v7022_v4 = vpop.f32.mrf.mxu3 }
 0x2bc   : > { %2499 = vrot.lane.b32.xlu2 %v2248_v40, %s5693_s17  ;;  %1035 = vperm.xlu1 %5644, %v495_v54   ;;  %v792_v54 = vadd.f32 %v6704_v41, %v8118_v58  ;;  %v501_v58 = vld [vmem:[%s8020_s1 + $0xa8] sm:$0xff] }
 0x2bd   : > { %5174 = vmatmul.msk.bf16.gmra.mxu3 %vm2914_vm13, %v5566_v13 }
 0x2be   : > { %v2578_v36 = vpop.permute.xlu2 %2577  ;;  %v7031_v19 = vpop.f32.mrf.mxu3 }
 0x2bf   : > { %2703 = vst.msk [vmem:[#allocation2 + $0xbc] sm:$0xf] %vm2658_vm11, %v2578_v36 }
 0x2c4   : > { %1040 = vperm.xlu1 %5644, %v496_v53   ;;  %v913_v53 = vmax.f32 %v792_v54, 0.0 }
 0x2c6   : > { %v996_v45 = vpop.permute.xlu2 %995  ;;  %v5567_v9 = vld [vmem:[#allocation2 + $0xb8] sm:$0xff] }
 0x2c7   : > { %v1235_v61 = vmul.f32 %v996_v45, %v911_v51 }
 0x2c9   : > { %v1289_v59 = vpack.c.bf16 %v1235_v61, %v1235_v61  ;;  %v1999_v57 = vpop.permute.xlu0 %1998 }
 0x2ca   : > { %2161 = vst.msk [vmem:[#allocation2 + $0xc] sm:$0xf] %vm2160_vm10, %v1999_v57 }
 0x2cb   : > { %v1402_v6 = vshrl.u32 %v1289_v59, 16  ;;  %v1405_v1 = vshll.u32 %v1289_v59, 16  ;;  %2012 = vrot.lane.b32.xlu2 %v1289_v59, %s5692_s11 }
 0x2cc   : > { %1045 = vperm.xlu1 %5644, %v497_v24  }
 0x2cd   : > { %v1404_v47 = vrot.slane %v1402_v6, 7  ;;  %5175 = vmatmul.msk.bf16.gmra.mxu3 %vm2914_vm13, %v5567_v9  ;;  %v2488_v48 = vpop.permute.xlu1 %2487  ;;  %v2252_v15 = vrot.slane %v1405_v1, 5  ;;  %v2254_v35 = vrot.slane %v1402_v6, 4 }
 0x2ce   : > { %v2656_v33 = vsel %vm2654_vm7, %v2488_v48, %v2655_v14  ;;  %v2089_v27 = vpop.permute.xlu2 %2088 }
 0x2cf   : > { %v1407_v11 = vor.u32 %v1405_v1, %v1404_v47  ;;  %2657 = vst [vmem:[#allocation2 + $0x8] sm:$0x8] %v2656_v33  ;;  %v2253_v46 = vsel %vm6048_vm5, %v2251_v20, %v2252_v15  ;;  %v7049_v55 = vpop.f32.mrf.mxu3  ;;  %v2255_v37 = vor.u32 %v2254_v35, %v2252_v15  ;;  %v1409_v24 = vrot.slane %v1404_v47, 4  ;;  %v8119_v1 = vld [vmem:[#allocation12_spill] sm:$0xff]  ;;  %v500_v20 = vld [vmem:[%s8020_s1 + $0xa0] sm:$0xff] }
 0x2d0   : > { %2206 = vst.msk [vmem:[#allocation2 + $0xc0] sm:$0xf] %vm2160_vm10, %v2089_v27  ;;  %2501 = vrot.lane.b32.xlu0 %v2253_v46, %s5693_s17  ;;  %v795_v9 = vadd.f32 %v6704_v41, %v8119_v1 }
 0x2d1   : > { %v1408_v32 = vsel %vm6243_vm8, %v1400_v12, %v1407_v11  ;;  %v2256_v2 = vrot.slane %v2255_v37, 4 }
 0x2d2   : > { %1892 = vst.msk [vmem:[#allocation2 + $0x28] sm:$0xf] %vm1879_vm9, %v1408_v32  ;;  %v914_v27 = vmax.f32 %v795_v9, 0.0 }
 0x2d4   : > { %1050 = vperm.xlu1 %5644, %v498_v44  }
 0x2d5   : > { %v1001_v29 = vpop.permute.xlu1 %1000 }
 0x2d6   : > { %v1236_v52 = vmul.f32 %v1001_v29, %v912_v3  ;;  %v2582_v38 = vpop.permute.xlu2 %2581 }
 0x2d7   : > { %v7060_v49 = vpop.f32.mrf.mxu3 }
 0x2d8   : > { %v1290_v22 = vpack.c.bf16 %v1236_v52, %v1236_v52 }
 0x2da   : > { %v1411_v40 = vshrl.u32 %v1290_v22, 16  ;;  %v1414_v13 = vshll.u32 %v1290_v22, 16  ;;  %2014 = vrot.lane.b32.xlu0 %v1290_v22, %s5692_s11 }
 0x2dc   : > { %v1413_v36 = vrot.slane %v1411_v40, 7  ;;  %1055 = vperm.xlu1 %5644, %v499_v28   ;;  %v2257_v5 = vrot.slane %v1414_v13, 5  ;;  %v2259_v51 = vrot.slane %v1411_v40, 4 }
 0x2de   : > { %v2580_v34 = vpop.permute.xlu1 %2579  ;;  %v1416_v45 = vor.u32 %v1414_v13, %v1413_v36  ;;  %v1006_v61 = vpop.permute.xlu2 %1005  ;;  %v2258_v57 = vsel %vm6048_vm5, %v2256_v2, %v2257_v5  ;;  %v2260_v15 = vor.u32 %v2259_v51, %v2257_v5  ;;  %v1418_v52 = vrot.slane %v1413_v36, 4 }
 0x2df   : > { %2704 = vst.msk [vmem:[#allocation2 + $0xc0] sm:$0xf] %vm2658_vm11, %v2580_v34  ;;  %v2490_v59 = vpop.permute.xlu0 %2489  ;;  %v1237_v6 = vmul.f32 %v1006_v61, %v913_v53  ;;  %2503 = vrot.lane.b32.xlu2 %v2258_v57, %s5693_s17  ;;  %v7080_v22 = vpop.f32.mrf.mxu3  ;;  %v502_v57 = vld [vmem:[%s8020_s1 + $0xb0] sm:$0xff] }
 0x2e0   : > { %2659 = vst.msk [vmem:[#allocation2 + $0xc] sm:$0xf] %vm2658_vm11, %v2490_v59  ;;  %v1417_v14 = vsel %vm6243_vm8, %v1409_v24, %v1416_v45  ;;  %v2261_v56 = vrot.slane %v2260_v15, 4 }
 0x2e1   : > { %v1291_v48 = vpack.c.bf16 %v1237_v6, %v1237_v6  ;;  %1893 = vst.msk [vmem:[#allocation2 + $0x2c] sm:$0xf] %vm1879_vm9, %v1417_v14 }
 0x2e3   : > { %v1420_v47 = vshrl.u32 %v1291_v48, 16  ;;  %v1423_v33 = vshll.u32 %v1291_v48, 16 }
 0x2e4   : > { %1060 = vperm.xlu1 %5644, %v500_v20  }
 0x2e5   : > { %v1422_v11 = vrot.slane %v1420_v47, 7  ;;  %v2264_v46 = vrot.slane %v1420_v47, 4  ;;  %v2262_v63 = vrot.slane %v1423_v33, 5 }
 0x2e6   : > { %v2003_v12 = vpop.permute.xlu1 %2002  ;;  %v1011_v44 = vpop.permute.xlu2 %1010 }
 0x2e7   : > { %2163 = vst.msk [vmem:[#allocation2 + $0x14] sm:$0xf] %vm2160_vm10, %v2003_v12  ;;  %v2091_v60 = vpop.permute.xlu0 %2090  ;;  %v5545_v32 = vld [vmem:[#allocation2 + $0x8] sm:$0xff]  ;;  %v1425_v3 = vor.u32 %v1423_v33, %v1422_v11  ;;  %v1238_v35 = vmul.f32 %v1011_v44, %v914_v27  ;;  %2016 = vrot.lane.b32.xlu2 %v1291_v48, %s5692_s11  ;;  %v2263_v29 = vsel %vm6048_vm5, %v2261_v56, %v2262_v63  ;;  %v1427_v59 = vrot.slane %v1422_v11, 4  ;;  %v7107_v6 = vpop.f32.mrf.mxu3  ;;  %v503_v48 = vld [vmem:[%s8020_s1 + $0xb8] sm:$0xff] }
 0x2e8   : > { %2207 = vst.msk [vmem:[#allocation2 + $0xc4] sm:$0xf] %vm2160_vm10, %v2091_v60  ;;  %2505 = vrot.lane.b32.xlu0 %v2263_v29, %s5693_s17  ;;  %5153 = vmatmul.msk.bf16.gmra.mxu1 %vm2914_vm13, %v5545_v32  ;;  %v2265_v54 = vor.u32 %v2264_v46, %v2262_v63  ;;  %v8120_v44 = vld [vmem:[#allocation14_spill] sm:$0xff] }
 0x2e9   : > { %2705 = vst.msk [vmem:[#allocation2 + $0xc4] sm:$0xf] %vm2658_vm11, %v2582_v38  ;;  %v1292_v37 = vpack.c.bf16 %v1238_v35, %v1238_v35  ;;  %v1426_v28 = vsel %vm6243_vm8, %v1418_v52, %v1425_v3  ;;  %v797_v60 = vadd.f32 %v6704_v41, %v8120_v44 }
 0x2ea   : > { %1894 = vst.msk [vmem:[#allocation2 + $0x30] sm:$0xf] %vm1879_vm9, %v1426_v28  ;;  %v2266_v2 = vrot.slane %v2265_v54, 4 }
 0x2eb   : > { %v1429_v40 = vshrl.u32 %v1292_v37, 16  ;;  %v1432_v13 = vshll.u32 %v1292_v37, 16  ;;  %v915_v32 = vmax.f32 %v797_v60, 0.0 }
 0x2ec   : > { %1065 = vperm.xlu1 %5644, %v501_v58  }
 0x2ed   : > { %v7088_v38 = vrot.slane %v1429_v40, 7  ;;  %v7090_v5 = vrot.slane %v1432_v13, 5  ;;  %v2269_v3 = vrot.slane %v1429_v40, 4 }
 0x2ee   : > { %v2494_v36 = vpop.permute.xlu1 %2493  ;;  %v2584_v53 = vpop.permute.xlu2 %2583 }
 0x2ef   : > { %2661 = vst.msk [vmem:[#allocation2 + $0x14] sm:$0xf] %vm2658_vm11, %v2494_v36  ;;  %v2001_v51 = vpop.permute.xlu0 %2000  ;;  %v1434_v34 = vor.u32 %v1432_v13, %v7088_v38  ;;  %v2268_v45 = vsel %vm6048_vm5, %v2266_v2, %v7090_v5  ;;  %v2270_v36 = vor.u32 %v2269_v3, %v7090_v5  ;;  %v8121_v2 = vld [vmem:[#allocation15_spill] sm:$0xff]  ;;  %v1436_v5 = vrot.slane %v7088_v38, 4 }
 0x2f0   : > { %2162 = vst.msk [vmem:[#allocation2 + $0x10] sm:$0xf] %vm2160_vm10, %v2001_v51  ;;  %v5568_v61 = vld [vmem:[#allocation2 + $0xc0] sm:$0xff]  ;;  %2507 = vrot.lane.b32.xlu2 %v2268_v45, %s5693_s17  ;;  %2018 = vrot.lane.b32.xlu0 %v1292_v37, %s5692_s11  ;;  %v7115_v20 = vpop.f32.mrf.mxu3  ;;  %v800_v40 = vadd.f32 %v6704_v41, %v8121_v2 }
 0x2f1   : > { %5176 = vmatmul.msk.bf16.gmra.mxu3 %vm2914_vm13, %v5568_v61  ;;  %v1435_v24 = vsel %vm6243_vm8, %v1427_v59, %v1434_v34  ;;  %v2271_v61 = vrot.slane %v2270_v36, 4  ;;  %v7165_v2 = vld [vmem:[%s8022_s3] ss:$0 sm:$0xff] }
 0x2f2   : > { %1895 = vst.msk [vmem:[#allocation2 + $0x34] sm:$0xf] %vm1879_vm9, %v1435_v24 }
 0x2f4   : > { %1070 = vperm.xlu1 %5644, %v502_v57   ;;  %v916_v57 = vmax.f32 %v800_v40, 0.0  ;;  %v8123_v40 = vld [vmem:[#allocation22_spill] sm:$0xff] }
 0x2f6   : > { %v2095_v1 = vpop.permute.xlu1 %2094  ;;  %v2007_v9 = vpop.permute.xlu2 %2006 }
 0x2f7   : > { %2209 = vst.msk [vmem:[#allocation2 + $0xcc] sm:$0xf] %vm2160_vm10, %v2095_v1  ;;  %v2492_v14 = vpop.permute.xlu0 %2491 }
 0x2f8   : > { %2165 = vst.msk [vmem:[#allocation2 + $0x1c] sm:$0xf] %vm2160_vm10, %v2007_v9  ;;  %v7125_v63 = vpop.f32.mrf.mxu3 }
 0x2f9   : > { %2660 = vst.msk [vmem:[#allocation2 + $0x10] sm:$0xf] %vm2658_vm11, %v2492_v14 }
 0x2fc   : > { %1075 = vperm.xlu1 %5644, %v503_v48  }
 0x2fe   : > { %v2005_v15 = vpop.permute.xlu1 %2004  ;;  %v2498_v47 = vpop.permute.xlu2 %2497 }
 0x2ff   : > { %2164 = vst.msk [vmem:[#allocation2 + $0x18] sm:$0xf] %vm2160_vm10, %v2005_v15  ;;  %v2093_v33 = vpop.permute.xlu0 %2092 }
 0x300   : > { %2663 = vst.msk [vmem:[#allocation2 + $0x1c] sm:$0xf] %vm2658_vm11, %v2498_v47  ;;  %v5546_v27 = vld [vmem:[#allocation2 + $0x10] sm:$0xff]  ;;  %v4240_v47 = vld [vmem:[%s8025_s6] sm:$0x3] }
 0x301   : > { %v5572_v11 = vld [vmem:[#allocation2 + $0xc] sm:$0xff]  ;;  %2208 = vst.msk [vmem:[#allocation2 + $0xc8] sm:$0xf] %vm2160_vm10, %v2093_v33  ;;  %5154 = vmatmul.msk.bf16.gmra.mxu1 %vm2914_vm13, %v5546_v27  ;;  %v4473_v33 = vld [vmem:[%s8027_s8] sm:$0x3]  ;;  %v4327_v38 = vsel %vm756_vm1, %v4240_v47, 0 }
 0x302   : > { %2706 = vst.msk [vmem:[#allocation2 + $0xc8] sm:$0xf] %vm2658_vm11, %v2584_v53  ;;  %5293 = vmatmul.msk.bf16.vlgmr.msrb.gmra.mxu2 %vm2914_vm13, %v5572_v11  ;;  %v7137_v53 = vpop.f32.mrf.mxu3  ;;  %v4479_v11 = vsel %vm756_vm1, %v4473_v33, 0  ;;  %4336 = vmatpush.bf16.msrb.mxu0 %v4327_v38  ;;  %vm1939_vm1 = vcmask 24576  }
 0x303   : > { %4488 = vmatpush.bf16.msrb.mxu1 %v4479_v11  ;;  %vm1940_vm12 = vmand %vm1939_vm1, %vm1336_vm6 }
 0x306   : > { %v2496_v46 = vpop.permute.xlu1 %2495  ;;  %v2099_v12 = vpop.permute.xlu2 %2098 }
 0x307   : > { %2662 = vst.msk [vmem:[#allocation2 + $0x18] sm:$0xf] %vm2658_vm11, %v2496_v46  ;;  %v2586_v56 = vpop.permute.xlu0 %2585  ;;  %v8122_v46 = vld [vmem:[#allocation17_spill] sm:$0xff] }
 0x308   : > { %2211 = vst.msk [vmem:[#allocation2 + $0xd4] sm:$0xf] %vm2160_vm10, %v2099_v12  ;;  %v802_v12 = vadd.f32 %v6704_v41, %v8122_v46 }
 0x309   : > { %2707 = vst.msk [vmem:[#allocation2 + $0xcc] sm:$0xf] %vm2658_vm11, %v2586_v56 }
 0x30e   : > { %v2097_v35 = vpop.permute.xlu1 %2096  ;;  %v5547_v29 = vld [vmem:[#allocation2 + $0x18] sm:$0xff]  ;;  %v2009_v52 = vpop.permute.xlu2 %2008 }
 0x30f   : > { %2210 = vst.msk [vmem:[#allocation2 + $0xd0] sm:$0xf] %vm2160_vm10, %v2097_v35  ;;  %v1016_v37 = vpop.permute.xlu0 %1015  ;;  %v5573_v58 = vld [vmem:[#allocation2 + $0x14] sm:$0xff] }
 0x310   : > { %2166 = vst.msk [vmem:[#allocation2 + $0x20] sm:$0xf] %vm2160_vm10, %v2009_v52  ;;  %v1239_v54 = vmul.f32 %v1016_v37, %v915_v32  ;;  %v5569_v28 = vld [vmem:[#allocation2 + $0xc8] sm:$0xff]  ;;  %v7160_v32 = vpop.f32.mrf.mxu3 }
 0x311   : > { %5155 = vmatmul.msk.bf16.gmra.mxu1 %vm2914_vm13, %v5547_v29  ;;  %5177 = vmatmul.msk.bf16.gmra.mxu3 %vm2914_vm13, %v5569_v28  ;;  %v917_v29 = vmax.f32 %v802_v12, 0.0 }
 0x312   : > { %v1293_v13 = vpack.c.bf16 %v1239_v54, %v1239_v54  ;;  %5294 = vmatmul.msk.bf16.gmra.mxu2 %vm2914_vm13, %v5573_v58 }
 0x314   : > { %v1438_v51 = vshrl.u32 %v1293_v13, 16  ;;  %v1441_v34 = vshll.u32 %v1293_v13, 16  ;;  %2020 = vrot.lane.b32.xlu2 %v1293_v13, %s5692_s11 }
 0x316   : > { %v1440_v45 = vrot.slane %v1438_v51, 7  ;;  %v2272_v59 = vrot.slane %v1441_v34, 5  ;;  %v2274_v24 = vrot.slane %v1438_v51, 4  ;;  %v2500_v1 = vpop.permute.xlu2 %2499  ;;  %v2590_v9 = vpop.permute.xlu1 %2589  ;;  %v805_v51 = vadd.f32 %v7165_v2, %v8123_v40 }
 0x317   : > { %2664 = vst.msk [vmem:[#allocation2 + $0x20] sm:$0xf] %vm2658_vm11, %v2500_v1  ;;  %v1021_v48 = vpop.permute.xlu0 %1020 }
 0x318   : > { %v1443_v14 = vor.u32 %v1441_v34, %v1440_v45  ;;  %v2273_v15 = vsel %vm6048_vm5, %v2271_v61, %v2272_v59  ;;  %2709 = vst.msk [vmem:[#allocation2 + $0xd4] sm:$0xf] %vm2658_vm11, %v2590_v9  ;;  %v1240_v27 = vmul.f32 %v1021_v48, %v916_v57  ;;  %v2275_v60 = vor.u32 %v2274_v24, %v2272_v59 }
 0x319   : > { %2509 = vrot.lane.b32.xlu0 %v2273_v15, %s5693_s17  ;;  %v1445_v59 = vrot.slane %v1440_v45, 4  ;;  %v7178_v45 = vpop.f32.mrf.mxu3 }
 0x31a   : > { %v1444_v56 = vsel %vm6243_vm8, %v1436_v5, %v1443_v14  ;;  %v1294_v44 = vpack.c.bf16 %v1240_v27, %v1240_v27  ;;  %v2276_v54 = vrot.slane %v2275_v60, 4  ;;  %v918_v14 = vmax.f32 %v805_v51, 0.0 }
 0x31b   : > { %1896 = vst.msk [vmem:[#allocation2 + $0x38] sm:$0xf] %vm1879_vm9, %v1444_v56 }
 0x31c   : > { %v1447_v3 = vshrl.u32 %v1294_v44, 16  ;;  %v1450_v35 = vshll.u32 %v1294_v44, 16 }
 0x31e   : > { %v1449_v52 = vrot.slane %v1447_v3, 7  ;;  %v2279_v37 = vrot.slane %v1447_v3, 4  ;;  %v1026_v58 = vpop.permute.xlu1 %1025  ;;  %v2277_v28 = vrot.slane %v1450_v35, 5  ;;  %v5574_v41 = vld [vmem:[#allocation2 + $0x1c] sm:$0xff] }
 0x31f   : > { %v1241_v13 = vmul.f32 %v1026_v58, %v917_v29  ;;  %v2588_v36 = vpop.permute.xlu0 %2587  ;;  %v8124_v3 = vld [vmem:[#allocation24_spill] sm:$0xff] }
 0x320   : > { %v1452_v34 = vor.u32 %v1450_v35, %v1449_v52  ;;  %2708 = vst.msk [vmem:[#allocation2 + $0xd0] sm:$0xf] %vm2658_vm11, %v2588_v36  ;;  %v2278_v61 = vsel %vm6048_vm5, %v2276_v54, %v2277_v28  ;;  %v2280_v24 = vor.u32 %v2279_v37, %v2277_v28  ;;  %v1454_v60 = vrot.slane %v1449_v52, 4 }
 0x321   : > { %2022 = vrot.lane.b32.xlu0 %v1294_v44, %s5692_s11  ;;  %v1295_v57 = vpack.c.bf16 %v1241_v13, %v1241_v13  ;;  %2511 = vrot.lane.b32.xlu2 %v2278_v61, %s5693_s17  ;;  %v807_v35 = vadd.f32 %v7165_v2, %v8124_v3  ;;  %v5600_v3 = vld [vmem:[#allocation2 + $0x18] sm:$0xff] }
 0x322   : > { %5295 = vmatmul.msk.bf16.gmra.mxu2 %vm2914_vm13, %v5574_v41  ;;  %v1453_v1 = vsel %vm6243_vm8, %v1445_v59, %v1452_v34  ;;  %v2281_v33 = vrot.slane %v2280_v24, 4  ;;  %v8125_v24 = vld [vmem:[#allocation26_spill] sm:$0xff] }
 0x323   : > { %v1456_v9 = vshrl.u32 %v1295_v57, 16  ;;  %v1459_v5 = vshll.u32 %v1295_v57, 16  ;;  %1897 = vst.msk [vmem:[#allocation2 + $0x3c] sm:$0xf] %vm1879_vm9, %v1453_v1  ;;  %v919_v28 = vmax.f32 %v807_v35, 0.0  ;;  %v810_v1 = vadd.f32 %v7165_v2, %v8125_v24  ;;  %v8126_v35 = vld [vmem:[#allocation28_spill] sm:$0xff] }
 0x325   : > { %v1458_v48 = vrot.slane %v1456_v9, 7  ;;  %v2284_v15 = vrot.slane %v1456_v9, 4  ;;  %v2013_v47 = vpop.permute.xlu2 %2012  ;;  %v2282_v27 = vrot.slane %v1459_v5, 5  ;;  %v7196_v9 = vpop.f32.mrf.mxu3 }
 0x326   : > { %2168 = vst.msk [vmem:[#allocation2 + $0x28] sm:$0xf] %vm2160_vm10, %v2013_v47  ;;  %v1031_v38 = vpop.permute.xlu1 %1030 }
 0x327   : > { %v1461_v11 = vor.u32 %v1459_v5, %v1458_v48  ;;  %v1242_v46 = vmul.f32 %v1031_v38, %v918_v14  ;;  %v2011_v12 = vpop.permute.xlu0 %2010  ;;  %v2283_v56 = vsel %vm6048_vm5, %v2281_v33, %v2282_v27  ;;  %v5570_v44 = vld [vmem:[#allocation2 + $0xd0] sm:$0xff]  ;;  %v2285_v37 = vor.u32 %v2284_v15, %v2282_v27 }
 0x328   : > { %2167 = vst.msk [vmem:[#allocation2 + $0x24] sm:$0xf] %vm2160_vm10, %v2011_v12  ;;  %5178 = vmatmul.msk.bf16.gmra.mxu3 %vm2914_vm13, %v5570_v44  ;;  %v920_v27 = vmax.f32 %v810_v1, 0.0 }
 0x329   : > { %2513 = vrot.lane.b32.xlu0 %v2283_v56, %s5693_s17  ;;  %v1296_v29 = vpack.c.bf16 %v1242_v46, %v1242_v46  ;;  %2024 = vrot.lane.b32.xlu2 %v1295_v57, %s5692_s11  ;;  %v1462_v58 = vsel %vm6243_vm8, %v1454_v60, %v1461_v11  ;;  %v2286_v36 = vrot.slane %v2285_v37, 4  ;;  %v1463_v57 = vrot.slane %v1458_v48, 4 }
 0x32a   : > { %1898 = vst.msk [vmem:[#allocation2 + $0x40] sm:$0xf] %vm1879_vm9, %v1462_v58 }
 0x32b   : > { %v1465_v54 = vshrl.u32 %v1296_v29, 16  ;;  %v1468_v52 = vshll.u32 %v1296_v29, 16 }
 0x32d   : > { %v1467_v41 = vrot.slane %v1465_v54, 7  ;;  %v2289_v13 = vrot.slane %v1465_v54, 4  ;;  %v2287_v40 = vrot.slane %v1468_v52, 5 }
 0x32e   : > { %v1036_v51 = vpop.permute.xlu1 %1035 }
 0x32f   : > { %v1470_v34 = vor.u32 %v1468_v52, %v1467_v41  ;;  %v1243_v61 = vmul.f32 %v1036_v51, %v919_v28  ;;  %v2288_v59 = vsel %vm6048_vm5, %v2286_v36, %v2287_v40  ;;  %v2290_v14 = vor.u32 %v2289_v13, %v2287_v40  ;;  %v7210_v28 = vpop.f32.mrf.mxu3 }
 0x330   : > { %v1472_v37 = vrot.slane %v1467_v41, 4 }
 0x331   : > { %2026 = vrot.lane.b32.xlu0 %v1296_v29, %s5692_s11  ;;  %v1297_v5 = vpack.c.bf16 %v1243_v61, %v1243_v61  ;;  %2515 = vrot.lane.b32.xlu2 %v2288_v59, %s5693_s17  ;;  %v1471_v15 = vsel %vm6243_vm8, %v1463_v57, %v1470_v34  ;;  %v2291_v11 = vrot.slane %v2290_v14, 4  ;;  %v812_v29 = vadd.f32 %v7165_v2, %v8126_v35 }
 0x332   : > { %1899 = vst.msk [vmem:[#allocation2 + $0x44] sm:$0xf] %vm1879_vm9, %v1471_v15  ;;  %v815_v14 = vadd.f32 %v7165_v2, %v6324_v16 }
 0x333   : > { %v1474_v47 = vshrl.u32 %v1297_v5, 16  ;;  %v1477_v33 = vshll.u32 %v1297_v5, 16  ;;  %v921_v51 = vmax.f32 %v812_v29, 0.0 }
 0x334   : > { %v922_v16 = vmax.f32 %v815_v14, 0.0 }
 0x335   : > { %v1476_v48 = vrot.slane %v1474_v47, 7  ;;  %v2294_v38 = vrot.slane %v1474_v47, 4  ;;  %v2292_v46 = vrot.slane %v1477_v33, 5 }
 0x336   : > { %v1041_v12 = vpop.permute.xlu1 %1040 }
 0x337   : > { %v1479_v56 = vor.u32 %v1477_v33, %v1476_v48  ;;  %v1244_v44 = vmul.f32 %v1041_v12, %v920_v27  ;;  %v2293_v60 = vsel %vm6048_vm5, %v2291_v11, %v2292_v46  ;;  %v2295_v52 = vor.u32 %v2294_v38, %v2292_v46 }
 0x338   : > { %5434 = vmatmul.msk.bf16.vlgmr.msrb.gmra.mxu3 %vm2914_vm13, %v5600_v3  ;;  %v1481_v15 = vrot.slane %v1476_v48, 4 }
 0x339   : > { %2517 = vrot.lane.b32.xlu0 %v2293_v60, %s5693_s17  ;;  %v1298_v58 = vpack.c.bf16 %v1244_v44, %v1244_v44  ;;  %2028 = vrot.lane.b32.xlu2 %v1297_v5, %s5692_s11  ;;  %v2504_v54 = vpop.permute.xlu2 %2503  ;;  %v1480_v13 = vsel %vm6243_vm8, %v1472_v37, %v1479_v56  ;;  %v2296_v61 = vrot.slane %v2295_v52, 4  ;;  %v7227_v56 = vpop.f32.mrf.mxu3  ;;  %v817_v52 = vadd.f32 %v7165_v2, %v6393_v25 }
 0x33a   : > { %2666 = vst.msk [vmem:[#allocation2 + $0x28] sm:$0xf] %vm2658_vm11, %v2504_v54 }
 0x33b   : > { %v1483_v36 = vshrl.u32 %v1298_v58, 16  ;;  %v1486_v40 = vshll.u32 %v1298_v58, 16  ;;  %1900 = vst.msk [vmem:[#allocation2 + $0x48] sm:$0xf] %vm1879_vm9, %v1480_v13  ;;  %v923_v25 = vmax.f32 %v817_v52, 0.0 }
 0x33d   : > { %v1485_v41 = vrot.slane %v1483_v36, 7  ;;  %v2299_v34 = vrot.slane %v1483_v36, 4  ;;  %v2297_v59 = vrot.slane %v1486_v40, 5 }
 0x33e   : > { %v1046_v57 = vpop.permute.xlu1 %1045 }
 0x33f   : > { %v1488_v24 = vor.u32 %v1486_v40, %v1485_v41  ;;  %v1245_v1 = vmul.f32 %v1046_v57, %v921_v51  ;;  %v2298_v5 = vsel %vm6048_vm5, %v2296_v61, %v2297_v59  ;;  %v2300_v27 = vor.u32 %v2299_v34, %v2297_v59 }
 0x340   : > { %v1490_v54 = vrot.slane %v1485_v41, 4 }
 0x341   : > { %2030 = vrot.lane.b32.xlu0 %v1298_v58, %s5692_s11  ;;  %v1299_v47 = vpack.c.bf16 %v1245_v1, %v1245_v1  ;;  %2519 = vrot.lane.b32.xlu2 %v2298_v5, %s5693_s17  ;;  %v2017_v33 = vpop.permute.xlu2 %2016  ;;  %v1489_v11 = vsel %vm6243_vm8, %v1481_v15, %v1488_v24  ;;  %v2301_v60 = vrot.slane %v2300_v27, 4 }
 0x342   : > { %2170 = vst.msk [vmem:[#allocation2 + $0x30] sm:$0xf] %vm2160_vm10, %v2017_v33  ;;  %v2502_v38 = vpop.permute.xlu0 %2501 }
 0x343   : > { %v1492_v46 = vshrl.u32 %v1299_v47, 16  ;;  %v1495_v12 = vshll.u32 %v1299_v47, 16  ;;  %2665 = vst.msk [vmem:[#allocation2 + $0x24] sm:$0xf] %vm2658_vm11, %v2502_v38  ;;  %2032 = vrot.lane.b32.xlu1 %v1299_v47, %s5692_s11  ;;  %v7244_v47 = vpop.f32.mrf.mxu3 }
 0x344   : > { %1901 = vst.msk [vmem:[#allocation2 + $0x4c] sm:$0xf] %vm1879_vm9, %v1489_v11 }
 0x345   : > { %v1494_v48 = vrot.slane %v1492_v46, 7  ;;  %v2304_v44 = vrot.slane %v1492_v46, 4  ;;  %v2302_v3 = vrot.slane %v1495_v12, 5 }
 0x346   : > { %v1051_v35 = vpop.permute.xlu1 %1050 }
 0x347   : > { %v1497_v29 = vor.u32 %v1495_v12, %v1494_v48  ;;  %v1246_v37 = vmul.f32 %v1051_v35, %v922_v16  ;;  %v2303_v58 = vsel %vm6048_vm5, %v2301_v60, %v2302_v3  ;;  %v2305_v36 = vor.u32 %v2304_v44, %v2302_v3 }
 0x348   : > { %v1499_v46 = vrot.slane %v1494_v48, 4  ;;  %v820_v12 = vadd.f32 %v7165_v2, %v6453_v26 }
 0x349   : > { %2521 = vrot.lane.b32.xlu0 %v2303_v58, %s5693_s17  ;;  %v1300_v13 = vpack.c.bf16 %v1246_v37, %v1246_v37  ;;  %v1498_v40 = vsel %vm6243_vm8, %v1490_v54, %v1497_v29  ;;  %v2306_v14 = vrot.slane %v2305_v36, 4 }
 0x34a   : > { %v2508_v51 = vpop.permute.xlu2 %2507  ;;  %v5548_v34 = vld [vmem:[#allocation2 + $0x20] sm:$0xff]  ;;  %1902 = vst.msk [vmem:[#allocation2 + $0x50] sm:$0xf] %vm1879_vm9, %v1498_v40  ;;  %v924_v29 = vmax.f32 %v820_v12, 0.0  ;;  %v825_v12 = vadd.f32 %v7165_v2, %v6461_v17 }
 0x34b   : > { %v5575_v61 = vld [vmem:[#allocation2 + $0x24] sm:$0xff]  ;;  %v1501_v57 = vshrl.u32 %v1300_v13, 16  ;;  %v1504_v24 = vshll.u32 %v1300_v13, 16  ;;  %2668 = vst.msk [vmem:[#allocation2 + $0x30] sm:$0xf] %vm2658_vm11, %v2508_v51  ;;  %2034 = vrot.lane.b32.xlu2 %v1300_v13, %s5692_s11  ;;  %5156 = vmatmul.msk.bf16.gmra.mxu1 %vm2914_vm13, %v5548_v34  ;;  %v822_v51 = vadd.f32 %v7165_v2, %v6459_v30  ;;  %v7259_v34 = vpop.f32.mrf.mxu3 }
 0x34c   : > { %v5601_v59 = vld [vmem:[#allocation2 + $0x20] sm:$0xff]  ;;  %v2015_v41 = vpop.permute.xlu0 %2014  ;;  %5296 = vmatmul.msk.bf16.gmra.mxu2 %vm2914_vm13, %v5575_v61  ;;  %v926_v17 = vmax.f32 %v825_v12, 0.0 }
 0x34d   : > { %v1503_v1 = vrot.slane %v1501_v57, 7  ;;  %v2309_v5 = vrot.slane %v1501_v57, 4  ;;  %2169 = vst.msk [vmem:[#allocation2 + $0x2c] sm:$0xf] %vm2160_vm10, %v2015_v41  ;;  %5435 = vmatmul.msk.bf16.gmra.mxu3 %vm2914_vm13, %v5601_v59  ;;  %v2307_v15 = vrot.slane %v1504_v24, 5 }
 0x34e   : > { %v1056_v33 = vpop.permute.xlu1 %1055 }
 0x34f   : > { %v1506_v27 = vor.u32 %v1504_v24, %v1503_v1  ;;  %v1247_v38 = vmul.f32 %v1056_v33, %v923_v25  ;;  %v2308_v11 = vsel %vm6048_vm5, %v2306_v14, %v2307_v15  ;;  %v2310_v44 = vor.u32 %v2309_v5, %v2307_v15 }
 0x350   : > { %v1508_v40 = vrot.slane %v1503_v1, 4  ;;  %v925_v1 = vmax.f32 %v822_v51, 0.0 }
 0x351   : > { %2523 = vrot.lane.b32.xlu0 %v2308_v11, %s5693_s17  ;;  %v1301_v16 = vpack.c.bf16 %v1247_v38, %v1247_v38  ;;  %v1507_v60 = vsel %vm6243_vm8, %v1499_v46, %v1506_v27  ;;  %v2311_v48 = vrot.slane %v2310_v44, 4 }
 0x352   : > { %1903 = vst.msk [vmem:[#allocation2 + $0x54] sm:$0xf] %vm1879_vm9, %v1507_v60 }
 0x353   : > { %v1510_v3 = vshrl.u32 %v1301_v16, 16  ;;  %v1513_v35 = vshll.u32 %v1301_v16, 16  ;;  %2036 = vrot.lane.b32.xlu2 %v1301_v16, %s5692_s11 }
 0x355   : > { %v1512_v37 = vrot.slane %v1510_v3, 7  ;;  %v2314_v58 = vrot.slane %v1510_v3, 4  ;;  %v2312_v54 = vrot.slane %v1513_v35, 5  ;;  %v7274_v3 = vpop.f32.mrf.mxu3 }
 0x356   : > { %v1061_v52 = vpop.permute.xlu1 %1060 }
 0x357   : > { %v1515_v26 = vor.u32 %v1513_v35, %v1512_v37  ;;  %v1248_v13 = vmul.f32 %v1061_v52, %v924_v29  ;;  %v2313_v36 = vsel %vm6048_vm5, %v2311_v48, %v2312_v54  ;;  %v2315_v59 = vor.u32 %v2314_v58, %v2312_v54 }
 0x358   : > { %2525 = vrot.lane.b32.xlu1 %v2313_v36, %s5693_s17  ;;  %v1517_v46 = vrot.slane %v1512_v37, 4 }
 0x359   : > { %v1302_v61 = vpack.c.bf16 %v1248_v13, %v1248_v13  ;;  %v1516_v57 = vsel %vm6243_vm8, %v1508_v40, %v1515_v26  ;;  %v2316_v14 = vrot.slane %v2315_v59, 4 }
 0x35a   : > { %v2506_v24 = vpop.permute.xlu0 %2505  ;;  %1904 = vst.msk [vmem:[#allocation2 + $0x58] sm:$0xf] %vm1879_vm9, %v1516_v57 }
 0x35b   : > { %v1519_v25 = vshrl.u32 %v1302_v61, 16  ;;  %v1522_v41 = vshll.u32 %v1302_v61, 16  ;;  %2667 = vst.msk [vmem:[#allocation2 + $0x2c] sm:$0xf] %vm2658_vm11, %v2506_v24  ;;  %2038 = vrot.lane.b32.xlu0 %v1302_v61, %s5692_s11  ;;  %v827_v24 = vadd.f32 %v7165_v2, %v6463_v21 }
 0x35d   : > { %v1521_v30 = vrot.slane %v1519_v25, 7  ;;  %v2319_v5 = vrot.slane %v1519_v25, 4  ;;  %v2317_v15 = vrot.slane %v1522_v41, 5 }
 0x35e   : > { %v1066_v33 = vpop.permute.xlu1 %1065 }
 0x35f   : > { %v1524_v27 = vor.u32 %v1522_v41, %v1521_v30  ;;  %v1249_v38 = vmul.f32 %v1066_v33, %v925_v1  ;;  %v2318_v11 = vsel %vm6048_vm5, %v2316_v14, %v2317_v15  ;;  %v2320_v44 = vor.u32 %v2319_v5, %v2317_v15  ;;  %v7291_v33 = vpop.f32.mrf.mxu3 }
 0x360   : > { %2527 = vrot.lane.b32.xlu1 %v2318_v11, %s5693_s17  ;;  %v1526_v57 = vrot.slane %v1521_v30, 4  ;;  %v927_v15 = vmax.f32 %v827_v24, 0.0 }
 0x361   : > { %v1303_v16 = vpack.c.bf16 %v1249_v38, %v1249_v38  ;;  %v1525_v60 = vsel %vm6243_vm8, %v1517_v46, %v1524_v27  ;;  %v2321_v13 = vrot.slane %v2320_v44, 4 }
 0x362   : > { %v2019_v35 = vpop.permute.xlu0 %2018  ;;  %v5549_v29 = vld [vmem:[#allocation2 + $0x28] sm:$0xff]  ;;  %1905 = vst.msk [vmem:[#allocation2 + $0x5c] sm:$0xf] %vm1879_vm9, %v1525_v60 }
 0x363   : > { %v5576_v58 = vld [vmem:[#allocation2 + $0x2c] sm:$0xff]  ;;  %v1528_v54 = vshrl.u32 %v1303_v16, 16  ;;  %v1531_v37 = vshll.u32 %v1303_v16, 16  ;;  %2171 = vst.msk [vmem:[#allocation2 + $0x34] sm:$0xf] %vm2160_vm10, %v2019_v35  ;;  %2040 = vrot.lane.b32.xlu0 %v1303_v16, %s5692_s11  ;;  %5157 = vmatmul.msk.bf16.gmra.mxu1 %vm2914_vm13, %v5549_v29 }
 0x364   : > { %v5602_v48 = vld [vmem:[#allocation2 + $0x28] sm:$0xff]  ;;  %5297 = vmatmul.msk.bf16.gmra.mxu2 %vm2914_vm13, %v5576_v58 }
 0x365   : > { %v1530_v52 = vrot.slane %v1528_v54, 7  ;;  %v2324_v26 = vrot.slane %v1528_v54, 4  ;;  %5436 = vmatmul.msk.bf16.gmra.mxu3 %vm2914_vm13, %v5602_v48  ;;  %v2322_v36 = vrot.slane %v1531_v37, 5 }
 0x366   : > { %v1071_v40 = vpop.permute.xlu1 %1070 }
 0x367   : > { %v1533_v51 = vor.u32 %v1531_v37, %v1530_v52  ;;  %v1250_v61 = vmul.f32 %v1071_v40, %v926_v17  ;;  %v2323_v59 = vsel %vm6048_vm5, %v2321_v13, %v2322_v36  ;;  %v2325_v41 = vor.u32 %v2324_v26, %v2322_v36  ;;  %v7301_v36 = vpop.f32.mrf.mxu3 }
 0x368   : > { %2529 = vrot.lane.b32.xlu2 %v2323_v59, %s5693_s17  ;;  %v1535_v60 = vrot.slane %v1530_v52, 4  ;;  %v8127_v52 = vshll.u32 %v6467_v0, 16 }
 0x369   : > { %v1304_v25 = vpack.c.bf16 %v1250_v61, %v1250_v61  ;;  %v1534_v1 = vsel %vm6243_vm8, %v1526_v57, %v1533_v51  ;;  %v2326_v11 = vrot.slane %v2325_v41, 4 }
 0x36a   : > { %1906 = vst.msk [vmem:[#allocation2 + $0x60] sm:$0xf] %vm1879_vm9, %v1534_v1  ;;  %v1560_v40 = vor.u32 %v8127_v52, %v6482_v18  ;;  %v8128_v1 = vsel %vm6048_vm5, %v6493_v43, %v6485_v62  ;;  %v533_v43 = vld [vmem:[%s8020_s1 + $0x1a8] sm:$0xff] }
 0x36b   : > { %v1537_v5 = vshrl.u32 %v1304_v25, 16  ;;  %v1540_v14 = vshll.u32 %v1304_v25, 16  ;;  %2042 = vrot.lane.b32.xlu1 %v1304_v25, %s5692_s11 }
 0x36d   : > { %v1539_v30 = vrot.slane %v1537_v5, 7  ;;  %v2327_v27 = vrot.slane %v1540_v14, 5  ;;  %v2329_v38 = vrot.slane %v1537_v5, 4 }
 0x36e   : > { %v2021_v21 = vpop.permute.xlu2 %2020  ;;  %v1076_v46 = vpop.permute.xlu1 %1075 }
 0x36f   : > { %2172 = vst.msk [vmem:[#allocation2 + $0x38] sm:$0xf] %vm2160_vm10, %v2021_v21  ;;  %v1542_v12 = vor.u32 %v1540_v14, %v1539_v30  ;;  %v1251_v16 = vmul.f32 %v1076_v46, %v927_v15  ;;  %v2328_v44 = vsel %vm6048_vm5, %v2326_v11, %v2327_v27  ;;  %v2330_v29 = vor.u32 %v2329_v38, %v2327_v27  ;;  %v7330_v15 = vpop.f32.mrf.mxu3 }
 0x370   : > { %2531 = vrot.lane.b32.xlu2 %v2328_v44, %s5693_s17  ;;  %v1544_v51 = vrot.slane %v1539_v30, 4 }
 0x371   : > { %v1305_v35 = vpack.c.bf16 %v1251_v16, %v1251_v16  ;;  %v1543_v58 = vsel %vm6243_vm8, %v1535_v60, %v1542_v12  ;;  %v2331_v13 = vrot.slane %v2330_v29, 4  ;;  %v7354_v29 = vpop.f32.mrf.mxu2 }
 0x372   : > { %1907 = vst.msk [vmem:[#allocation2 + $0x64] sm:$0xf] %vm1879_vm9, %v1543_v58 }
 0x373   : > { %v1546_v48 = vshrl.u32 %v1305_v35, 16  ;;  %v1549_v54 = vshll.u32 %v1305_v35, 16  ;;  %2044 = vrot.lane.b32.xlu1 %v1305_v35, %s5692_s11  ;;  %v3009_v35 = vpop.f32.mrf.mxu1 }
 0x375   : > { %v1548_v37 = vrot.slane %v1546_v48, 7  ;;  %v2332_v17 = vrot.slane %v1549_v54, 5  ;;  %v2334_v26 = vrot.slane %v1546_v48, 4 }
 0x377   : > { %v1551_v61 = vor.u32 %v1549_v54, %v1548_v37  ;;  %v2333_v59 = vsel %vm6048_vm5, %v2331_v13, %v2332_v17  ;;  %v2335_v57 = vor.u32 %v2334_v26, %v2332_v17  ;;  %v1553_v24 = vrot.slane %v1548_v37, 4  ;;  %v7339_v30 = vpop.f32.mrf.mxu3 }
 0x378   : > { %2046 = vrot.lane.b32.xlu2 %v6467_v0, %s5692_s11  ;;  %2533 = vrot.lane.b32.xlu0 %v2333_v59, %s5693_s17  ;;  %v532_v0 = vld [vmem:[%s8020_s1 + $0x1a0] sm:$0xff] }
 0x379   : > { %v1561_v25 = vsel %vm6243_vm8, %v1553_v24, %v1560_v40  ;;  %v1552_v41 = vsel %vm6243_vm8, %v1544_v51, %v1551_v61  ;;  %v2336_v5 = vrot.slane %v2335_v57, 4  ;;  %v7363_v40 = vpop.f32.mrf.mxu2 }
 0x37a   : > { %1909 = vst.msk [vmem:[#allocation2 + $0x6c] sm:$0xf] %vm1879_vm9, %v1561_v25 }
 0x37b   : > { %v2512_v18 = vpop.permute.xlu2 %2511  ;;  %2537 = vrot.lane.b32.xlu1 %v8128_v1, %s5693_s17  ;;  %1908 = vst.msk [vmem:[#allocation2 + $0x68] sm:$0xf] %vm1879_vm9, %v1552_v41  ;;  %v2338_v14 = vsel %vm6048_vm5, %v2336_v5, %v6478_v39  ;;  %v3011_v13 = vpop.f32.mrf.mxu1 }
 0x37c   : > { %2670 = vst.msk [vmem:[#allocation2 + $0x38] sm:$0xf] %vm2658_vm11, %v2512_v18 }
 0x37f   : > { %v7343_v38 = vpop.f32.mrf.mxu3 }
 0x380   : > { %1220 = vperm.xlu2 %5645, %v532_v0   ;;  %2535 = vrot.lane.b32.xlu0 %v2338_v14, %s5693_s17  ;;  %v7379_v14 = vld [vmem:[%s8024_s5] ss:$0 sm:$0xff] }
 0x383   : > { %v2025_v62 = vpop.permute.xlu2 %2024  ;;  %2100 = vrot.lane.b32.xlu1 %v6955_v10, %s5692_s11  ;;  %v3014_v41 = vpop.f32.mrf.mxu1 }
 0x384   : > { %2174 = vst.msk [vmem:[#allocation2 + $0x40] sm:$0xf] %vm2160_vm10, %v2025_v62 }
 0x385   : > { %v3491_v1 = vpop.f32.mrf.mxu2 }
 0x388   : > { %1225 = vperm.xlu0 %5643, %v533_v43   ;;  %v3147_v43 = vadd.f32 %v7379_v14, %v3009_v35 }
 0x38b   : > { %v2510_v27 = vpop.permute.xlu0 %2509  ;;  %v2516_v39 = vpop.permute.xlu2 %2515 }
 0x38c   : > { %2669 = vst.msk [vmem:[#allocation2 + $0x34] sm:$0xf] %vm2658_vm11, %v2510_v27  ;;  %v3148_v27 = vadd.f32 %v7379_v14, %v3011_v13 }
 0x38d   : > { %2672 = vst.msk [vmem:[#allocation2 + $0x40] sm:$0xf] %vm2658_vm11, %v2516_v39  ;;  %v3016_v39 = vpop.f32.mrf.mxu1 }
 0x393   : > { %v2023_v21 = vpop.permute.xlu0 %2022  ;;  %v5550_v11 = vld [vmem:[#allocation2 + $0x30] sm:$0xff]  ;;  %v2029_v12 = vpop.permute.xlu2 %2028 }
 0x394   : > { %v5577_v10 = vld [vmem:[#allocation2 + $0x34] sm:$0xff]  ;;  %2173 = vst.msk [vmem:[#allocation2 + $0x3c] sm:$0xf] %vm2160_vm10, %v2023_v21  ;;  %5158 = vmatmul.msk.bf16.gmra.mxu1 %vm2914_vm13, %v5550_v11  ;;  %v7350_v16 = vpop.f32.mrf.mxu3  ;;  %v3493_v21 = vpop.f32.mrf.mxu2  ;;  %v3626_v11 = vadd.f32 %v3491_v1, %v3147_v43 }
 0x395   : > { %v5603_v46 = vld [vmem:[#allocation2 + $0x30] sm:$0xff]  ;;  %2176 = vst.msk [vmem:[#allocation2 + $0x48] sm:$0xf] %vm2160_vm10, %v2029_v12  ;;  %5298 = vmatmul.msk.bf16.gmra.mxu2 %vm2914_vm13, %v5577_v10  ;;  %v7387_v35 = vpop.f32.mrf.mxu1 }
 0x396   : > { %5437 = vmatmul.msk.bf16.gmra.mxu3 %vm2914_vm13, %v5603_v46 }
 0x39b   : > { %v2514_v44 = vpop.permute.xlu0 %2513  ;;  %v2520_v60 = vpop.permute.xlu2 %2519 }
 0x39c   : > { %2671 = vst.msk [vmem:[#allocation2 + $0x3c] sm:$0xf] %vm2658_vm11, %v2514_v44  ;;  %v7357_v17 = vpop.f32.mrf.mxu3  ;;  %v3496_v13 = vpop.f32.mrf.mxu2 }
 0x39d   : > { %2674 = vst.msk [vmem:[#allocation2 + $0x48] sm:$0xf] %vm2658_vm11, %v2520_v60  ;;  %v3627_v60 = vadd.f32 %v3493_v21, %v3148_v27  ;;  %v3021_v1 = vpop.f32.mrf.mxu1  ;;  %v3149_v27 = vadd.f32 %v7379_v14, %v3014_v41  ;;  %v900_v21 = vadd.f32 %v7165_v2, %v7354_v29 }
 0x3a3   : > { %v2027_v58 = vpop.permute.xlu0 %2026  ;;  %v5551_v48 = vld [vmem:[#allocation2 + $0x38] sm:$0xff] }
 0x3a4   : > { %v5578_v54 = vld [vmem:[#allocation2 + $0x3c] sm:$0xff]  ;;  %2175 = vst.msk [vmem:[#allocation2 + $0x44] sm:$0xf] %vm2160_vm10, %v2027_v58  ;;  %5159 = vmatmul.msk.bf16.gmra.mxu1 %vm2914_vm13, %v5551_v48 }
 0x3a5   : > { %v5604_v37 = vld [vmem:[#allocation2 + $0x38] sm:$0xff]  ;;  %5299 = vmatmul.msk.bf16.gmra.mxu2 %vm2914_vm13, %v5578_v54  ;;  %v2035_v26 = vpop.permute.xlu2 %2034 }
 0x3a6   : > { %5438 = vmatmul.msk.bf16.gmra.mxu3 %vm2914_vm13, %v5604_v37  ;;  %2179 = vst.msk [vmem:[#allocation2 + $0x54] sm:$0xf] %vm2160_vm10, %v2035_v26 }
 0x3ab   : > { %v2518_v52 = vpop.permute.xlu0 %2517  ;;  %v7366_v51 = vpop.f32.mrf.mxu3 }
 0x3ac   : > { %2673 = vst.msk [vmem:[#allocation2 + $0x44] sm:$0xf] %vm2658_vm11, %v2518_v52 }
 0x3ad   : > { %v2037_v61 = vpop.permute.xlu2 %2036 }
 0x3ae   : > { %2180 = vst.msk [vmem:[#allocation2 + $0x58] sm:$0xf] %vm2160_vm10, %v2037_v61 }
 0x3b3   : > { %v2031_v59 = vpop.permute.xlu0 %2030  ;;  %v5552_v57 = vld [vmem:[#allocation2 + $0x40] sm:$0xff]  ;;  %v7370_v18 = vpop.f32.mrf.mxu3 }
 0x3b4   : > { %v5579_v24 = vld [vmem:[#allocation2 + $0x44] sm:$0xff]  ;;  %2177 = vst.msk [vmem:[#allocation2 + $0x4c] sm:$0xf] %vm2160_vm10, %v2031_v59  ;;  %5160 = vmatmul.msk.bf16.gmra.mxu1 %vm2914_vm13, %v5552_v57 }
 0x3b5   : > { %v5605_v25 = vld [vmem:[#allocation2 + $0x40] sm:$0xff]  ;;  %5300 = vmatmul.msk.bf16.gmra.mxu2 %vm2914_vm13, %v5579_v24  ;;  %v2033_v5 = vpop.permute.xlu1 %2032 }
 0x3b6   : > { %5439 = vmatmul.msk.bf16.gmra.mxu3 %vm2914_vm13, %v5605_v25  ;;  %2178 = vst.msk [vmem:[#allocation2 + $0x50] sm:$0xf] %vm2160_vm10, %v2033_v5 }
 0x3bb   : > { %v2522_v0 = vpop.permute.xlu0 %2521  ;;  %v3970_v62 = vpop.f32.mrf.mxu3 }
 0x3bc   : > { %2675 = vst.msk [vmem:[#allocation2 + $0x4c] sm:$0xf] %vm2658_vm11, %v2522_v0  ;;  %v4105_v58 = vadd.f32 %v3970_v62, %v3626_v11  ;;  %v3498_v11 = vpop.f32.mrf.mxu2 }
 0x3be   : > { %v4159_v37 = vmax.f32 %v4105_v58, 0.0 }
 0x3c2   : > { %v2530_v10 = vpop.permute.xlu2 %2529 }
 0x3c3   : > { %v2524_v46 = vpop.permute.xlu0 %2523  ;;  %v5553_v12 = vld [vmem:[#allocation2 + $0x48] sm:$0xff]  ;;  %v3972_v48 = vpop.f32.mrf.mxu3 }
 0x3c4   : > { %v5606_v44 = vld [vmem:[#allocation2 + $0x48] sm:$0xff]  ;;  %2676 = vst.msk [vmem:[#allocation2 + $0x50] sm:$0xf] %vm2658_vm11, %v2524_v46  ;;  %5161 = vmatmul.msk.bf16.gmra.mxu1 %vm2914_vm13, %v5553_v12  ;;  %v4106_v54 = vadd.f32 %v3972_v48, %v3627_v60  ;;  %v3628_v46 = vadd.f32 %v3496_v13, %v3149_v27 }
 0x3c6   : > { %5440 = vmatmul.msk.bf16.gmra.mxu3 %vm2914_vm13, %v5606_v44  ;;  %v4160_v26 = vmax.f32 %v4106_v54, 0.0  ;;  %v956_v44 = vmax.f32 %v900_v21, 0.0 }
 0x3c8   : > { %v4213_v52 = vpack.c.bf16 %v4160_v26, %v4159_v37  ;;  %v7404_v37 = vpop.f32.mrf.mxu1 }
 0x3ca   : > { %v2526_v61 = vpop.permute.xlu1 %2525  ;;  %v2532_v59 = vpop.permute.xlu2 %2531  ;;  %5461 = vmatmul.msk.bf16.vlgmr.msrb.gmra.mxu0 %vm674_vm2, %v4213_v52 }
 0x3cb   : > { %v5580_v57 = vld [vmem:[#allocation2 + $0x4c] sm:$0xff]  ;;  %2677 = vst.msk [vmem:[#allocation2 + $0x54] sm:$0xf] %vm2658_vm11, %v2526_v61 }
 0x3cc   : > { %5301 = vmatmul.msk.bf16.gmra.mxu2 %vm2914_vm13, %v5580_v57 }
 0x3cd   : > { %v2039_v24 = vpop.permute.xlu0 %2038 }
 0x3ce   : > { %2181 = vst.msk [vmem:[#allocation2 + $0x5c] sm:$0xf] %vm2160_vm10, %v2039_v24 }
 0x3cf   : > { %2679 = vst.msk [vmem:[#allocation2 + $0x5c] sm:$0xf] %vm2658_vm11, %v2530_v10  ;;  %v3150_v10 = vadd.f32 %v7379_v14, %v3016_v39 }
 0x3d0   : > { %v3975_v25 = vpop.f32.mrf.mxu3 }
 0x3d1   : > { %v3629_v41 = vadd.f32 %v3498_v11, %v3150_v10  ;;  %v4107_v60 = vadd.f32 %v3975_v25, %v3628_v46  ;;  %v1805_v10 = vrot.slane %v6966_v50, 4  ;;  %v7424_v46 = vpop.f32.mrf.mxu1  ;;  %v3151_v50 = vadd.f32 %v7379_v14, %v7387_v35 }
 0x3d2   : > { %v2528_v5 = vpop.permute.xlu1 %2527  ;;  %v2047_v0 = vpop.permute.xlu2 %2046  ;;  %v5607_v62 = vld [vmem:[#allocation2 + $0x50] sm:$0xff] }
 0x3d3   : > { %v5554_v43 = vld [vmem:[#allocation2 + $0x50] sm:$0xff]  ;;  %2678 = vst.msk [vmem:[#allocation2 + $0x58] sm:$0xf] %vm2658_vm11, %v2528_v5  ;;  %v4161_v26 = vmax.f32 %v4107_v60, 0.0  ;;  %v3152_v60 = vadd.f32 %v7379_v14, %v3021_v1  ;;  %v902_v1 = vadd.f32 %v7165_v2, %v7363_v40 }
 0x3d4   : > { %2185 = vst.msk [vmem:[#allocation2 + $0x6c] sm:$0xf] %vm2160_vm10, %v2047_v0  ;;  %5162 = vmatmul.msk.bf16.gmra.mxu1 %vm2914_vm13, %v5554_v43 }
 0x3d5   : > { %v2041_v12 = vpop.permute.xlu0 %2040 }
 0x3d6   : > { %5441 = vmatmul.msk.bf16.gmra.mxu3 %vm2914_vm13, %v5607_v62  ;;  %2182 = vst.msk [vmem:[#allocation2 + $0x60] sm:$0xf] %vm2160_vm10, %v2041_v12  ;;  %v2476_v62 = vrot.slane %v2475_v7, 4 }
 0x3d7   : > { %2680 = vst.msk [vmem:[#allocation2 + $0x60] sm:$0xf] %vm2658_vm11, %v2532_v59  ;;  %v3501_v59 = vpop.f32.mrf.mxu2 }
 0x3d8   : > { %v3977_v29 = vpop.f32.mrf.mxu3 }
 0x3d9   : > { %v4108_v58 = vadd.f32 %v3977_v29, %v3629_v41  ;;  %v3630_v29 = vadd.f32 %v3501_v59, %v3151_v50 }
 0x3da   : > { %v1221_v48 = vpop.permute.xlu2 %1220  ;;  %v5581_v54 = vld [vmem:[#allocation2 + $0x54] sm:$0xff] }
 0x3db   : > { %v4162_v52 = vmax.f32 %v4108_v58, 0.0  ;;  %v1280_v39 = vmul.f32 %v1221_v48, %v956_v44  ;;  %v5555_v43 = vld [vmem:[#allocation2 + $0x58] sm:$0xff]  ;;  %v7436_v58 = vpop.f32.mrf.mxu1 }
 0x3dc   : > { %5302 = vmatmul.msk.bf16.gmra.mxu2 %vm2914_vm13, %v5581_v54  ;;  %v5608_v11 = vld [vmem:[#allocation2 + $0x58] sm:$0xff] }
 0x3dd   : > { %v4214_v13 = vpack.c.bf16 %v4162_v52, %v4161_v26  ;;  %v1334_v61 = vpack.c.bf16 %v1280_v39, %v1280_v39  ;;  %v2043_v57 = vpop.permute.xlu1 %2042 }
 0x3de   : > { %2183 = vst.msk [vmem:[#allocation2 + $0x64] sm:$0xf] %vm2160_vm10, %v2043_v57  ;;  %v5582_v44 = vld [vmem:[#allocation2 + $0x5c] sm:$0xff] }
 0x3df   : > { %v1807_v24 = vshrl.u32 %v1334_v61, 16  ;;  %v1810_v25 = vshll.u32 %v1334_v61, 16  ;;  %2102 = vrot.lane.b32.xlu2 %v1334_v61, %s5692_s11  ;;  %5462 = vmatmul.msk.bf16.gmra.mxu0 %vm674_vm2, %v4214_v13  ;;  %v3503_v41 = vpop.f32.mrf.mxu2 }
 0x3e0   : > { %v3631_v54 = vadd.f32 %v3503_v41, %v3152_v60 }
 0x3e1   : > { %v7410_v5 = vrot.slane %v1807_v24, 7  ;;  %v7412_v0 = vrot.slane %v1810_v25, 5 }
 0x3e3   : > { %v1812_v27 = vor.u32 %v1810_v25, %v7410_v5  ;;  %v2478_v21 = vsel %vm6048_vm5, %v2476_v62, %v7412_v0 }
 0x3e4   : > { %2591 = vrot.lane.b32.xlu0 %v2478_v21, %s5693_s17  ;;  %5163 = vmatmul.msk.bf16.gmra.mxu1 %vm2914_vm13, %v5555_v43  ;;  %v957_v21 = vmax.f32 %v902_v1, 0.0 }
 0x3e5   : > { %v2045_v12 = vpop.permute.xlu1 %2044  ;;  %v1813_v8 = vsel %vm6243_vm8, %v1805_v10, %v1812_v27  ;;  %v7447_v27 = vpop.f32.mrf.mxu1 }
 0x3e6   : > { %5442 = vmatmul.msk.bf16.gmra.mxu3 %vm2914_vm13, %v5608_v11  ;;  %2184 = vst.msk [vmem:[#allocation2 + $0x68] sm:$0xf] %vm2160_vm10, %v2045_v12  ;;  %v2479_v11 = vrot.slane %v1807_v24, 4 }
 0x3e7   : > { %1937 = vst.msk [vmem:[#allocation2 + $0xdc] sm:$0xf] %vm1879_vm9, %v1813_v8  ;;  %v7439_v57 = vpop.f32.mrf.mxu2 }
 0x3e8   : > { %v3980_v23 = vpop.f32.mrf.mxu3  ;;  %v2480_v2 = vor.u32 %v2479_v11, %v7412_v0  ;;  %v5652_v11 = vld [vmem:[%s5760_s19] sm:$0xff] }
 0x3e9   : > { %v4109_v26 = vadd.f32 %v3980_v23, %v3630_v29 }
 0x3ea   : > { %v2534_v7 = vpop.permute.xlu0 %2533  ;;  %v2481_v24 = vrot.slane %v2480_v2, 4  ;;  %v3154_v2 = vadd.f32 %v7379_v14, %v7424_v46 }
 0x3eb   : > { %2681 = vst.msk [vmem:[#allocation2 + $0x64] sm:$0xf] %vm2658_vm11, %v2534_v7  ;;  %v4163_v25 = vmax.f32 %v4109_v26, 0.0  ;;  %v1814_v26 = vrot.slane %v7410_v5, 4 }
 0x3ec   : > { %5303 = vmatmul.msk.bf16.gmra.mxu2 %vm2914_vm13, %v5582_v44 }
 0x3ed   : > { %v2538_v48 = vpop.permute.xlu1 %2537  ;;  %v7452_v40 = vpop.f32.mrf.mxu1 }
 0x3ee   : > { %2683 = vst.msk [vmem:[#allocation2 + $0x6c] sm:$0xf] %vm2658_vm11, %v2538_v48  ;;  %v1941_v48 = vld [vmem:[#allocation2 + $0xe4] sm:$0x1] }
 0x3ef   : > { %v3508_v23 = vpop.f32.mrf.mxu2 }
 0x3f0   : > { %v3982_v52 = vpop.f32.mrf.mxu3 }
 0x3f1   : > { %v4110_v39 = vadd.f32 %v3982_v52, %v3631_v54 }
 0x3f2   : > { %v2536_v13 = vpop.permute.xlu0 %2535  ;;  %v5556_v61 = vld [vmem:[#allocation2 + $0x60] sm:$0xff] }
 0x3f3   : > { %v5609_v35 = vld [vmem:[#allocation2 + $0x60] sm:$0xff]  ;;  %v4164_v62 = vmax.f32 %v4110_v39, 0.0  ;;  %2682 = vst.msk [vmem:[#allocation2 + $0x68] sm:$0xf] %vm2658_vm11, %v2536_v13 }
 0x3f4   : > { %5164 = vmatmul.msk.bf16.gmra.mxu1 %vm2914_vm13, %v5556_v61 }
 0x3f5   : > { %v4215_v59 = vpack.c.bf16 %v4164_v62, %v4163_v25  ;;  %v2101_v43 = vpop.permute.xlu1 %2100  ;;  %v3036_v31 = vpop.f32.mrf.mxu1  ;;  %v5584_v1 = vld [vmem:[#allocation2 + $0x6c] sm:$0xff] }
 0x3f6   : > { %5443 = vmatmul.msk.bf16.gmra.mxu3 %vm2914_vm13, %v5609_v35  ;;  %2212 = vst.msk [vmem:[#allocation2 + $0xd8] sm:$0xf] %vm2160_vm10, %v2101_v43 }
 0x3f7   : > { %5463 = vmatmul.msk.bf16.gmra.mxu0 %vm674_vm2, %v4215_v59  ;;  %v3511_v35 = vpop.f32.mrf.mxu2 }
 0x3fa   : > { %v1226_v10 = vpop.permute.xlu0 %1225  ;;  %v5583_v12 = vld [vmem:[#allocation2 + $0x64] sm:$0xff] }
 0x3fb   : > { %v1281_v8 = vmul.f32 %v1226_v10, %v957_v21  ;;  %v5557_v54 = vld [vmem:[#allocation2 + $0x68] sm:$0xff]  ;;  %v5611_v21 = vld [vmem:[#allocation2 + $0x70] sm:$0xff] }
 0x3fc   : > { %5304 = vmatmul.msk.bf16.gmra.mxu2 %vm2914_vm13, %v5583_v12  ;;  %v5610_v13 = vld [vmem:[#allocation2 + $0x68] sm:$0xff] }
 0x3fd   : > { %v1335_v7 = vpack.c.bf16 %v1281_v8, %v1281_v8  ;;  %v5585_v8 = vld [vmem:[#allocation2 + $0x74] sm:$0xff] }
 0x3ff   : > { %v1816_v44 = vshrl.u32 %v1335_v7, 16  ;;  %v1819_v50 = vshll.u32 %v1335_v7, 16  ;;  %2104 = vrot.lane.b32.xlu2 %v1335_v7, %s5692_s11  ;;  %v3513_v59 = vpop.f32.mrf.mxu2  ;;  %v3153_v7 = vadd.f32 %v7379_v14, %v7404_v37 }
 0x401   : > { %v1818_v41 = vrot.slane %v1816_v44, 7  ;;  %v2482_v60 = vrot.slane %v1819_v50, 5  ;;  %v2484_v29 = vrot.slane %v1816_v44, 4  ;;  %v3632_v44 = vadd.f32 %v7439_v57, %v3153_v7 }
 0x403   : > { %v1821_v52 = vor.u32 %v1819_v50, %v1818_v41  ;;  %v1823_v39 = vrot.slane %v1818_v41, 4  ;;  %v2483_v0 = vsel %vm6048_vm5, %v2481_v24, %v2482_v60  ;;  %v2485_v61 = vor.u32 %v2484_v29, %v2482_v60  ;;  %vm2713_vm5 = vmand %vm2658_vm11, %vm2215_vm3 }
 0x404   : > { %2593 = vrot.lane.b32.xlu1 %v2483_v0, %s5693_s17  ;;  %5165 = vmatmul.msk.bf16.gmra.mxu1 %vm2914_vm13, %v5557_v54  ;;  %v3633_v50 = vadd.f32 %v3508_v23, %v3154_v2  ;;  %v5586_v0 = vld [vmem:[#allocation2 + $0x7c] sm:$0xff]  ;;  %vm4787_vm3 = vcmask 125952  }
 0x405   : > { %v1942_v25 = vsel %vm1940_vm12, %v1823_v39, %v1941_v48  ;;  %v2486_v62 = vrot.slane %v2485_v61, 4  ;;  %v1822_v5 = vsel %vm6243_vm8, %v1814_v26, %v1821_v52  ;;  %v5612_v52 = vld [vmem:[#allocation2 + $0x78] sm:$0xff]  ;;  %v5653_v39 = vld [vmem:[%s5760_s19 + $0x8] sm:$0xff]  ;;  %v3156_v61 = vadd.f32 %v7379_v14, %v7447_v27  ;;  %v5613_v2 = vld [vmem:[#allocation2 + $0x80] sm:$0xff] }
 0x406   : > { %5444 = vmatmul.msk.bf16.gmra.mxu3 %vm2914_vm13, %v5610_v13  ;;  %1943 = vst [vmem:[#allocation2 + $0xe4] sm:$0x1] %v1942_v25  ;;  %v3155_v13 = vadd.f32 %v7379_v14, %v7436_v58 }
 0x407   : > { %2595 = vrot.lane.b32.xlu0 %v2486_v62, %s5693_s17  ;;  %1938 = vst.msk [vmem:[#allocation2 + $0xe0] sm:$0xf] %vm1879_vm9, %v1822_v5  ;;  %v3635_v62 = vadd.f32 %v3513_v59, %v3156_v61  ;;  %v5614_v61 = vld [vmem:[#allocation2 + $0x88] sm:$0xff] }
 0x408   : > { %v3634_v25 = vadd.f32 %v3511_v35, %v3155_v13 }
 0x40c   : > { %5305 = vmatmul.msk.bf16.gmra.mxu2 %vm2914_vm13, %v5584_v1 }
 0x411   : > { %v7467_v43 = vpop.f32.mrf.mxu1 }
 0x414   : > { %5488 = vmatmul.msk.bf16.vlgmr.msrb.gmra.mxu1 %vm674_vm2, %v5652_v11 }
 0x416   : > { %5445 = vmatmul.msk.bf16.gmra.mxu3 %vm2914_vm13, %v5611_v21 }
 0x418   : > { %v3516_v42 = vpop.f32.mrf.mxu2 }
 0x419   : > { %v3985_v10 = vpop.f32.mrf.mxu3  ;;  %v7472_v12 = vpop.f32.mrf.mxu1 }
 0x41a   : > { %v4111_v41 = vadd.f32 %v3985_v10, %v3632_v44  ;;  %v5654_v44 = vld [vmem:[%s5760_s19 + $0x10] sm:$0xff] }
 0x41c   : > { %5306 = vmatmul.msk.bf16.gmra.mxu2 %vm2914_vm13, %v5585_v8  ;;  %v4165_v54 = vmax.f32 %v4111_v41, 0.0  ;;  %v3157_v41 = vadd.f32 %v7379_v14, %v7452_v40 }
 0x420   : > { %v3518_v60 = vpop.f32.mrf.mxu2 }
 0x421   : > { %v3987_v29 = vpop.f32.mrf.mxu3  ;;  %v7480_v48 = vpop.f32.mrf.mxu1 }
 0x422   : > { %v4112_v24 = vadd.f32 %v3987_v29, %v3633_v50  ;;  %v5587_v50 = vld [vmem:[#allocation2 + $0x84] sm:$0xff]  ;;  %v3158_v29 = vadd.f32 %v7379_v14, %v3036_v31 }
 0x424   : > { %v4166_v26 = vmax.f32 %v4112_v24, 0.0  ;;  %5489 = vmatmul.msk.bf16.gmra.mxu1 %vm674_vm2, %v5653_v39  ;;  %v3636_v24 = vadd.f32 %v3516_v42, %v3157_v41  ;;  %v5615_v41 = vld [vmem:[#allocation2 + $0x90] sm:$0xff] }
 0x426   : > { %v4216_v37 = vpack.c.bf16 %v4166_v26, %v4165_v54  ;;  %5446 = vmatmul.msk.bf16.gmra.mxu3 %vm2914_vm13, %v5612_v52  ;;  %v3637_v26 = vadd.f32 %v3518_v60, %v3158_v29  ;;  %v5588_v60 = vld [vmem:[#allocation2 + $0x8c] sm:$0xff]  ;;  %v5656_v29 = vld [vmem:[%s5760_s19 + $0x20] sm:$0xff] }
 0x428   : > { %5464 = vmatmul.msk.bf16.gmra.mxu0 %vm674_vm2, %v4216_v37  ;;  %v3521_v57 = vpop.f32.mrf.mxu2 }
 0x429   : > { %v3990_v46 = vpop.f32.mrf.mxu3  ;;  %v7486_v23 = vpop.f32.mrf.mxu1 }
 0x42a   : > { %v4113_v5 = vadd.f32 %v3990_v46, %v3634_v25  ;;  %v5655_v25 = vld [vmem:[%s5760_s19 + $0x18] sm:$0xff] }
 0x42c   : > { %5307 = vmatmul.msk.bf16.gmra.mxu2 %vm2914_vm13, %v5586_v0  ;;  %v4167_v10 = vmax.f32 %v4113_v5, 0.0  ;;  %v3159_v5 = vadd.f32 %v7379_v14, %v7467_v43 }
 0x430   : > { %v3523_v8 = vpop.f32.mrf.mxu2 }
 0x431   : > { %v3992_v1 = vpop.f32.mrf.mxu3  ;;  %v7493_v11 = vpop.f32.mrf.mxu1 }
 0x432   : > { %v4114_v21 = vadd.f32 %v3992_v1, %v3635_v62  ;;  %v3160_v1 = vadd.f32 %v7379_v14, %v7472_v12 }
 0x434   : > { %v4168_v7 = vmax.f32 %v4114_v21, 0.0  ;;  %5490 = vmatmul.msk.bf16.gmra.mxu1 %vm674_vm2, %v5654_v44  ;;  %v3638_v21 = vadd.f32 %v3521_v57, %v3159_v5 }
 0x436   : > { %v4217_v58 = vpack.c.bf16 %v4168_v7, %v4167_v10  ;;  %5447 = vmatmul.msk.bf16.gmra.mxu3 %vm2914_vm13, %v5613_v2  ;;  %v3639_v10 = vadd.f32 %v3523_v8, %v3160_v1 }
 0x438   : > { %5465 = vmatmul.msk.bf16.gmra.mxu0 %vm674_vm2, %v4217_v58  ;;  %v3526_v54 = vpop.f32.mrf.mxu2 }
 0x439   : > { %v3995_v27 = vpop.f32.mrf.mxu3  ;;  %v2103_v35 = vpop.permute.xlu2 %2102 }
 0x43a   : > { %v7499_v59 = vpop.f32.mrf.mxu1  ;;  %2213 = vst.msk [vmem:[#allocation2 + $0xdc] sm:$0xf] %vm2160_vm10, %v2103_v35  ;;  %v4115_v52 = vadd.f32 %v3995_v27, %v3636_v24 }
 0x43c   : > { %5308 = vmatmul.msk.bf16.gmra.mxu2 %vm2914_vm13, %v5587_v50  ;;  %v4169_v0 = vmax.f32 %v4115_v52, 0.0  ;;  %v5589_v52 = vld [vmem:[#allocation2 + $0x94] sm:$0xff] }
 0x440   : > { %v3528_v40 = vpop.f32.mrf.mxu2 }
 0x441   : > { %v3997_v39 = vpop.f32.mrf.mxu3 }
 0x442   : > { %v4116_v37 = vadd.f32 %v3997_v39, %v3637_v26  ;;  %v7506_v46 = vpop.f32.mrf.mxu1  ;;  %v3161_v39 = vadd.f32 %v7379_v14, %v7480_v48 }
 0x444   : > { %v4170_v13 = vmax.f32 %v4116_v37, 0.0  ;;  %5491 = vmatmul.msk.bf16.gmra.mxu1 %vm674_vm2, %v5655_v25  ;;  %v3162_v37 = vadd.f32 %v7379_v14, %v7486_v23 }
 0x446   : > { %v4218_v62 = vpack.c.bf16 %v4170_v13, %v4169_v0  ;;  %5448 = vmatmul.msk.bf16.gmra.mxu3 %vm2914_vm13, %v5614_v61  ;;  %v3640_v0 = vadd.f32 %v3526_v54, %v3161_v39  ;;  %v3641_v13 = vadd.f32 %v3528_v40, %v3162_v37  ;;  %v5617_v37 = vld [vmem:[#allocation2 + $0xa0] sm:$0xff] }
 0x448   : > { %5466 = vmatmul.msk.bf16.gmra.mxu0 %vm674_vm2, %v4218_v62 }
 0x449   : > { %v4000_v31 = vpop.f32.mrf.mxu3 }
 0x44a   : > { %v7512_v42 = vpop.f32.mrf.mxu1  ;;  %v4117_v7 = vadd.f32 %v4000_v31, %v3638_v21  ;;  %v5616_v21 = vld [vmem:[#allocation2 + $0x98] sm:$0xff] }
 0x44c   : > { %5309 = vmatmul.msk.bf16.gmra.mxu2 %vm2914_vm13, %v5588_v60  ;;  %v4171_v35 = vmax.f32 %v4117_v7, 0.0  ;;  %v5590_v7 = vld [vmem:[#allocation2 + $0x9c] sm:$0xff] }
 0x44f   : > { %v3531_v2 = vpop.f32.mrf.mxu2 }
 0x451   : > { %v4002_v44 = vpop.f32.mrf.mxu3 }
 0x452   : > { %v4118_v58 = vadd.f32 %v4002_v44, %v3639_v10  ;;  %v7519_v27 = vpop.f32.mrf.mxu1  ;;  %v5657_v10 = vld [vmem:[%s5760_s19 + $0x28] sm:$0xff]  ;;  %v3163_v44 = vadd.f32 %v7379_v14, %v7493_v11 }
 0x454   : > { %v4172_v50 = vmax.f32 %v4118_v58, 0.0  ;;  %5492 = vmatmul.msk.bf16.gmra.mxu1 %vm674_vm2, %v5656_v29  ;;  %v3164_v58 = vadd.f32 %v7379_v14, %v7499_v59 }
 0x456   : > { %v4219_v43 = vpack.c.bf16 %v4172_v50, %v4171_v35  ;;  %5449 = vmatmul.msk.bf16.gmra.mxu3 %vm2914_vm13, %v5615_v41  ;;  %v2592_v24 = vpop.permute.xlu0 %2591  ;;  %v3642_v35 = vadd.f32 %v3531_v2, %v3163_v44  ;;  %v7547_v50 = vpop.f32.mrf.mxu0 }
 0x457   : > { %2710 = vst.msk [vmem:[#allocation2 + $0xd8] sm:$0xf] %vm2658_vm11, %v2592_v24  ;;  %v3533_v12 = vpop.f32.mrf.mxu2 }
 0x458   : > { %5467 = vmatmul.msk.bf16.gmra.mxu0 %vm674_vm2, %v4219_v43  ;;  %v3643_v41 = vadd.f32 %v3533_v12, %v3164_v58 }
 0x459   : > { %v4005_v57 = vpop.f32.mrf.mxu3  ;;  %v2105_v8 = vpop.permute.xlu2 %2104 }
 0x45a   : > { %v7526_v26 = vpop.f32.mrf.mxu1  ;;  %2214 = vst.msk [vmem:[#allocation2 + $0xe0] sm:$0xf] %vm2160_vm10, %v2105_v8  ;;  %v4119_v61 = vadd.f32 %v4005_v57, %v3640_v0  ;;  %v5658_v0 = vld [vmem:[%s5760_s19 + $0x30] sm:$0xff] }
 0x45c   : > { %5310 = vmatmul.msk.bf16.gmra.mxu2 %vm2914_vm13, %v5589_v52  ;;  %v4173_v5 = vmax.f32 %v4119_v61, 0.0 }
 0x45e   : > { %v4340_v12 = vpop.f32.mrf.mxu0 }
 0x45f   : > { %v3536_v25 = vpop.f32.mrf.mxu2 }
 0x461   : > { %v4007_v62 = vpop.f32.mrf.mxu3  ;;  %v2714_v61 = vld [vmem:[#allocation2 + $0xe0] sm:$0xf] }
 0x462   : > { %v4120_v31 = vadd.f32 %v4007_v62, %v3641_v13  ;;  %v7534_v60 = vpop.f32.mrf.mxu1 }
 0x464   : > { %v4174_v1 = vmax.f32 %v4120_v31, 0.0  ;;  %5493 = vmatmul.msk.bf16.gmra.mxu1 %vm674_vm2, %v5657_v10  ;;  %v3166_v10 = vadd.f32 %v7379_v14, %v7512_v42 }
 0x466   : > { %v4220_v48 = vpack.c.bf16 %v4174_v1, %v4173_v5  ;;  %5450 = vmatmul.msk.bf16.gmra.mxu3 %vm2914_vm13, %v5616_v21  ;;  %v5591_v1 = vld [vmem:[#allocation2 + $0xa4] sm:$0xff]  ;;  %v3165_v21 = vadd.f32 %v7379_v14, %v7506_v46  ;;  %v7565_v58 = vpop.f32.mrf.mxu0  ;;  %v5659_v46 = vld [vmem:[%s5760_s19 + $0x38] sm:$0xff] }
 0x467   : > { %v3538_v23 = vpop.f32.mrf.mxu2 }
 0x468   : > { %5468 = vmatmul.msk.bf16.gmra.mxu0 %vm674_vm2, %v4220_v48  ;;  %v3644_v48 = vadd.f32 %v3536_v25, %v3165_v21 }
 0x469   : > { %v4010_v54 = vpop.f32.mrf.mxu3 }
 0x46a   : > { %v7540_v40 = vpop.f32.mrf.mxu1  ;;  %v4121_v29 = vadd.f32 %v4010_v54, %v3642_v35  ;;  %v3645_v54 = vadd.f32 %v3538_v23, %v3166_v10 }
 0x46c   : > { %5311 = vmatmul.msk.bf16.gmra.mxu2 %vm2914_vm13, %v5590_v7  ;;  %v4175_v52 = vmax.f32 %v4121_v29, 0.0 }
 0x46f   : > { %v3541_v43 = vpop.f32.mrf.mxu2 }
 0x471   : > { %v4012_v24 = vpop.f32.mrf.mxu3 }
 0x472   : > { %v4122_v57 = vadd.f32 %v4012_v24, %v3643_v41  ;;  %v7549_v8 = vpop.f32.mrf.mxu1 }
 0x474   : > { %v4176_v39 = vmax.f32 %v4122_v57, 0.0  ;;  %5494 = vmatmul.msk.bf16.gmra.mxu1 %vm674_vm2, %v5658_v0  ;;  %v5592_v0 = vld [vmem:[#allocation2 + $0xac] sm:$0xff] }
 0x476   : > { %v4221_v11 = vpack.c.bf16 %v4176_v39, %v4175_v52  ;;  %5451 = vmatmul.msk.bf16.gmra.mxu3 %vm2914_vm13, %v5617_v37  ;;  %v2594_v59 = vpop.permute.xlu1 %2593  ;;  %v5618_v52 = vld [vmem:[#allocation2 + $0xa8] sm:$0xff]  ;;  %v7575_v37 = vpop.f32.mrf.mxu0 }
 0x477   : > { %2711 = vst.msk [vmem:[#allocation2 + $0xdc] sm:$0xf] %vm2658_vm11, %v2594_v59  ;;  %v3543_v2 = vpop.f32.mrf.mxu2  ;;  %v3168_v59 = vadd.f32 %v7379_v14, %v7526_v26 }
 0x478   : > { %5469 = vmatmul.msk.bf16.gmra.mxu0 %vm674_vm2, %v4221_v11  ;;  %v3167_v11 = vadd.f32 %v7379_v14, %v7519_v27 }
 0x479   : > { %v4015_v13 = vpop.f32.mrf.mxu3  ;;  %v2596_v62 = vpop.permute.xlu0 %2595 }
 0x47a   : > { %v7558_v31 = vpop.f32.mrf.mxu1  ;;  %v2715_v5 = vsel %vm2713_vm5, %v2596_v62, %v2714_v61  ;;  %v4123_v7 = vadd.f32 %v4015_v13, %v3644_v48  ;;  %v3646_v13 = vadd.f32 %v3541_v43, %v3167_v11  ;;  %v7585_v61 = vld [vmem:[%s8026_s7] ss:$0 sm:$0xff] }
 0x47b   : > { %2716 = vst [vmem:[#allocation2 + $0xe0] sm:$0xf] %v2715_v5  ;;  %v7590_v62 = vld [vmem:[%s8028_s9] ss:$0 sm:$0xff]  ;;  %v3647_v5 = vadd.f32 %v3543_v2, %v3168_v59  ;;  %v4339_v26 = vadd.f32 %v7585_v61, %v7547_v50  ;;  %v5593_v59 = vld [vmem:[#allocation2 + $0xb4] sm:$0xff] }
 0x47c   : > { %5312 = vmatmul.msk.bf16.gmra.mxu2 %vm2914_vm13, %v5591_v1  ;;  %v4177_v24 = vmax.f32 %v4123_v7, 0.0 }
 0x47e   : > { %v7596_v43 = vpop.f32.mrf.mxu0 }
 0x47f   : > { %v3546_v44 = vpop.f32.mrf.mxu2 }
 0x481   : > { %v4017_v35 = vpop.f32.mrf.mxu3 }
 0x482   : > { %v4124_v41 = vadd.f32 %v4017_v35, %v3645_v54  ;;  %v7567_v29 = vpop.f32.mrf.mxu1 }
 0x484   : > { %v4178_v57 = vmax.f32 %v4124_v41, 0.0  ;;  %5495 = vmatmul.msk.bf16.gmra.mxu1 %vm674_vm2, %v5659_v46  ;;  %v5619_v41 = vld [vmem:[#allocation2 + $0xb0] sm:$0xff] }
 0x486   : > { %v4222_v39 = vpack.c.bf16 %v4178_v57, %v4177_v24  ;;  %5452 = vmatmul.msk.bf16.gmra.mxu3 %vm2914_vm13, %v5618_v52  ;;  %v5660_v57 = vld [vmem:[%s5760_s19 + $0x40] sm:$0xff] }
 0x487   : > { %v3548_v42 = vpop.f32.mrf.mxu2 }
 0x488   : > { %5470 = vmatmul.msk.bf16.gmra.mxu0 %vm674_vm2, %v4222_v39 }
 0x489   : > { %v4020_v25 = vpop.f32.mrf.mxu3 }
 0x48a   : > { %v7573_v23 = vpop.f32.mrf.mxu1  ;;  %v4125_v1 = vadd.f32 %v4020_v25, %v3646_v13  ;;  %v3169_v13 = vadd.f32 %v7379_v14, %v7534_v60  ;;  %v4344_v60 = vadd.f32 %v7585_v61, %v7565_v58 }
 0x48c   : > { %5313 = vmatmul.msk.bf16.gmra.mxu2 %vm2914_vm13, %v5592_v0  ;;  %v4179_v7 = vmax.f32 %v4125_v1, 0.0  ;;  %v4341_v0 = vadd.f32 %v7585_v61, %v4340_v12 }
 0x48f   : > { %v7592_v27 = vpop.f32.mrf.mxu2 }
 0x491   : > { %v4022_v21 = vpop.f32.mrf.mxu3 }
 0x492   : > { %v4126_v10 = vadd.f32 %v4022_v21, %v3647_v5  ;;  %v4490_v48 = vpop.f32.mrf.mxu1  ;;  %v7609_v5 = vpop.f32.mrf.mxu0  ;;  %v3170_v21 = vadd.f32 %v7379_v14, %v7540_v40 }
 0x493   : > { %v4491_v54 = vadd.f32 %v7590_v62, %v4490_v48 }
 0x494   : > { %v4180_v35 = vmax.f32 %v4126_v10, 0.0  ;;  %5496 = vmatmul.msk.bf16.gmra.mxu1 %vm674_vm2, %v5660_v57  ;;  %v3648_v10 = vadd.f32 %v3546_v44, %v3169_v13  ;;  %v3649_v12 = vadd.f32 %v3548_v42, %v3170_v21  ;;  %v5620_v44 = vld [vmem:[#allocation2 + $0xb8] sm:$0xff]  ;;  %v4346_v13 = vadd.f32 %v7585_v61, %v7575_v37 }
 0x495   : > { %v4625_v24 = vadd.f32 %v4491_v54, %v4339_v26  ;;  %v5594_v21 = vld [vmem:[#allocation2 + $0xbc] sm:$0xff] }
 0x496   : > { %v4223_v2 = vpack.c.bf16 %v4180_v35, %v4179_v7  ;;  %5453 = vmatmul.msk.bf16.gmra.mxu3 %vm2914_vm13, %v5619_v41 }
 0x497   : > { %v4679_v52 = vmax.f32 %v4625_v24, 0.0  ;;  %v3553_v50 = vpop.f32.mrf.mxu2 }
 0x498   : > { %5471 = vmatmul.msk.bf16.gmra.mxu0 %vm674_vm2, %v4223_v2 }
 0x499   : > { %v4733_v46 = vpack.c.bf16 %v4679_v52, %v4679_v52  ;;  %v4025_v39 = vpop.f32.mrf.mxu3 }
 0x49a   : > { %v4492_v25 = vpop.f32.mrf.mxu1  ;;  %v4127_v26 = vadd.f32 %v4025_v39, %v3648_v10  ;;  %v3171_v10 = vadd.f32 %v7379_v14, %v7549_v8 }
 0x49b   : > { %4788 = vst.msk [vmem:[%s5765_s22] sm:$0xf] %vm4787_vm3, %v4733_v46  ;;  %v4493_v11 = vadd.f32 %v7590_v62, %v4492_v25  ;;  %v5661_v46 = vld [vmem:[%s5760_s19 + $0x48] sm:$0xff] }
 0x49c   : > { %5314 = vmatmul.msk.bf16.gmra.mxu2 %vm2914_vm13, %v5593_v59  ;;  %v4181_v2 = vmax.f32 %v4127_v26, 0.0  ;;  %v3172_v26 = vadd.f32 %v7379_v14, %v7558_v31 }
 0x49d   : > { %v4626_v1 = vadd.f32 %v4493_v11, %v4341_v0 }
 0x49f   : > { %v4680_v48 = vmax.f32 %v4626_v1, 0.0  ;;  %v7614_v54 = vpop.f32.mrf.mxu2 }
 0x4a1   : > { %v4734_v7 = vpack.c.bf16 %v4680_v48, %v4680_v48  ;;  %v4027_v35 = vpop.f32.mrf.mxu3 }
 0x4a2   : > { %v4128_v41 = vadd.f32 %v4027_v35, %v3649_v12  ;;  %v4495_v24 = vpop.f32.mrf.mxu1  ;;  %v3651_v35 = vadd.f32 %v3553_v50, %v3172_v26 }
 0x4a3   : > { %4789 = vst.msk [vmem:[%s5765_s22 + $0x4] sm:$0xf] %vm4787_vm3, %v4734_v7  ;;  %v4496_v57 = vadd.f32 %v7590_v62, %v4495_v24  ;;  %v3650_v7 = vadd.f32 %v7592_v27, %v3171_v10  ;;  %v5595_v10 = vld [vmem:[#allocation2 + $0xc4] sm:$0xff] }
 0x4a4   : > { %v4182_v40 = vmax.f32 %v4128_v41, 0.0  ;;  %5497 = vmatmul.msk.bf16.gmra.mxu1 %vm674_vm2, %v5661_v46 }
 0x4a5   : > { %v4627_v52 = vadd.f32 %v4496_v57, %v4344_v60  ;;  %v7621_v42 = vpop.f32.mrf.mxu0 }
 0x4a6   : > { %v4224_v39 = vpack.c.bf16 %v4182_v40, %v4181_v2  ;;  %5454 = vmatmul.msk.bf16.gmra.mxu3 %vm2914_vm13, %v5620_v44  ;;  %v4349_v40 = vadd.f32 %v7585_v61, %v7596_v43 }
 0x4a7   : > { %v4681_v25 = vmax.f32 %v4627_v52, 0.0  ;;  %v3558_v58 = vpop.f32.mrf.mxu2  ;;  %v5621_v52 = vld [vmem:[#allocation2 + $0xc0] sm:$0xff] }
 0x4a8   : > { %5472 = vmatmul.msk.bf16.gmra.mxu0 %vm674_vm2, %v4224_v39  ;;  %v5662_v39 = vld [vmem:[%s5760_s19 + $0x50] sm:$0xff] }
 0x4a9   : > { %v4735_v0 = vpack.c.bf16 %v4681_v25, %v4681_v25  ;;  %v4030_v11 = vpop.f32.mrf.mxu3 }
 0x4aa   : > { %v4497_v59 = vpop.f32.mrf.mxu1  ;;  %v4129_v41 = vadd.f32 %v4030_v11, %v3650_v7 }
 0x4ab   : > { %4790 = vst.msk [vmem:[%s5765_s22 + $0x8] sm:$0xf] %vm4787_vm3, %v4735_v0  ;;  %v4498_v1 = vadd.f32 %v7590_v62, %v4497_v59 }
 0x4ac   : > { %5315 = vmatmul.msk.bf16.gmra.mxu2 %vm2914_vm13, %v5594_v21  ;;  %v4183_v31 = vmax.f32 %v4129_v41, 0.0 }
 0x4ad   : > { %v4628_v48 = vadd.f32 %v4498_v1, %v4346_v13  ;;  %v7634_v12 = vpop.f32.mrf.mxu0  ;;  %v4351_v1 = vadd.f32 %v7585_v61, %v7609_v5 }
 0x4af   : > { %v4682_v37 = vmax.f32 %v4628_v48, 0.0  ;;  %v7640_v24 = vpop.f32.mrf.mxu2  ;;  %v3173_v48 = vadd.f32 %v7379_v14, %v7567_v29 }
 0x4b1   : > { %v4736_v60 = vpack.c.bf16 %v4682_v37, %v4682_v37  ;;  %v4032_v57 = vpop.f32.mrf.mxu3  ;;  %v3174_v37 = vadd.f32 %v7379_v14, %v7573_v23 }
 0x4b2   : > { %v4130_v2 = vadd.f32 %v4032_v57, %v3651_v35  ;;  %v4500_v8 = vpop.f32.mrf.mxu1  ;;  %v3652_v35 = vadd.f32 %v7614_v54, %v3173_v48 }
 0x4b3   : > { %4791 = vst.msk [vmem:[%s5765_s22 + $0xc] sm:$0xf] %vm4787_vm3, %v4736_v60  ;;  %v4501_v44 = vadd.f32 %v7590_v62, %v4500_v8  ;;  %v3653_v41 = vadd.f32 %v3558_v58, %v3174_v37  ;;  %v3176_v37 = vadd.f32 %v7379_v14, %v7031_v19 }
 0x4b4   : > { %v4184_v27 = vmax.f32 %v4130_v2, 0.0  ;;  %5498 = vmatmul.msk.bf16.gmra.mxu1 %vm674_vm2, %v5662_v39 }
 0x4b5   : > { %v4629_v46 = vadd.f32 %v4501_v44, %v4349_v40  ;;  %v7647_v50 = vpop.f32.mrf.mxu0  ;;  %v4354_v44 = vadd.f32 %v7585_v61, %v7621_v42 }
 0x4b6   : > { %v4225_v25 = vpack.c.bf16 %v4184_v27, %v4183_v31  ;;  %5455 = vmatmul.msk.bf16.gmra.mxu3 %vm2914_vm13, %v5621_v52  ;;  %v5622_v27 = vld [vmem:[#allocation2 + $0xc8] sm:$0xff] }
 0x4b7   : > { %v4683_v0 = vmax.f32 %v4629_v46, 0.0  ;;  %v3563_v43 = vpop.f32.mrf.mxu2  ;;  %v5663_v46 = vld [vmem:[%s5760_s19 + $0x58] sm:$0xff] }
 0x4b8   : > { %5473 = vmatmul.msk.bf16.gmra.mxu0 %vm674_vm2, %v4225_v25 }
 0x4b9   : > { %v4737_v11 = vpack.c.bf16 %v4683_v0, %v4683_v0  ;;  %v4035_v59 = vpop.f32.mrf.mxu3 }
 0x4ba   : > { %v4502_v13 = vpop.f32.mrf.mxu1  ;;  %v4131_v60 = vadd.f32 %v4035_v59, %v3652_v35 }
 0x4bb   : > { %4792 = vst.msk [vmem:[%s5765_s22 + $0x10] sm:$0xf] %vm4787_vm3, %v4737_v11  ;;  %v4503_v21 = vadd.f32 %v7590_v62, %v4502_v13  ;;  %v4356_v13 = vadd.f32 %v7585_v61, %v7634_v12 }
 0x4bc   : > { %5316 = vmatmul.msk.bf16.gmra.mxu2 %vm2914_vm13, %v5595_v10  ;;  %v4185_v23 = vmax.f32 %v4131_v60, 0.0  ;;  %v3175_v10 = vadd.f32 %v7379_v14, %v7022_v4 }
 0x4bd   : > { %v4630_v26 = vadd.f32 %v4503_v21, %v4351_v1  ;;  %v7660_v7 = vpop.f32.mrf.mxu0  ;;  %v5596_v21 = vld [vmem:[#allocation2 + $0xcc] sm:$0xff] }
 0x4be   : > { %v3654_v35 = vadd.f32 %v7640_v24, %v3175_v10  ;;  %v3178_v10 = vadd.f32 %v7379_v14, %v7060_v49 }
 0x4bf   : > { %v4684_v5 = vmax.f32 %v4630_v26, 0.0  ;;  %v7666_v57 = vpop.f32.mrf.mxu2 }
 0x4c1   : > { %v4738_v2 = vpack.c.bf16 %v4684_v5, %v4684_v5  ;;  %v4037_v8 = vpop.f32.mrf.mxu3  ;;  %v3655_v5 = vadd.f32 %v3563_v43, %v3176_v37 }
 0x4c2   : > { %v4132_v40 = vadd.f32 %v4037_v8, %v3653_v41  ;;  %v4505_v29 = vpop.f32.mrf.mxu1 }
 0x4c3   : > { %4793 = vst.msk [vmem:[%s5765_s22 + $0x14] sm:$0xf] %vm4787_vm3, %v4738_v2  ;;  %v4506_v31 = vadd.f32 %v7590_v62, %v4505_v29  ;;  %v4359_v29 = vadd.f32 %v7585_v61, %v7647_v50 }
 0x4c4   : > { %v4186_v54 = vmax.f32 %v4132_v40, 0.0  ;;  %5499 = vmatmul.msk.bf16.gmra.mxu1 %vm674_vm2, %v5663_v46 }
 0x4c5   : > { %v4631_v52 = vadd.f32 %v4506_v31, %v4354_v44  ;;  %v7673_v58 = vpop.f32.mrf.mxu0  ;;  %v5623_v31 = vld [vmem:[#allocation2 + $0xd0] sm:$0xff] }
 0x4c6   : > { %v4226_v39 = vpack.c.bf16 %v4186_v54, %v4185_v23  ;;  %5456 = vmatmul.msk.bf16.gmra.mxu3 %vm2914_vm13, %v5622_v27  ;;  %v5664_v54 = vld [vmem:[%s5760_s19 + $0x60] sm:$0xff] }
 0x4c7   : > { %v4685_v25 = vmax.f32 %v4631_v52, 0.0  ;;  %v3568_v42 = vpop.f32.mrf.mxu2 }
 0x4c8   : > { %5474 = vmatmul.msk.bf16.gmra.mxu0 %vm674_vm2, %v4226_v39  ;;  %v3657_v37 = vadd.f32 %v3568_v42, %v3178_v10 }
 0x4c9   : > { %v4739_v0 = vpack.c.bf16 %v4685_v25, %v4685_v25  ;;  %v4040_v11 = vpop.f32.mrf.mxu3 }
 0x4ca   : > { %v4507_v59 = vpop.f32.mrf.mxu1  ;;  %v4133_v41 = vadd.f32 %v4040_v11, %v3654_v35 }
 0x4cb   : > { %4794 = vst.msk [vmem:[%s5765_s22 + $0x18] sm:$0xf] %vm4787_vm3, %v4739_v0  ;;  %v4508_v1 = vadd.f32 %v7590_v62, %v4507_v59  ;;  %v4361_v0 = vadd.f32 %v7585_v61, %v7660_v7  ;;  %v5597_v59 = vld [vmem:[#allocation2 + $0xd4] sm:$0xff] }
 0x4cc   : > { %5317 = vmatmul.msk.bf16.gmra.mxu2 %vm2914_vm13, %v5596_v21  ;;  %v4187_v19 = vmax.f32 %v4133_v41, 0.0 }
 0x4cd   : > { %v4632_v48 = vadd.f32 %v4508_v1, %v4356_v13  ;;  %v7686_v26 = vpop.f32.mrf.mxu0  ;;  %v3177_v13 = vadd.f32 %v7379_v14, %v7049_v55 }
 0x4cf   : > { %v4686_v12 = vmax.f32 %v4632_v48, 0.0  ;;  %v7692_v60 = vpop.f32.mrf.mxu2  ;;  %v3656_v48 = vadd.f32 %v7666_v57, %v3177_v13  ;;  %v5624_v57 = vld [vmem:[#allocation2 + $0xd8] sm:$0xff] }
 0x4d1   : > { %v4740_v2 = vpack.c.bf16 %v4686_v12, %v4686_v12  ;;  %v4042_v8 = vpop.f32.mrf.mxu3 }
 0x4d2   : > { %v4134_v40 = vadd.f32 %v4042_v8, %v3655_v5  ;;  %v4510_v4 = vpop.f32.mrf.mxu1  ;;  %v4364_v8 = vadd.f32 %v7585_v61, %v7673_v58 }
 0x4d3   : > { %4795 = vst.msk [vmem:[%s5765_s22 + $0x1c] sm:$0xf] %vm4787_vm3, %v4740_v2  ;;  %v4511_v44 = vadd.f32 %v7590_v62, %v4510_v4 }
 0x4d4   : > { %v4188_v24 = vmax.f32 %v4134_v40, 0.0  ;;  %5500 = vmatmul.msk.bf16.gmra.mxu1 %vm674_vm2, %v5664_v54  ;;  %v4366_v54 = vadd.f32 %v7585_v61, %v7686_v26 }
 0x4d5   : > { %v4633_v23 = vadd.f32 %v4511_v44, %v4359_v29  ;;  %v7699_v43 = vpop.f32.mrf.mxu0  ;;  %v5665_v29 = vld [vmem:[%s5760_s19 + $0x68] sm:$0xff] }
 0x4d6   : > { %v4227_v27 = vpack.c.bf16 %v4188_v24, %v4187_v19  ;;  %5457 = vmatmul.msk.bf16.gmra.mxu3 %vm2914_vm13, %v5623_v31 }
 0x4d7   : > { %v4687_v52 = vmax.f32 %v4633_v23, 0.0  ;;  %v3573_v50 = vpop.f32.mrf.mxu2 }
 0x4d8   : > { %5475 = vmatmul.msk.bf16.gmra.mxu0 %vm674_vm2, %v4227_v27 }
 0x4d9   : > { %v4741_v46 = vpack.c.bf16 %v4687_v52, %v4687_v52  ;;  %v4045_v39 = vpop.f32.mrf.mxu3  ;;  %v5598_v52 = vld [vmem:[#allocation2 + $0xdc] sm:$0xff] }
 0x4da   : > { %v4512_v25 = vpop.f32.mrf.mxu1  ;;  %v4135_v35 = vadd.f32 %v4045_v39, %v3656_v48 }
 0x4db   : > { %4796 = vst.msk [vmem:[%s5765_s22 + $0x20] sm:$0xf] %vm4787_vm3, %v4741_v46  ;;  %v4513_v11 = vadd.f32 %v7590_v62, %v4512_v25  ;;  %v7739_v46 = vld [vmem:[%s8024_s5] ss:$0 sm:$0xff] }
 0x4dc   : > { %5318 = vmatmul.msk.bf16.gmra.mxu2 %vm2914_vm13, %v5597_v59  ;;  %v4189_v49 = vmax.f32 %v4135_v35, 0.0  ;;  %v3179_v39 = vadd.f32 %v7739_v46, %v7080_v22  ;;  %v3180_v26 = vadd.f32 %v7739_v46, %v7107_v6  ;;  %v4369_v35 = vadd.f32 %v7585_v61, %v7699_v43 }
 0x4dd   : > { %v4634_v1 = vadd.f32 %v4513_v11, %v4361_v0  ;;  %v7712_v21 = vpop.f32.mrf.mxu0 }
 0x4de   : > { %v3658_v11 = vadd.f32 %v7692_v60, %v3179_v39  ;;  %v3659_v13 = vadd.f32 %v3573_v50, %v3180_v26 }
 0x4df   : > { %v4688_v7 = vmax.f32 %v4634_v1, 0.0  ;;  %v7718_v12 = vpop.f32.mrf.mxu2 }
 0x4e1   : > { %v4742_v5 = vpack.c.bf16 %v4688_v7, %v4688_v7  ;;  %v4047_v41 = vpop.f32.mrf.mxu3 }
 0x4e2   : > { %v4136_v2 = vadd.f32 %v4047_v41, %v3657_v37  ;;  %v4515_v55 = vpop.f32.mrf.mxu1  ;;  %v5625_v41 = vld [vmem:[#allocation2 + $0xe0] sm:$0xff] }
 0x4e3   : > { %4797 = vst.msk [vmem:[%s5765_s22 + $0x24] sm:$0xf] %vm4787_vm3, %v4742_v5  ;;  %v4516_v40 = vadd.f32 %v7590_v62, %v4515_v55  ;;  %v5667_v55 = vld [vmem:[%s5760_s19 + $0x70] sm:$0xff] }
 0x4e4   : > { %v4190_v14 = vmax.f32 %v4136_v2, 0.0  ;;  %5501 = vmatmul.msk.bf16.gmra.mxu1 %vm674_vm2, %v5665_v29 }
 0x4e5   : > { %v4635_v4 = vadd.f32 %v4516_v40, %v4364_v8  ;;  %v7725_v42 = vpop.f32.mrf.mxu0 }
 0x4e6   : > { %v4228_v44 = vpack.c.bf16 %v4190_v14, %v4189_v49  ;;  %5458 = vmatmul.msk.bf16.gmra.mxu3 %vm2914_vm13, %v5624_v57 }
 0x4e7   : > { %v4689_v19 = vmax.f32 %v4635_v4, 0.0  ;;  %v3578_v58 = vpop.f32.mrf.mxu2  ;;  %v4371_v4 = vadd.f32 %v7585_v61, %v7712_v21 }
 0x4e8   : > { %5476 = vmatmul.msk.bf16.gmra.mxu0 %vm674_vm2, %v4228_v44  ;;  %v3181_v44 = vadd.f32 %v7739_v46, %v7115_v20  ;;  %v4374_v20 = vadd.f32 %v7585_v61, %v7725_v42 }
 0x4e9   : > { %v4743_v24 = vpack.c.bf16 %v4689_v19, %v4689_v19  ;;  %v4050_v31 = vpop.f32.mrf.mxu3 }
 0x4ea   : > { %v4517_v23 = vpop.f32.mrf.mxu1  ;;  %v4137_v1 = vadd.f32 %v4050_v31, %v3658_v11  ;;  %v3182_v31 = vadd.f32 %v7739_v46, %v7125_v63 }
 0x4eb   : > { %4798 = vst.msk [vmem:[%s5765_s22 + $0x28] sm:$0xf] %vm4787_vm3, %v4743_v24  ;;  %v4518_v27 = vadd.f32 %v7590_v62, %v4517_v23  ;;  %v3660_v23 = vadd.f32 %v7718_v12, %v3181_v44 }
 0x4ec   : > { %5319 = vmatmul.msk.bf16.gmra.mxu2 %vm2914_vm13, %v5598_v52  ;;  %v4191_v6 = vmax.f32 %v4137_v1, 0.0 }
 0x4ed   : > { %v4636_v25 = vadd.f32 %v4518_v27, %v4366_v54  ;;  %v7743_v0 = vpop.f32.mrf.mxu0  ;;  %v3661_v27 = vadd.f32 %v3578_v58, %v3182_v31  ;;  %v5668_v58 = vld [vmem:[%s5760_s19 + $0x78] sm:$0xff] }
 0x4ef   : > { %v4690_v59 = vmax.f32 %v4636_v25, 0.0  ;;  %v7749_v10 = vpop.f32.mrf.mxu2 }
 0x4f1   : > { %v4744_v48 = vpack.c.bf16 %v4690_v59, %v4690_v59  ;;  %v4052_v7 = vpop.f32.mrf.mxu3  ;;  %v5626_v59 = vld [vmem:[#allocation2 + $0xe8] sm:$0xff] }
 0x4f2   : > { %v4138_v37 = vadd.f32 %v4052_v7, %v3659_v13  ;;  %v4520_v22 = vpop.f32.mrf.mxu1 }
 0x4f3   : > { %4799 = vst.msk [vmem:[%s5765_s22 + $0x2c] sm:$0xf] %vm4787_vm3, %v4744_v48  ;;  %v4521_v5 = vadd.f32 %v7590_v62, %v4520_v22 }
 0x4f4   : > { %v4192_v60 = vmax.f32 %v4138_v37, 0.0  ;;  %5502 = vmatmul.msk.bf16.gmra.mxu1 %vm674_vm2, %v5667_v55 }
 0x4f5   : > { %v4637_v2 = vadd.f32 %v4521_v5, %v4369_v35  ;;  %v4378_v50 = vpop.f32.mrf.mxu0 }
 0x4f6   : > { %v4229_v8 = vpack.c.bf16 %v4192_v60, %v4191_v6  ;;  %5459 = vmatmul.msk.bf16.gmra.mxu3 %vm2914_vm13, %v5625_v41  ;;  %v4376_v6 = vadd.f32 %v7585_v61, %v7743_v0  ;;  %v3183_v41 = vadd.f32 %v7739_v46, %v7137_v53  ;;  %v4379_v31 = vadd.f32 %v7585_v61, %v4378_v50 }
 0x4f7   : > { %v4691_v40 = vmax.f32 %v4637_v2, 0.0  ;;  %v3583_v43 = vpop.f32.mrf.mxu2 }
 0x4f8   : > { %5477 = vmatmul.msk.bf16.gmra.mxu0 %vm674_vm2, %v4229_v8  ;;  %v3184_v8 = vadd.f32 %v7739_v46, %v7160_v32 }
 0x4f9   : > { %v4745_v49 = vpack.c.bf16 %v4691_v40, %v4691_v40  ;;  %v4055_v14 = vpop.f32.mrf.mxu3  ;;  %v3662_v40 = vadd.f32 %v7749_v10, %v3183_v41 }
 0x4fa   : > { %v4522_v57 = vpop.f32.mrf.mxu1  ;;  %v4139_v52 = vadd.f32 %v4055_v14, %v3660_v23  ;;  %v3663_v14 = vadd.f32 %v3583_v43, %v3184_v8  ;;  %v5670_v8 = vld [vmem:[%s5760_s19 + $0x88] sm:$0xff] }
 0x4fb   : > { %4800 = vst.msk [vmem:[%s5765_s22 + $0x30] sm:$0xf] %vm4787_vm3, %v4745_v49  ;;  %v4523_v29 = vadd.f32 %v7590_v62, %v4522_v57 }
 0x4fc   : > { %v4193_v63 = vmax.f32 %v4139_v52, 0.0 }
 0x4fd   : > { %v4638_v19 = vadd.f32 %v4523_v29, %v4371_v4  ;;  %v4380_v24 = vpop.f32.mrf.mxu0 }
 0x4ff   : > { %v4692_v54 = vmax.f32 %v4638_v19, 0.0  ;;  %v3586_v21 = vpop.f32.mrf.mxu2 }
 0x501   : > { %v4746_v39 = vpack.c.bf16 %v4692_v54, %v4692_v54  ;;  %v4057_v25 = vpop.f32.mrf.mxu3 }
 0x502   : > { %v4140_v26 = vadd.f32 %v4057_v25, %v3661_v27  ;;  %v4525_v11 = vpop.f32.mrf.mxu1  ;;  %v5669_v27 = vld [vmem:[%s5760_s19 + $0x80] sm:$0xff] }
 0x503   : > { %4801 = vst.msk [vmem:[%s5765_s22 + $0x34] sm:$0xf] %vm4787_vm3, %v4746_v39  ;;  %v4526_v13 = vadd.f32 %v7590_v62, %v4525_v11  ;;  %v4381_v11 = vadd.f32 %v7585_v61, %v4380_v24 }
 0x504   : > { %v4194_v12 = vmax.f32 %v4140_v26, 0.0  ;;  %5503 = vmatmul.msk.bf16.gmra.mxu1 %vm674_vm2, %v5668_v58 }
 0x505   : > { %v4639_v1 = vadd.f32 %v4526_v13, %v4374_v20  ;;  %v4383_v48 = vpop.f32.mrf.mxu0  ;;  %v3185_v20 = vadd.f32 %v7739_v46, %v7178_v45 }
 0x506   : > { %v4230_v7 = vpack.c.bf16 %v4194_v12, %v4193_v63  ;;  %5460 = vmatmul.msk.bf16.gmra.mxu3 %vm2914_vm13, %v5626_v59  ;;  %v3186_v12 = vadd.f32 %v7739_v46, %v7196_v9 }
 0x507   : > { %v4693_v37 = vmax.f32 %v4639_v1, 0.0  ;;  %v3588_v22 = vpop.f32.mrf.mxu2  ;;  %v3664_v1 = vadd.f32 %v3586_v21, %v3185_v20  ;;  %v5671_v20 = vld [vmem:[%s5760_s19 + $0x90] sm:$0xff] }
 0x508   : > { %5478 = vmatmul.msk.bf16.gmra.mxu0 %vm674_vm2, %v4230_v7  ;;  %v3665_v7 = vadd.f32 %v3588_v22, %v3186_v12 }
 0x509   : > { %v4747_v42 = vpack.c.bf16 %v4693_v37, %v4693_v37  ;;  %v4060_v35 = vpop.f32.mrf.mxu3 }
 0x50a   : > { %v4527_v5 = vpop.f32.mrf.mxu1  ;;  %v4141_v57 = vadd.f32 %v4060_v35, %v3662_v40 }
 0x50b   : > { %4802 = vst.msk [vmem:[%s5765_s22 + $0x38] sm:$0xf] %vm4787_vm3, %v4747_v42  ;;  %v4528_v60 = vadd.f32 %v7590_v62, %v4527_v5 }
 0x50c   : > { %v4195_v23 = vmax.f32 %v4141_v57, 0.0 }
 0x50d   : > { %v4640_v2 = vadd.f32 %v4528_v60, %v4376_v6  ;;  %v4385_v55 = vpop.f32.mrf.mxu0  ;;  %v4384_v60 = vadd.f32 %v7585_v61, %v4383_v48 }
 0x50f   : > { %v4694_v49 = vmax.f32 %v4640_v2, 0.0  ;;  %v3591_v0 = vpop.f32.mrf.mxu2 }
 0x511   : > { %v4748_v4 = vpack.c.bf16 %v4694_v49, %v4694_v49  ;;  %v4062_v29 = vpop.f32.mrf.mxu3 }
 0x512   : > { %v4142_v44 = vadd.f32 %v4062_v29, %v3663_v14  ;;  %v4530_v19 = vpop.f32.mrf.mxu1 }
 0x513   : > { %4803 = vst.msk [vmem:[%s5765_s22 + $0x3c] sm:$0xf] %vm4787_vm3, %v4748_v4  ;;  %v4531_v53 = vadd.f32 %v7590_v62, %v4530_v19  ;;  %v4386_v4 = vadd.f32 %v7585_v61, %v4385_v55 }
 0x514   : > { %v4196_v32 = vmax.f32 %v4142_v44, 0.0  ;;  %5504 = vmatmul.msk.bf16.gmra.mxu1 %vm674_vm2, %v5669_v27  ;;  %v3187_v44 = vadd.f32 %v7739_v46, %v7210_v28 }
 0x515   : > { %v4641_v54 = vadd.f32 %v4531_v53, %v4379_v31  ;;  %v4388_v10 = vpop.f32.mrf.mxu0  ;;  %v3188_v53 = vadd.f32 %v7739_v46, %v7227_v56 }
 0x516   : > { %v4231_v43 = vpack.c.bf16 %v4196_v32, %v4195_v23  ;;  %v3666_v23 = vadd.f32 %v3591_v0, %v3187_v44 }
 0x517   : > { %v4695_v52 = vmax.f32 %v4641_v54, 0.0  ;;  %v3593_v39 = vpop.f32.mrf.mxu2 }
 0x518   : > { %5479 = vmatmul.msk.bf16.gmra.mxu0 %vm674_vm2, %v4231_v43  ;;  %v3667_v54 = vadd.f32 %v3593_v39, %v3188_v53 }
 0x519   : > { %v4749_v25 = vpack.c.bf16 %v4695_v52, %v4695_v52  ;;  %v4065_v26 = vpop.f32.mrf.mxu3 }
 0x51a   : > { %v4532_v50 = vpop.f32.mrf.mxu1  ;;  %v4143_v37 = vadd.f32 %v4065_v26, %v3664_v1  ;;  %v4389_v26 = vadd.f32 %v7585_v61, %v4388_v10 }
 0x51b   : > { %4804 = vst.msk [vmem:[%s5765_s22 + $0x40] sm:$0xf] %vm4787_vm3, %v4749_v25  ;;  %v4533_v59 = vadd.f32 %v7590_v62, %v4532_v50 }
 0x51c   : > { %v4197_v41 = vmax.f32 %v4143_v37, 0.0  ;;  %v3189_v37 = vadd.f32 %v7739_v46, %v7244_v47 }
 0x51d   : > { %v4642_v13 = vadd.f32 %v4533_v59, %v4381_v11  ;;  %v4390_v63 = vpop.f32.mrf.mxu0 }
 0x51f   : > { %v4696_v58 = vmax.f32 %v4642_v13, 0.0  ;;  %v3596_v42 = vpop.f32.mrf.mxu2 }
 0x521   : > { %v4750_v24 = vpack.c.bf16 %v4696_v58, %v4696_v58  ;;  %v4067_v35 = vpop.f32.mrf.mxu3  ;;  %v4391_v58 = vadd.f32 %v7585_v61, %v4390_v63 }
 0x522   : > { %v4144_v5 = vadd.f32 %v4067_v35, %v3665_v7  ;;  %v4535_v6 = vpop.f32.mrf.mxu1 }
 0x523   : > { %4805 = vst.msk [vmem:[%s5765_s22 + $0x44] sm:$0xf] %vm4787_vm3, %v4750_v24  ;;  %v4536_v45 = vadd.f32 %v7590_v62, %v4535_v6  ;;  %v3190_v6 = vadd.f32 %v7739_v46, %v7259_v34 }
 0x524   : > { %v4198_v2 = vmax.f32 %v4144_v5, 0.0  ;;  %5505 = vmatmul.msk.bf16.gmra.mxu1 %vm674_vm2, %v5670_v8 }
 0x525   : > { %v4643_v9 = vadd.f32 %v4536_v45, %v4384_v60  ;;  %v4393_v21 = vpop.f32.mrf.mxu0  ;;  %v3668_v60 = vadd.f32 %v3596_v42, %v3189_v37 }
 0x526   : > { %v4232_v22 = vpack.c.bf16 %v4198_v2, %v4197_v41 }
 0x527   : > { %v4697_v40 = vmax.f32 %v4643_v9, 0.0  ;;  %v3598_v14 = vpop.f32.mrf.mxu2 }
 0x528   : > { %5480 = vmatmul.msk.bf16.gmra.mxu0 %vm674_vm2, %v4232_v22  ;;  %v3669_v41 = vadd.f32 %v3598_v14, %v3190_v6  ;;  %v3193_v6 = vadd.f32 %v7739_v46, %v7301_v36 }
 0x529   : > { %v4751_v49 = vpack.c.bf16 %v4697_v40, %v4697_v40  ;;  %v4070_v57 = vpop.f32.mrf.mxu3  ;;  %v4394_v40 = vadd.f32 %v7585_v61, %v4393_v21 }
 0x52a   : > { %v4537_v48 = vpop.f32.mrf.mxu1  ;;  %v4145_v27 = vadd.f32 %v4070_v57, %v3666_v23 }
 0x52b   : > { %4806 = vst.msk [vmem:[%s5765_s22 + $0x48] sm:$0xf] %vm4787_vm3, %v4751_v49  ;;  %v4538_v29 = vadd.f32 %v7590_v62, %v4537_v48 }
 0x52c   : > { %v4199_v11 = vmax.f32 %v4145_v27, 0.0 }
 0x52d   : > { %v4644_v19 = vadd.f32 %v4538_v29, %v4386_v4  ;;  %v4395_v31 = vpop.f32.mrf.mxu0  ;;  %v5672_v4 = vld [vmem:[%s5760_s19 + $0x98] sm:$0xff] }
 0x52e   : > { %v4396_v53 = vadd.f32 %v7585_v61, %v4395_v31 }
 0x52f   : > { %v4698_v32 = vmax.f32 %v4644_v19, 0.0  ;;  %v3601_v28 = vpop.f32.mrf.mxu2 }
 0x531   : > { %v4752_v43 = vpack.c.bf16 %v4698_v32, %v4698_v32  ;;  %v4072_v55 = vpop.f32.mrf.mxu3  ;;  %v3191_v32 = vadd.f32 %v7739_v46, %v7274_v3 }
 0x532   : > { %v4146_v52 = vadd.f32 %v4072_v55, %v3667_v54  ;;  %v4540_v25 = vpop.f32.mrf.mxu1 }
 0x533   : > { %4807 = vst.msk [vmem:[%s5765_s22 + $0x4c] sm:$0xf] %vm4787_vm3, %v4752_v43  ;;  %v4541_v50 = vadd.f32 %v7590_v62, %v4540_v25  ;;  %v3192_v43 = vadd.f32 %v7739_v46, %v7291_v33  ;;  %v3670_v55 = vadd.f32 %v3601_v28, %v3191_v32  ;;  %v3195_v32 = vadd.f32 %v7739_v46, %v7339_v30 }
 0x534   : > { %v4200_v59 = vmax.f32 %v4146_v52, 0.0  ;;  %5506 = vmatmul.msk.bf16.gmra.mxu1 %vm674_vm2, %v5671_v20 }
 0x535   : > { %v4645_v56 = vadd.f32 %v4541_v50, %v4389_v26  ;;  %v4398_v0 = vpop.f32.mrf.mxu0 }
 0x536   : > { %v4233_v39 = vpack.c.bf16 %v4200_v59, %v4199_v11  ;;  %v4399_v20 = vadd.f32 %v7585_v61, %v4398_v0 }
 0x537   : > { %v4699_v13 = vmax.f32 %v4645_v56, 0.0  ;;  %v3603_v24 = vpop.f32.mrf.mxu2 }
 0x538   : > { %5481 = vmatmul.msk.bf16.gmra.mxu0 %vm674_vm2, %v4233_v39  ;;  %v3671_v25 = vadd.f32 %v3603_v24, %v3192_v43 }
 0x539   : > { %v4753_v12 = vpack.c.bf16 %v4699_v13, %v4699_v13  ;;  %v4075_v1 = vpop.f32.mrf.mxu3 }
 0x53a   : > { %v4542_v10 = vpop.f32.mrf.mxu1  ;;  %v4147_v2 = vadd.f32 %v4075_v1, %v3668_v60 }
 0x53b   : > { %4808 = vst.msk [vmem:[%s5765_s22 + $0x50] sm:$0xf] %vm4787_vm3, %v4753_v12  ;;  %v4543_v7 = vadd.f32 %v7590_v62, %v4542_v10  ;;  %v5673_v12 = vld [vmem:[%s5760_s19 + $0xa0] sm:$0xff] }
 0x53c   : > { %v4201_v49 = vmax.f32 %v4147_v2, 0.0 }
 0x53d   : > { %v4646_v35 = vadd.f32 %v4543_v7, %v4391_v58  ;;  %v4400_v5 = vpop.f32.mrf.mxu0 }
 0x53e   : > { %v4401_v0 = vadd.f32 %v7585_v61, %v4400_v5 }
 0x53f   : > { %v4700_v45 = vmax.f32 %v4646_v35, 0.0  ;;  %v3606_v14 = vpop.f32.mrf.mxu2 }
 0x540   : > { %v3672_v2 = vadd.f32 %v3606_v14, %v3193_v6  ;;  %v5674_v14 = vld [vmem:[%s5760_s19 + $0xa8] sm:$0xff] }
 0x541   : > { %v4754_v63 = vpack.c.bf16 %v4700_v45, %v4700_v45  ;;  %v4077_v9 = vpop.f32.mrf.mxu3 }
 0x542   : > { %v4148_v8 = vadd.f32 %v4077_v9, %v3669_v41  ;;  %v4545_v22 = vpop.f32.mrf.mxu1  ;;  %v3194_v41 = vadd.f32 %v7739_v46, %v7330_v15 }
 0x543   : > { %4809 = vst.msk [vmem:[%s5765_s22 + $0x54] sm:$0xf] %vm4787_vm3, %v4754_v63  ;;  %v4546_v47 = vadd.f32 %v7590_v62, %v4545_v22 }
 0x544   : > { %v4202_v57 = vmax.f32 %v4148_v8, 0.0  ;;  %5507 = vmatmul.msk.bf16.gmra.mxu1 %vm674_vm2, %v5672_v4 }
 0x545   : > { %v4647_v48 = vadd.f32 %v4546_v47, %v4394_v40  ;;  %v4403_v34 = vpop.f32.mrf.mxu0 }
 0x546   : > { %v4234_v42 = vpack.c.bf16 %v4202_v57, %v4201_v49  ;;  %v4404_v49 = vadd.f32 %v7585_v61, %v4403_v34 }
 0x547   : > { %v4701_v29 = vmax.f32 %v4647_v48, 0.0  ;;  %v3608_v50 = vpop.f32.mrf.mxu2 }
 0x548   : > { %5482 = vmatmul.msk.bf16.gmra.mxu0 %vm674_vm2, %v4234_v42  ;;  %v3673_v9 = vadd.f32 %v3608_v50, %v3194_v41 }
 0x549   : > { %v4755_v44 = vpack.c.bf16 %v4701_v29, %v4701_v29  ;;  %v4080_v19 = vpop.f32.mrf.mxu3 }
 0x54a   : > { %v4547_v21 = vpop.f32.mrf.mxu1  ;;  %v4149_v26 = vadd.f32 %v4080_v19, %v3670_v55  ;;  %v3196_v55 = vadd.f32 %v7739_v46, %v7343_v38 }
 0x54b   : > { %4810 = vst.msk [vmem:[%s5765_s22 + $0x58] sm:$0xf] %vm4787_vm3, %v4755_v44  ;;  %v4548_v23 = vadd.f32 %v7590_v62, %v4547_v21 }
 0x54c   : > { %v4203_v39 = vmax.f32 %v4149_v26, 0.0 }
 0x54d   : > { %v4648_v54 = vadd.f32 %v4548_v23, %v4396_v53  ;;  %v4405_v27 = vpop.f32.mrf.mxu0 }
 0x54e   : > { %v4406_v53 = vadd.f32 %v7585_v61, %v4405_v27 }
 0x54f   : > { %v4702_v52 = vmax.f32 %v4648_v54, 0.0  ;;  %v3611_v24 = vpop.f32.mrf.mxu2 }
 0x551   : > { %v4756_v31 = vpack.c.bf16 %v4702_v52, %v4702_v52  ;;  %v4082_v11 = vpop.f32.mrf.mxu3  ;;  %v3674_v52 = vadd.f32 %v3611_v24, %v3195_v32  ;;  %v3197_v24 = vadd.f32 %v7739_v46, %v7350_v16  ;;  %v3200_v32 = vadd.f32 %v7739_v46, %v7370_v18 }
 0x552   : > { %v4150_v59 = vadd.f32 %v4082_v11, %v3671_v25  ;;  %v4550_v56 = vpop.f32.mrf.mxu1 }
 0x553   : > { %4811 = vst.msk [vmem:[%s5765_s22 + $0x5c] sm:$0xf] %vm4787_vm3, %v4756_v31  ;;  %v4551_v3 = vadd.f32 %v7590_v62, %v4550_v56 }
 0x554   : > { %v4204_v13 = vmax.f32 %v4150_v59, 0.0  ;;  %5508 = vmatmul.msk.bf16.gmra.mxu1 %vm674_vm2, %v5673_v12 }
 0x555   : > { %v4649_v33 = vadd.f32 %v4551_v3, %v4399_v20  ;;  %v4408_v28 = vpop.f32.mrf.mxu0 }
 0x556   : > { %v4235_v1 = vpack.c.bf16 %v4204_v13, %v4203_v39  ;;  %v4409_v20 = vadd.f32 %v7585_v61, %v4408_v28 }
 0x557   : > { %v4703_v10 = vmax.f32 %v4649_v33, 0.0  ;;  %v3613_v4 = vpop.f32.mrf.mxu2  ;;  %v5675_v33 = vld [vmem:[%s5760_s19 + $0xb0] sm:$0xff] }
 0x558   : > { %5483 = vmatmul.msk.bf16.gmra.mxu0 %vm674_vm2, %v4235_v1  ;;  %v3675_v50 = vadd.f32 %v3613_v4, %v3196_v55 }
 0x559   : > { %v4757_v58 = vpack.c.bf16 %v4703_v10, %v4703_v10  ;;  %v4085_v7 = vpop.f32.mrf.mxu3 }
 0x55a   : > { %v4552_v37 = vpop.f32.mrf.mxu1  ;;  %v4151_v8 = vadd.f32 %v4085_v7, %v3672_v2 }
 0x55b   : > { %4812 = vst.msk [vmem:[%s5765_s22 + $0x60] sm:$0xf] %vm4787_vm3, %v4757_v58  ;;  %v4553_v35 = vadd.f32 %v7590_v62, %v4552_v37 }
 0x55c   : > { %v4205_v57 = vmax.f32 %v4151_v8, 0.0 }
 0x55d   : > { %v4650_v60 = vadd.f32 %v4553_v35, %v4401_v0  ;;  %v4410_v45 = vpop.f32.mrf.mxu0 }
 0x55e   : > { %v4411_v37 = vadd.f32 %v7585_v61, %v4410_v45 }
 0x55f   : > { %v4704_v63 = vmax.f32 %v4650_v60, 0.0  ;;  %v3616_v25 = vpop.f32.mrf.mxu2  ;;  %v3198_v60 = vadd.f32 %v7739_v46, %v7357_v17 }
 0x560   : > { %v3676_v41 = vadd.f32 %v3616_v25, %v3197_v24  ;;  %v5680_v24 = vld [vmem:[%s5760_s19 + $0xc8] sm:$0xff] }
 0x561   : > { %v4758_v5 = vpack.c.bf16 %v4704_v63, %v4704_v63  ;;  %v4087_v22 = vpop.f32.mrf.mxu3 }
 0x562   : > { %v4152_v40 = vadd.f32 %v4087_v22, %v3673_v9  ;;  %v4555_v47 = vpop.f32.mrf.mxu1 }
 0x563   : > { %4813 = vst.msk [vmem:[%s5765_s22 + $0x64] sm:$0xf] %vm4787_vm3, %v4758_v5  ;;  %v4556_v36 = vadd.f32 %v7590_v62, %v4555_v47 }
 0x564   : > { %v4206_v48 = vmax.f32 %v4152_v40, 0.0  ;;  %5509 = vmatmul.msk.bf16.gmra.mxu1 %vm674_vm2, %v5674_v14 }
 0x565   : > { %v4651_v15 = vadd.f32 %v4556_v36, %v4404_v49  ;;  %v4413_v42 = vpop.f32.mrf.mxu0 }
 0x566   : > { %v4236_v29 = vpack.c.bf16 %v4206_v48, %v4205_v57  ;;  %v4414_v40 = vadd.f32 %v7585_v61, %v4413_v42  ;;  %v5676_v48 = vld [vmem:[%s5760_s19 + $0xb8] sm:$0xff]  ;;  %v7904_v42 = vld [vmem:[%s8026_s7] ss:$0 sm:$0xff] }
 0x567   : > { %v4705_v44 = vmax.f32 %v4651_v15, 0.0  ;;  %v3618_v10 = vpop.f32.mrf.mxu2 }
 0x568   : > { %5484 = vmatmul.msk.bf16.gmra.mxu0 %vm674_vm2, %v4236_v29  ;;  %v3677_v63 = vadd.f32 %v3618_v10, %v3198_v60 }
 0x569   : > { %v4759_v19 = vpack.c.bf16 %v4705_v44, %v4705_v44  ;;  %v4090_v21 = vpop.f32.mrf.mxu3  ;;  %v7912_v44 = vld [vmem:[%s8028_s9] ss:$0 sm:$0xff] }
 0x56a   : > { %v4557_v34 = vpop.f32.mrf.mxu1  ;;  %v4153_v31 = vadd.f32 %v4090_v21, %v3674_v52  ;;  %v3199_v21 = vadd.f32 %v7739_v46, %v7366_v51  ;;  %v5679_v46 = vld [vmem:[%s5760_s19 + $0xc0] sm:$0xff] }
 0x56b   : > { %4814 = vst.msk [vmem:[%s5765_s22 + $0x68] sm:$0xf] %vm4787_vm3, %v4759_v19  ;;  %v4558_v23 = vadd.f32 %v7590_v62, %v4557_v34 }
 0x56c   : > { %v4207_v3 = vmax.f32 %v4153_v31, 0.0 }
 0x56d   : > { %v4652_v54 = vadd.f32 %v4558_v23, %v4406_v53  ;;  %v4415_v43 = vpop.f32.mrf.mxu0 }
 0x56f   : > { %v4706_v26 = vmax.f32 %v4652_v54, 0.0  ;;  %v3621_v47 = vpop.f32.mrf.mxu2 }
 0x570   : > { %v3678_v54 = vadd.f32 %v3621_v47, %v3199_v21 }
 0x571   : > { %v4760_v27 = vpack.c.bf16 %v4706_v26, %v4706_v26  ;;  %v4092_v11 = vpop.f32.mrf.mxu3 }
 0x572   : > { %v4154_v59 = vadd.f32 %v4092_v11, %v3675_v50  ;;  %v4560_v56 = vpop.f32.mrf.mxu1 }
 0x573   : > { %4815 = vst.msk [vmem:[%s5765_s22 + $0x6c] sm:$0xf] %vm4787_vm3, %v4760_v27  ;;  %v4561_v30 = vadd.f32 %v7590_v62, %v4560_v56 }
 0x574   : > { %v4208_v39 = vmax.f32 %v4154_v59, 0.0  ;;  %5510 = vmatmul.msk.bf16.gmra.mxu1 %vm674_vm2, %v5675_v33 }
 0x575   : > { %v4653_v38 = vadd.f32 %v4561_v30, %v4409_v20  ;;  %v4418_v13 = vpop.f32.mrf.mxu0 }
 0x576   : > { %v4237_v12 = vpack.c.bf16 %v4208_v39, %v4207_v3  ;;  %v4419_v27 = vadd.f32 %v7904_v42, %v4418_v13 }
 0x577   : > { %v4707_v1 = vmax.f32 %v4653_v38, 0.0  ;;  %v3623_v34 = vpop.f32.mrf.mxu2 }
 0x578   : > { %5485 = vmatmul.msk.bf16.gmra.mxu0 %vm674_vm2, %v4237_v12  ;;  %v3679_v55 = vadd.f32 %v3623_v34, %v3200_v32 }
 0x579   : > { %v4761_v58 = vpack.c.bf16 %v4707_v1, %v4707_v1  ;;  %v4095_v7 = vpop.f32.mrf.mxu3 }
 0x57a   : > { %v4562_v28 = vpop.f32.mrf.mxu1  ;;  %v4155_v9 = vadd.f32 %v4095_v7, %v3676_v41 }
 0x57b   : > { %4816 = vst.msk [vmem:[%s5765_s22 + $0x70] sm:$0xf] %vm4787_vm3, %v4761_v58  ;;  %v4563_v0 = vadd.f32 %v7590_v62, %v4562_v28 }
 0x57c   : > { %v4209_v49 = vmax.f32 %v4155_v9, 0.0 }
 0x57d   : > { %v4654_v35 = vadd.f32 %v4563_v0, %v4411_v37  ;;  %v4420_v6 = vpop.f32.mrf.mxu0 }
 0x57e   : > { %v4421_v38 = vadd.f32 %v7904_v42, %v4420_v6 }
 0x57f   : > { %v4708_v2 = vmax.f32 %v4654_v35, 0.0 }
 0x581   : > { %v4762_v8 = vpack.c.bf16 %v4708_v2, %v4708_v2  ;;  %v4097_v45 = vpop.f32.mrf.mxu3 }
 0x582   : > { %v4156_v5 = vadd.f32 %v4097_v45, %v3677_v63  ;;  %v4565_v22 = vpop.f32.mrf.mxu1 }
 0x583   : > { %4817 = vst.msk [vmem:[%s5765_s22 + $0x74] sm:$0xf] %vm4787_vm3, %v4762_v8  ;;  %v4566_v16 = vadd.f32 %v7590_v62, %v4565_v22  ;;  %v4416_v62 = vadd.f32 %v7904_v42, %v4415_v43 }
 0x584   : > { %v4210_v36 = vmax.f32 %v4156_v5, 0.0  ;;  %5511 = vmatmul.msk.bf16.gmra.mxu1 %vm674_vm2, %v5676_v48 }
 0x585   : > { %v4655_v17 = vadd.f32 %v4566_v16, %v4414_v40  ;;  %v4423_v57 = vpop.f32.mrf.mxu0  ;;  %v5681_v16 = vld [vmem:[%s5760_s19 + $0xd0] sm:$0xff] }
 0x586   : > { %v4238_v4 = vpack.c.bf16 %v4210_v36, %v4209_v49  ;;  %v4424_v7 = vadd.f32 %v7904_v42, %v4423_v57 }
 0x587   : > { %v4709_v15 = vmax.f32 %v4655_v17, 0.0 }
 0x588   : > { %5486 = vmatmul.msk.bf16.gmra.mxu0 %vm674_vm2, %v4238_v4 }
 0x589   : > { %v4763_v14 = vpack.c.bf16 %v4709_v15, %v4709_v15  ;;  %v4100_v29 = vpop.f32.mrf.mxu3 }
 0x58a   : > { %v4567_v61 = vpop.f32.mrf.mxu1  ;;  %v4157_v52 = vadd.f32 %v4100_v29, %v3678_v54 }
 0x58b   : > { %4818 = vst.msk [vmem:[%s5765_s22 + $0x78] sm:$0xf] %vm4787_vm3, %v4763_v14  ;;  %v4568_v19 = vadd.f32 %v7912_v44, %v4567_v61 }
 0x58c   : > { %v4211_v11 = vmax.f32 %v4157_v52, 0.0 }
 0x58d   : > { %v4656_v53 = vadd.f32 %v4568_v19, %v4416_v62  ;;  %v4425_v23 = vpop.f32.mrf.mxu0 }
 0x58e   : > { %v4426_v41 = vadd.f32 %v7904_v42, %v4425_v23 }
 0x58f   : > { %v4710_v43 = vmax.f32 %v4656_v53, 0.0 }
 0x591   : > { %v4764_v25 = vpack.c.bf16 %v4710_v43, %v4710_v43  ;;  %v4102_v26 = vpop.f32.mrf.mxu3 }
 0x592   : > { %v4158_v50 = vadd.f32 %v4102_v26, %v3679_v55  ;;  %v4570_v31 = vpop.f32.mrf.mxu1 }
 0x593   : > { %4819 = vst.msk [vmem:[%s5765_s22 + $0x7c] sm:$0xf] %vm4787_vm3, %v4764_v25  ;;  %v4571_v51 = vadd.f32 %v7912_v44, %v4570_v31 }
 0x594   : > { %v4212_v59 = vmax.f32 %v4158_v50, 0.0  ;;  %5512 = vmatmul.msk.bf16.gmra.mxu1 %vm674_vm2, %v5679_v46 }
 0x595   : > { %v4657_v56 = vadd.f32 %v4571_v51, %v4419_v27  ;;  %v4428_v18 = vpop.f32.mrf.mxu0 }
 0x596   : > { %v4239_v20 = vpack.c.bf16 %v4212_v59, %v4211_v11  ;;  %v4429_v22 = vadd.f32 %v7904_v42, %v4428_v18 }
 0x597   : > { %v4711_v30 = vmax.f32 %v4657_v56, 0.0 }
 0x598   : > { %5487 = vmatmul.msk.bf16.gmra.mxu0 %vm674_vm2, %v4239_v20 }
 0x599   : > { %v4765_v3 = vpack.c.bf16 %v4711_v30, %v4711_v30 }
 0x59a   : > { %v4572_v39 = vpop.f32.mrf.mxu1 }
 0x59b   : > { %4820 = vst.msk [vmem:[%s5765_s22 + $0x80] sm:$0xf] %vm4787_vm3, %v4765_v3  ;;  %v4573_v13 = vadd.f32 %v7912_v44, %v4572_v39 }
 0x59d   : > { %v4658_v33 = vadd.f32 %v4573_v13, %v4421_v38  ;;  %v4430_v12 = vpop.f32.mrf.mxu0 }
 0x59e   : > { %v4431_v48 = vadd.f32 %v7904_v42, %v4430_v12 }
 0x59f   : > { %v4712_v1 = vmax.f32 %v4658_v33, 0.0 }
 0x5a1   : > { %v4766_v10 = vpack.c.bf16 %v4712_v1, %v4712_v1 }
 0x5a2   : > { %v4575_v58 = vpop.f32.mrf.mxu1 }
 0x5a3   : > { %4821 = vst.msk [vmem:[%s5765_s22 + $0x84] sm:$0xf] %vm4787_vm3, %v4766_v10  ;;  %v4576_v28 = vadd.f32 %v7912_v44, %v4575_v58 }
 0x5a4   : > { %5513 = vmatmul.msk.bf16.gmra.mxu1 %vm674_vm2, %v5680_v24 }
 0x5a5   : > { %v4659_v37 = vadd.f32 %v4576_v28, %v4424_v7  ;;  %v4433_v0 = vpop.f32.mrf.mxu0 }
 0x5a6   : > { %v4434_v19 = vadd.f32 %v7904_v42, %v4433_v0 }
 0x5a7   : > { %v4713_v35 = vmax.f32 %v4659_v37, 0.0 }
 0x5a9   : > { %v4767_v6 = vpack.c.bf16 %v4713_v35, %v4713_v35 }
 0x5aa   : > { %v4577_v60 = vpop.f32.mrf.mxu1 }
 0x5ab   : > { %4822 = vst.msk [vmem:[%s5765_s22 + $0x88] sm:$0xf] %vm4787_vm3, %v4767_v6  ;;  %v4578_v2 = vadd.f32 %v7912_v44, %v4577_v60 }
 0x5ad   : > { %v4660_v63 = vadd.f32 %v4578_v2, %v4426_v41  ;;  %v4435_v9 = vpop.f32.mrf.mxu0 }
 0x5ae   : > { %v4436_v43 = vadd.f32 %v7904_v42, %v4435_v9 }
 0x5af   : > { %v4714_v8 = vmax.f32 %v4660_v63, 0.0 }
 0x5b1   : > { %v4768_v45 = vpack.c.bf16 %v4714_v8, %v4714_v8 }
 0x5b2   : > { %v4580_v5 = vpop.f32.mrf.mxu1 }
 0x5b3   : > { %4823 = vst.msk [vmem:[%s5765_s22 + $0x8c] sm:$0xf] %vm4787_vm3, %v4768_v45  ;;  %v4581_v40 = vadd.f32 %v7912_v44, %v4580_v5 }
 0x5b4   : > { %5514 = vmatmul.msk.bf16.gmra.mxu1 %vm674_vm2, %v5681_v16 }
 0x5b5   : > { %v4661_v47 = vadd.f32 %v4581_v40, %v4429_v22  ;;  %v4438_v49 = vpop.f32.mrf.mxu0 }
 0x5b6   : > { %v4439_v31 = vadd.f32 %v7904_v42, %v4438_v49 }
 0x5b7   : > { %v4715_v36 = vmax.f32 %v4661_v47, 0.0 }
 0x5b9   : > { %v4769_v17 = vpack.c.bf16 %v4715_v36, %v4715_v36 }
 0x5ba   : > { %v4582_v57 = vpop.f32.mrf.mxu1 }
 0x5bb   : > { %4824 = vst.msk [vmem:[%s5765_s22 + $0x90] sm:$0xf] %vm4787_vm3, %v4769_v17  ;;  %v4583_v4 = vadd.f32 %v7912_v44, %v4582_v57 }
 0x5bd   : > { %v4662_v15 = vadd.f32 %v4583_v4, %v4431_v48  ;;  %v4440_v29 = vpop.f32.mrf.mxu0 }
 0x5be   : > { %v4441_v46 = vadd.f32 %v7904_v42, %v4440_v29 }
 0x5bf   : > { %v4716_v14 = vmax.f32 %v4662_v15, 0.0 }
 0x5c1   : > { %v4770_v61 = vpack.c.bf16 %v4716_v14, %v4716_v14 }
 0x5c2   : > { %v4585_v62 = vpop.f32.mrf.mxu1 }
 0x5c3   : > { %4825 = vst.msk [vmem:[%s5765_s22 + $0x94] sm:$0xf] %vm4787_vm3, %v4770_v61  ;;  %v4586_v21 = vadd.f32 %v7912_v44, %v4585_v62 }
 0x5c5   : > { %v4663_v34 = vadd.f32 %v4586_v21, %v4434_v19  ;;  %v4443_v32 = vpop.f32.mrf.mxu0 }
 0x5c6   : > { %v4444_v33 = vadd.f32 %v7904_v42, %v4443_v32 }
 0x5c7   : > { %v4717_v53 = vmax.f32 %v4663_v34, 0.0 }
 0x5c9   : > { %v4771_v23 = vpack.c.bf16 %v4717_v53, %v4717_v53 }
 0x5ca   : > { %v4587_v54 = vpop.f32.mrf.mxu1 }
 0x5cb   : > { %4826 = vst.msk [vmem:[%s5765_s22 + $0x98] sm:$0xf] %vm4787_vm3, %v4771_v23  ;;  %v4588_v55 = vadd.f32 %v7912_v44, %v4587_v54 }
 0x5cd   : > { %v4664_v52 = vadd.f32 %v4588_v55, %v4436_v43  ;;  %v4445_v51 = vpop.f32.mrf.mxu0 }
 0x5ce   : > { %v4446_v37 = vadd.f32 %v7904_v42, %v4445_v51 }
 0x5cf   : > { %v4718_v25 = vmax.f32 %v4664_v52, 0.0 }
 0x5d1   : > { %v4772_v26 = vpack.c.bf16 %v4718_v25, %v4718_v25 }
 0x5d2   : > { %v4590_v50 = vpop.f32.mrf.mxu1 }
 0x5d3   : > { %4827 = vst.msk [vmem:[%s5765_s22 + $0x9c] sm:$0xf] %vm4787_vm3, %v4772_v26  ;;  %v4591_v27 = vadd.f32 %v7912_v44, %v4590_v50 }
 0x5d5   : > { %v4665_v11 = vadd.f32 %v4591_v27, %v4439_v31  ;;  %v4448_v3 = vpop.f32.mrf.mxu0 }
 0x5d6   : > { %v4449_v2 = vadd.f32 %v7904_v42, %v4448_v3 }
 0x5d7   : > { %v4719_v59 = vmax.f32 %v4665_v11, 0.0 }
 0x5d9   : > { %v4773_v56 = vpack.c.bf16 %v4719_v59, %v4719_v59 }
 0x5da   : > { %v4592_v18 = vpop.f32.mrf.mxu1 }
 0x5db   : > { %4828 = vst.msk [vmem:[%s5765_s22 + $0xa0] sm:$0xf] %vm4787_vm3, %v4773_v56  ;;  %v4593_v20 = vadd.f32 %v7912_v44, %v4592_v18 }
 0x5dd   : > { %v4666_v30 = vadd.f32 %v4593_v20, %v4441_v46  ;;  %v4450_v58 = vpop.f32.mrf.mxu0 }
 0x5de   : > { %v4451_v22 = vadd.f32 %v7904_v42, %v4450_v58 }
 0x5df   : > { %v4720_v39 = vmax.f32 %v4666_v30, 0.0 }
 0x5e1   : > { %v4774_v38 = vpack.c.bf16 %v4720_v39, %v4720_v39 }
 0x5e2   : > { %v4595_v13 = vpop.f32.mrf.mxu1 }
 0x5e3   : > { %4829 = vst.msk [vmem:[%s5765_s22 + $0xa4] sm:$0xf] %vm4787_vm3, %v4774_v38  ;;  %v4596_v12 = vadd.f32 %v7912_v44, %v4595_v13 }
 0x5e5   : > { %v4667_v1 = vadd.f32 %v4596_v12, %v4444_v33  ;;  %v4453_v60 = vpop.f32.mrf.mxu0 }
 0x5e6   : > { %v4454_v57 = vadd.f32 %v7904_v42, %v4453_v60 }
 0x5e7   : > { %v4721_v10 = vmax.f32 %v4667_v1, 0.0 }
 0x5e9   : > { %v4775_v7 = vpack.c.bf16 %v4721_v10, %v4721_v10 }
 0x5ea   : > { %v4597_v28 = vpop.f32.mrf.mxu1 }
 0x5eb   : > { %4830 = vst.msk [vmem:[%s5765_s22 + $0xa8] sm:$0xf] %vm4787_vm3, %v4775_v7  ;;  %v4598_v0 = vadd.f32 %v7912_v44, %v4597_v28 }
 0x5ed   : > { %v4668_v24 = vadd.f32 %v4598_v0, %v4446_v37  ;;  %v4455_v47 = vpop.f32.mrf.mxu0 }
 0x5ee   : > { %v4456_v62 = vadd.f32 %v7904_v42, %v4455_v47 }
 0x5ef   : > { %v4722_v35 = vmax.f32 %v4668_v24, 0.0 }
 0x5f1   : > { %v4776_v6 = vpack.c.bf16 %v4722_v35, %v4722_v35 }
 0x5f2   : > { %v4600_v41 = vpop.f32.mrf.mxu1 }
 0x5f3   : > { %4831 = vst.msk [vmem:[%s5765_s22 + $0xac] sm:$0xf] %vm4787_vm3, %v4776_v6  ;;  %v4601_v63 = vadd.f32 %v7912_v44, %v4600_v41 }
 0x5f5   : > { %v4669_v9 = vadd.f32 %v4601_v63, %v4449_v2  ;;  %v4458_v15 = vpop.f32.mrf.mxu0 }
 0x5f6   : > { %v4459_v54 = vadd.f32 %v7904_v42, %v4458_v15 }
 0x5f7   : > { %v4723_v8 = vmax.f32 %v4669_v9, 0.0 }
 0x5f9   : > { %v4777_v45 = vpack.c.bf16 %v4723_v8, %v4723_v8 }
 0x5fa   : > { %v4602_v5 = vpop.f32.mrf.mxu1 }
 0x5fb   : > { %4832 = vst.msk [vmem:[%s5765_s22 + $0xb0] sm:$0xf] %vm4787_vm3, %v4777_v45  ;;  %v4603_v40 = vadd.f32 %v7912_v44, %v4602_v5 }
 0x5fd   : > { %v4670_v16 = vadd.f32 %v4603_v40, %v4451_v22  ;;  %v4460_v53 = vpop.f32.mrf.mxu0 }
 0x5fe   : > { %v4461_v31 = vadd.f32 %v7904_v42, %v4460_v53 }
 0x5ff   : > { %v4724_v49 = vmax.f32 %v4670_v16, 0.0 }
 0x601   : > { %v4778_v36 = vpack.c.bf16 %v4724_v49, %v4724_v49 }
 0x602   : > { %v4605_v17 = vpop.f32.mrf.mxu1 }
 0x603   : > { %4833 = vst.msk [vmem:[%s5765_s22 + $0xb4] sm:$0xf] %vm4787_vm3, %v4778_v36  ;;  %v4606_v48 = vadd.f32 %v7912_v44, %v4605_v17 }
 0x605   : > { %v4671_v4 = vadd.f32 %v4606_v48, %v4454_v57  ;;  %v4463_v26 = vpop.f32.mrf.mxu0 }
 0x606   : > { %v4464_v18 = vadd.f32 %v7904_v42, %v4463_v26 }
 0x607   : > { %v4725_v14 = vmax.f32 %v4671_v4, 0.0 }
 0x609   : > { %v4779_v29 = vpack.c.bf16 %v4725_v14, %v4725_v14 }
 0x60a   : > { %v4607_v61 = vpop.f32.mrf.mxu1 }
 0x60b   : > { %4834 = vst.msk [vmem:[%s5765_s22 + $0xb8] sm:$0xf] %vm4787_vm3, %v4779_v29  ;;  %v4608_v19 = vadd.f32 %v7912_v44, %v4607_v61 }
 0x60d   : > { %v4672_v21 = vadd.f32 %v4608_v19, %v4456_v62  ;;  %v4465_v20 = vpop.f32.mrf.mxu0 }
 0x60e   : > { %v4466_v13 = vadd.f32 %v7904_v42, %v4465_v20 }
 0x60f   : > { %v4726_v34 = vmax.f32 %v4672_v21, 0.0 }
 0x611   : > { %v4780_v23 = vpack.c.bf16 %v4726_v34, %v4726_v34 }
 0x612   : > { %v4610_v32 = vpop.f32.mrf.mxu1 }
 0x613   : > { %4835 = vst.msk [vmem:[%s5765_s22 + $0xbc] sm:$0xf] %vm4787_vm3, %v4780_v23  ;;  %v4611_v43 = vadd.f32 %v7912_v44, %v4610_v32 }
 0x615   : > { %v4673_v55 = vadd.f32 %v4611_v43, %v4459_v54  ;;  %v4468_v1 = vpop.f32.mrf.mxu0 }
 0x616   : > { %v4469_v28 = vadd.f32 %v7904_v42, %v4468_v1 }
 0x617   : > { %v4727_v52 = vmax.f32 %v4673_v55, 0.0 }
 0x619   : > { %v4781_v25 = vpack.c.bf16 %v4727_v52, %v4727_v52 }
 0x61a   : > { %v4612_v50 = vpop.f32.mrf.mxu1 }
 0x61b   : > { %4836 = vst.msk [vmem:[%s5765_s22 + $0xc0] sm:$0xf] %vm4787_vm3, %v4781_v25  ;;  %v4613_v27 = vadd.f32 %v7912_v44, %v4612_v50 }
 0x61d   : > { %v4674_v51 = vadd.f32 %v4613_v27, %v4461_v31  ;;  %v4470_v35 = vpop.f32.mrf.mxu0 }
 0x61e   : > { %v4471_v41 = vadd.f32 %v7904_v42, %v4470_v35 }
 0x61f   : > { %v4728_v11 = vmax.f32 %v4674_v51, 0.0 }
 0x621   : > { %v4782_v59 = vpack.c.bf16 %v4728_v11, %v4728_v11 }
 0x622   : > { %v4615_v56 = vpop.f32.mrf.mxu1 }
 0x623   : > { %4837 = vst.msk [vmem:[%s5765_s22 + $0xc4] sm:$0xf] %vm4787_vm3, %v4782_v59  ;;  %v4616_v46 = vadd.f32 %v7912_v44, %v4615_v56 }
 0x625   : > { %v4675_v30 = vadd.f32 %v4616_v46, %v4464_v18 }
 0x627   : > { %v4729_v3 = vmax.f32 %v4675_v30, 0.0 }
 0x629   : > { %v4783_v39 = vpack.c.bf16 %v4729_v3, %v4729_v3 }
 0x62a   : > { %v4617_v38 = vpop.f32.mrf.mxu1 }
 0x62b   : > { %4838 = vst.msk [vmem:[%s5765_s22 + $0xc8] sm:$0xf] %vm4787_vm3, %v4783_v39  ;;  %v4618_v33 = vadd.f32 %v7912_v44, %v4617_v38 }
 0x62d   : > { %v4676_v12 = vadd.f32 %v4618_v33, %v4466_v13 }
 0x62f   : > { %v4730_v10 = vmax.f32 %v4676_v12, 0.0 }
 0x631   : > { %v4784_v58 = vpack.c.bf16 %v4730_v10, %v4730_v10 }
 0x632   : > { %v4620_v7 = vpop.f32.mrf.mxu1 }
 0x633   : > { %4839 = vst.msk [vmem:[%s5765_s22 + $0xcc] sm:$0xf] %vm4787_vm3, %v4784_v58  ;;  %v4621_v37 = vadd.f32 %v7912_v44, %v4620_v7 }
 0x635   : > { %v4677_v0 = vadd.f32 %v4621_v37, %v4469_v28 }
 0x637   : > { %v4731_v24 = vmax.f32 %v4677_v0, 0.0 }
 0x639   : > { %v4785_v6 = vpack.c.bf16 %v4731_v24, %v4731_v24 }
 0x63a   : > { %v4622_v60 = vpop.f32.mrf.mxu1 }
 0x63b   : > { %4840 = vst.msk [vmem:[%s5765_s22 + $0xd0] sm:$0xf] %vm4787_vm3, %v4785_v6  ;;  %v4623_v2 = vadd.f32 %v7912_v44, %v4622_v60 }
 0x63d   : > { %v4678_v63 = vadd.f32 %v4623_v2, %v4471_v41 }
 0x63f   : > { %v4732_v9 = vmax.f32 %v4678_v63, 0.0 }
 0x641   : > { %v4786_v8 = vpack.c.bf16 %v4732_v9, %v4732_v9 }
 0x643   : > { %4841 = vst.msk [vmem:[%s5765_s22 + $0xd4] sm:$0xf] %vm4787_vm3, %v4786_v8 }
 0x644 PF: > { %s20_s13 = sadd.s32 1, %s5688_s13  }
 0x645   : > { %p17_p5 = scmp.ge.s32.totalorder %s20_s13, 4  }
 0x647   :  { %19 = sbr.rel (!%p17_p5) target bundleno = 1 (0x1), region = 96 }

</bundles_post_ra>
